<compile_context>
chip_gen: v7x
topology: tpu7x:2x2x1
jax: 0.10.0
libtpu: 0.0.40
codegen_flags: <defaults>
</compile_context>

<pallas_src>
import functools
import math

import jax
import jax.numpy as jnp
from jax.experimental import pallas as pl
from jax.experimental.pallas import tpu as pltpu

LN_EPS = 1e-5
BN_EPS = 1e-5
LANE = 128

# Row layout of the packed f32 bias / LayerNorm blob (one [ROWS, W] slab per layer).
_ROW_LN1G, _ROW_LN1B, _ROW_LN2G, _ROW_LN2B = 0, 1, 2, 3
_ROW_BO, _ROW_BF1, _ROW_BF2, _ROW_BQKV, _ROW_HEADB = 4, 5, 6, 7, 8
_BIAS_ROWS = 9


def _round_up(v, m):
    return ((v + m - 1) // m) * m


# ----------------------------------------------------------------------------
# Fused Pallas kernel: 3 x TransformerEncoderLayer + folded classification head
# ----------------------------------------------------------------------------

def fused_classifier_kernel(x_ref, wqkv_ref, wo_ref, wf1_ref, wf2_ref,
                            hw_ref, bias_ref, out_ref,
                            *, nhead, num_layers, t_real):
    """One batch chunk per grid step; the whole forward stays in VMEM/vregs."""
    xb = x_ref[...]                                   # [Bblk, T, E] float32
    Bblk, T, E = xb.shape
    dh = E // nhead
    M = Bblk * T
    Hp = wf1_ref.shape[-1]                            # lane-padded FFN hidden
    out_pad = hw_ref.shape[-1]
    scale = 1.0 / math.sqrt(dh)

    x = xb.reshape(M, E)                              # big-M rows for all 2-D matmuls

    # Key-padding mask: T is padded to a sublane multiple; padded keys get -1e30.
    key_ids = jax.lax.broadcasted_iota(jnp.int32, (1, 1, T), 2)
    kmask = jnp.where(key_ids >= t_real, -1e30, 0.0).astype(jnp.float32)

    def mm(a, w, b):
        # MXU matmul with (possibly bf16) weights; accumulation stays float32.
        return jnp.dot(a.astype(w.dtype), w, preferred_element_type=jnp.float32) + b

    def layernorm(z, g, beta):
        mu = jnp.mean(z, axis=-1, keepdims=True)
        var = jnp.mean((z - mu) ** 2, axis=-1, keepdims=True)
        return (z - mu) * jax.lax.rsqrt(var + LN_EPS) * g + beta

    for l in range(num_layers):                       # static unroll (num_layers == 3)
        bz = bias_ref[l]                              # [ROWS, W] packed biases / LN params
        ln1g = bz[_ROW_LN1G:_ROW_LN1G + 1, :E]
        ln1b = bz[_ROW_LN1B:_ROW_LN1B + 1, :E]
        ln2g = bz[_ROW_LN2G:_ROW_LN2G + 1, :E]
        ln2b = bz[_ROW_LN2B:_ROW_LN2B + 1, :E]
        bo = bz[_ROW_BO:_ROW_BO + 1, :E]
        bf1 = bz[_ROW_BF1:_ROW_BF1 + 1, :Hp]
        bf2 = bz[_ROW_BF2:_ROW_BF2 + 1, :E]
        bqkv = bz[_ROW_BQKV:_ROW_BQKV + 1, :3 * E]

        # ---- fused QKV projection: one 2-D MXU matmul (no x broadcast) ----
        # head h occupies lanes [3*dh*h, 3*dh*(h+1)) ordered [q_h | k_h | v_h].
        qkv = mm(x, wqkv_ref[l], bqkv)                # [M, 3E]
        qkv_g = jnp.concatenate(
            [qkv[:, 3 * dh * h:3 * dh * (h + 1)].reshape(Bblk, T, 3 * dh)
             for h in range(nhead)], axis=0)          # [G = nhead*Bblk, T, 3*dh]
        q = qkv_g[..., 0:dh]
        k = qkv_g[..., dh:2 * dh]
        v = qkv_g[..., 2 * dh:3 * dh]

        # ---- attention: single-batch-dim rank-3 matmuls over G = nhead*Bblk ----
        s = jnp.einsum('gqd,gkd->gqk', q, k,
                       preferred_element_type=jnp.float32) * scale + kmask
        s = s - jnp.max(s, axis=-1, keepdims=True)
        p = jnp.exp(s)
        p = p * pl.reciprocal(jnp.sum(p, axis=-1, keepdims=True), approx=True)
        ctx = jnp.einsum('gqk,gkd->gqd', p, v,
                         preferred_element_type=jnp.float32)           # [G, T, dh]

        # ---- output projection: lane-concat heads, reduction fused into the MXU ----
        ctx_flat = jnp.concatenate(
            [ctx[Bblk * h:Bblk * (h + 1)].reshape(M, dh) for h in range(nhead)],
            axis=-1)                                  # [M, E] (head-major lanes)
        attn = mm(ctx_flat, wo_ref[l], bo)            # [M, E]

        # ---- post-LN residual blocks; dropout = eval-mode identity ----
        h1 = layernorm(x + attn, ln1g, ln1b)
        ff = jnp.maximum(mm(h1, wf1_ref[l], bf1), 0.0)      # ReLU FFN (hidden lane-padded)
        ff = mm(ff, wf2_ref[l], bf2)
        x = layernorm(h1 + ff, ln2g, ln2b)

    # ---- classification head on the CLS token (fc+BN x3 folded into one matmul) ----
    cls = jnp.concatenate([x[b * T:b * T + 1, :] for b in range(Bblk)], axis=0)  # [Bblk, E]
    hb = bias_ref[0][_ROW_HEADB:_ROW_HEADB + 1, :out_pad]
    y = mm(cls, hw_ref[...], hb)                      # [Bblk, out_pad], lane-dense
    out_ref[:, 0, :] = y


# ----------------------------------------------------------------------------
# Trace-time parameter packing (QKV fusion, BN folding, head folding, lane padding)
# ----------------------------------------------------------------------------

def _bn_affine(bn):
    mean, var, gamma, beta = bn
    s = gamma * jax.lax.rsqrt(var + BN_EPS)           # [1, d]
    return s, beta - mean * s


def pack_params(params, mxu_dtype=jnp.bfloat16):
    layers = params['layers']
    nhead = params['nhead']
    E = layers[0]['wq'].shape[0]
    dh = E // nhead
    hidden = layers[0]['wf1'].shape[1]
    Hp = _round_up(hidden, LANE)                      # lane-dense FFN hidden
    out_dim = params['out_dim']
    out_pad = _round_up(out_dim, LANE)                # lane-dense head output
    W = _round_up(max(LANE, E, 3 * E, Hp, out_pad), LANE)

    wqkv_l, wo_l, wf1_l, wf2_l, bias_l = [], [], [], [], []
    for lp in layers:
        cols, bcols = [], []
        for h in range(nhead):
            sl = slice(h * dh, (h + 1) * dh)
            cols += [lp['wq'][:, sl], lp['wk'][:, sl], lp['wv'][:, sl]]
            bcols += [lp['bq'][:, sl], lp['bk'][:, sl], lp['bv'][:, sl]]
        wqkv_l.append(jnp.concatenate(cols, axis=1))  # [E, 3E], head-major [q|k|v] blocks
        bqkv = jnp.concatenate(bcols, axis=1)         # [1, 3E]

        wo_l.append(lp['wo'])                         # [E, E] (input axis head-major)
        wf1_l.append(jnp.pad(lp['wf1'], ((0, 0), (0, Hp - hidden))))
        wf2_l.append(jnp.pad(lp['wf2'], ((0, Hp - hidden), (0, 0))))
        bf1 = jnp.pad(lp['bf1'], ((0, 0), (0, Hp - hidden)))

        rows = jnp.zeros((_BIAS_ROWS, W), jnp.float32)
        rows = rows.at[_ROW_LN1G, :E].set(lp['ln1g'][0])
        rows = rows.at[_ROW_LN1B, :E].set(lp['ln1b'][0])
        rows = rows.at[_ROW_LN2G, :E].set(lp['ln2g'][0])
        rows = rows.at[_ROW_LN2B, :E].set(lp['ln2b'][0])
        rows = rows.at[_ROW_BO, :E].set(lp['bo'][0])
        rows = rows.at[_ROW_BF1, :Hp].set(bf1[0])
        rows = rows.at[_ROW_BF2, :E].set(lp['bf2'][0])
        rows = rows.at[_ROW_BQKV, :3 * E].set(bqkv[0])
        bias_l.append(rows)

    # Head: fc1->bn1->fc2->bn2->fc3->bn3 (no nonlinearity, dropout=id) folded into one affine.
    head = params['head']
    s1, t1 = _bn_affine(head['bn1']); A1 = head['w1'] * s1; c1 = head['b1'] * s1 + t1
    s2, t2 = _bn_affine(head['bn2']); A2 = head['w2'] * s2; c2 = head['b2'] * s2 + t2
    s3, t3 = _bn_affine(head['bn3']); A3 = head['w3'] * s3; c3 = head['b3'] * s3 + t3
    hw = A1 @ A2 @ A3                                  # [E, out_dim]
    hb = (c1 @ A2 + c2) @ A3 + c3                      # [1, out_dim]
    hw = jnp.pad(hw, ((0, 0), (0, out_pad - out_dim)))
    hb = jnp.pad(hb, ((0, 0), (0, out_pad - out_dim)))
    bias_l[0] = bias_l[0].at[_ROW_HEADB, :out_pad].set(hb[0])

    return {
        'wqkv': jnp.stack(wqkv_l).astype(mxu_dtype),   # [L, E, 3E]
        'wo': jnp.stack(wo_l).astype(mxu_dtype),       # [L, E, E]
        'wf1': jnp.stack(wf1_l).astype(mxu_dtype),     # [L, E, Hp]
        'wf2': jnp.stack(wf2_l).astype(mxu_dtype),     # [L, Hp, E]
        'hw': hw.astype(mxu_dtype),                    # [E, out_pad]
        'bias': jnp.stack(bias_l),                     # [L, ROWS, W] float32
    }


# ----------------------------------------------------------------------------
# Glue (positional encoding, cls-token concat) + fused pallas_call wrapper
# ----------------------------------------------------------------------------

def positional_encoding(length, d_model):
    position = jnp.arange(length, dtype=jnp.float32)[:, None]
    div_term = jnp.exp(jnp.arange(0, d_model, 2, dtype=jnp.float32)
                       * (-math.log(10000.0) / d_model))
    pe = jnp.zeros((length, d_model), jnp.float32)
    pe = pe.at[:, 0::2].set(jnp.sin(position * div_term))
    pe = pe.at[:, 1::2].set(jnp.cos(position * div_term))
    return pe[:, None, :]                              # [length, 1, d_model]


def transformer_classifier_forward(lia_features, params, packed, grid_chunks=None):
    """lia_features: [B, S, E] stacked backbone motion features -> (y, lia)."""
    B, S, E = lia_features.shape
    T_real = S + 1
    T = _round_up(T_real, 8)                           # sublane-aligned seq (masked keys)
    nhead = params['nhead']
    num_layers = params['num_layers']
    out_dim = params['out_dim']
    out_pad = packed['hw'].shape[-1]
    Hp = packed['wf1'].shape[-1]

    # ---- glue identical to the PyTorch forward ----
    lia = jnp.transpose(lia_features, (1, 0, 2))       # [S, B, E]
    cls = jnp.broadcast_to(params['cls_token'], (1, B, E))
    lia = jnp.concatenate([cls, lia], axis=0)          # [S+1, B, E]
    lia = lia + positional_encoding(T_real, E)         # pos encoder (max_len=41)

    x = jnp.transpose(lia, (1, 0, 2)).astype(jnp.float32)       # [B, T_real, E]
    x = jnp.pad(x, ((0, 0), (0, T - T_real), (0, 0)))           # [B, T, E]; masked in-kernel

    # Whole batch per grid step by default; 2 chunks for larger even batches so the
    # v7x megacore can split them (near-zero extra per-step overhead elsewhere).
    if grid_chunks is None:
        grid_chunks = 2 if (B >= 8 and B % 2 == 0) else 1
    if B % grid_chunks != 0:
        grid_chunks = 1
    Bblk = B // grid_chunks

    kernel_args = (x, packed['wqkv'], packed['wo'], packed['wf1'],
                   packed['wf2'], packed['hw'], packed['bias'])

    def resident(a):                                   # whole array in VMEM, constant block
        nd = a.ndim
        return pl.BlockSpec(a.shape, lambda b, nd=nd: (0,) * nd)
        # NOTE: when scaling E/hidden on v7x (64 MiB VMEM), add
        # pipeline_mode=pl.Buffered(1) here (resident blocks need no double buffer).

    in_specs = [pl.BlockSpec((Bblk, T, E), lambda b: (b, 0, 0))]
    in_specs += [resident(a) for a in kernel_args[1:]]
    out_spec = pl.BlockSpec((Bblk, 1, out_pad), lambda b: (b, 0, 0))

    # Advisory cost for XLA scheduling around the fused custom call.
    dh = E // nhead
    per_layer = (2 * T * E * 3 * E + 2 * 2 * nhead * T * T * dh
                 + 2 * T * E * E + 2 * 2 * T * E * Hp)
    flops = int(B * (num_layers * per_layer + 2 * E * out_pad))
    transcendentals = int(B * num_layers * (nhead * T * T + nhead * T + 2 * T))
    bytes_accessed = int(sum(a.size * a.dtype.itemsize for a in kernel_args)
                         + B * out_pad * 4)

    y_pad = pl.pallas_call(
        functools.partial(fused_classifier_kernel, nhead=nhead,
                          num_layers=num_layers, t_real=T_real),
        out_shape=jax.ShapeDtypeStruct((B, 1, out_pad), jnp.float32),
        grid=(grid_chunks,),
        in_specs=in_specs,
        out_specs=out_spec,
        compiler_params=pltpu.CompilerParams(
            dimension_semantics=("parallel",)),
        cost_estimate=pl.CostEstimate(flops=flops,
                                      transcendentals=transcendentals,
                                      bytes_accessed=bytes_accessed),
    )(*kernel_args)

    y = y_pad.reshape(B, out_pad)[:, :out_dim]         # drop lane padding
    return y, lia


# ----------------------------------------------------------------------------
# Deterministic parameter initialization (synthetic, mirrors __init__ shapes)
# ----------------------------------------------------------------------------

def _dense(key, fan_in, fan_out):
    k1, k2 = jax.random.split(key)
    lim = 1.0 / math.sqrt(fan_in)
    w = jax.random.uniform(k1, (fan_in, fan_out), jnp.float32, -lim, lim)
    b = jax.random.uniform(k2, (1, fan_out), jnp.float32, -lim, lim)
    return w, b


def _bn(key, dim):
    k1, k2, k3, k4 = jax.random.split(key, 4)
    running_mean = 0.1 * jax.random.normal(k1, (1, dim), jnp.float32)
    running_var = 0.5 + jax.random.uniform(k2, (1, dim), jnp.float32)
    gamma = 1.0 + 0.1 * jax.random.normal(k3, (1, dim), jnp.float32)
    beta = 0.1 * jax.random.normal(k4, (1, dim), jnp.float32)
    return running_mean, running_var, gamma, beta


def init_params(key, E, nhead, hidden, out_dim, num_layers):
    keys = jax.random.split(key, num_layers + 1)
    layers = []
    for li in range(num_layers):
        ks = jax.random.split(keys[li], 6)
        wq, bq = _dense(ks[0], E, E)
        wk, bk = _dense(ks[1], E, E)
        wv, bv = _dense(ks[2], E, E)
        wo, bo = _dense(ks[3], E, E)
        wf1, bf1 = _dense(ks[4], E, hidden)
        wf2, bf2 = _dense(ks[5], hidden, E)
        layers.append(dict(
            wq=wq, wk=wk, wv=wv, wo=wo, bq=bq, bk=bk, bv=bv, bo=bo,
            wf1=wf1, bf1=bf1, wf2=wf2, bf2=bf2,
            ln1g=jnp.ones((1, E), jnp.float32), ln1b=jnp.zeros((1, E), jnp.float32),
            ln2g=jnp.ones((1, E), jnp.float32), ln2b=jnp.zeros((1, E), jnp.float32)))

    kh = jax.random.split(keys[num_layers], 6)
    w1, b1 = _dense(kh[0], E, E // 2)
    w2, b2 = _dense(kh[2], E // 2, E // 4)
    w3, b3 = _dense(kh[4], E // 4, out_dim)
    head = dict(w1=w1, b1=b1, bn1=_bn(kh[1], E // 2),
                w2=w2, b2=b2, bn2=_bn(kh[3], E // 4),
                w3=w3, b3=b3, bn3=_bn(kh[5], out_dim))

    return {
        'cls_token': jnp.zeros((1, 1, E), jnp.float32),   # nn.Parameter(torch.zeros)
        'nhead': nhead,
        'out_dim': out_dim,
        'num_layers': num_layers,
        'layers': layers,
        'head': head,
    }


# ----------------------------------------------------------------------------
# Main
# ----------------------------------------------------------------------------

if __name__ == "__main__":
    # Small shapes consistent with the module (d_model divisible by nhead).
    B, S, E = 2, 8, 32          # batch, seq_length, embedding_size
    NHEAD, HIDDEN = 4, 64       # nhead, dim_feedforward
    OUT = 16                    # output_size
    NUM_LAYERS = 3              # num_encoder_layers

    key = jax.random.PRNGKey(0)
    kp, kx = jax.random.split(key)
    params = init_params(kp, E, NHEAD, HIDDEN, OUT, NUM_LAYERS)

    # bf16 MXU operands by default (f32 accumulation, f32 LayerNorm/softmax/bias math
    # preserved — safe on v5e). Pass mxu_dtype=jnp.float32 for exact reference numerics.
    packed = pack_params(params)

    # Stacked backbone motion features (backbone itself not implemented, see TODO).
    lia_features = jax.random.normal(kx, (B, S, E), jnp.float32)

    y, lia = transformer_classifier_forward(lia_features, params, packed)
    jax.block_until_ready((y, lia))

    assert y.shape == (B, OUT) and y.dtype == jnp.float32
    assert lia.shape == (S + 1, B, E) and lia.dtype == jnp.float32
    assert bool(jnp.all(jnp.isfinite(y))) and bool(jnp.all(jnp.isfinite(lia)))
    print("KERNEL_OK")
</pallas_src>

<mosaic_0001>
module attributes {stable_mosaic.version = 11 : i64} {
  func.func @fused_classifier_kernel(%arg0: i32, %arg1: memref<2x16x32xf32, #tpu.memory_space<vmem>>, %arg2: memref<3x32x96xbf16, #tpu.memory_space<vmem>>, %arg3: memref<3x32x32xbf16, #tpu.memory_space<vmem>>, %arg4: memref<3x32x128xbf16, #tpu.memory_space<vmem>>, %arg5: memref<3x128x32xbf16, #tpu.memory_space<vmem>>, %arg6: memref<32x128xbf16, #tpu.memory_space<vmem>>, %arg7: memref<3x9x128xf32, #tpu.memory_space<vmem>>, %arg8: memref<2x1x128xf32, #tpu.memory_space<vmem>>) attributes {dimension_semantics = [#tpu.dimension_semantics<parallel>], iteration_bounds = array<i64: 1>, scalar_prefetch = 0 : i64, scratch_operands = 0 : i64, tpu.core_type = #tpu.core_type<tc>, window_params = [{transform_indices = @transform_0, window_bounds = array<i64: 2, 16, 32>}, {pipeline_mode = #tpu.pipeline_mode<synchronous>, transform_indices = @transform_1, window_bounds = array<i64: 3, 32, 96>}, {pipeline_mode = #tpu.pipeline_mode<synchronous>, transform_indices = @transform_2, window_bounds = array<i64: 3, 32, 32>}, {pipeline_mode = #tpu.pipeline_mode<synchronous>, transform_indices = @transform_3, window_bounds = array<i64: 3, 32, 128>}, {pipeline_mode = #tpu.pipeline_mode<synchronous>, transform_indices = @transform_4, window_bounds = array<i64: 3, 128, 32>}, {pipeline_mode = #tpu.pipeline_mode<synchronous>, transform_indices = @transform_5, window_bounds = array<i64: 32, 128>}, {pipeline_mode = #tpu.pipeline_mode<synchronous>, transform_indices = @transform_6, window_bounds = array<i64: 3, 9, 128>}, {transform_indices = @transform_7, window_bounds = array<i64: 2, 1, 128>}]} {
    %c0 = arith.constant 0 : index
    %c0_0 = arith.constant 0 : index
    %c0_1 = arith.constant 0 : index
    %0 = vector.load %arg1[%c0, %c0_0, %c0_1] : memref<2x16x32xf32, #tpu.memory_space<vmem>>, vector<2x16x32xf32>
    %1 = vector.shape_cast %0 : vector<2x16x32xf32> to vector<32x32xf32>
    %2 = tpu.iota {dimensions = array<i32: 2>} : vector<1x1x16xi32>
    %c9_i32 = arith.constant 9 : i32
    %3 = vector.broadcast %c9_i32 : i32 to vector<1x1x16xi32>
    %4 = arith.cmpi sge, %2, %3 : vector<1x1x16xi32>
    %cst = arith.constant -1.000000e+30 : f32
    %cst_2 = arith.constant 0.000000e+00 : f32
    %5 = vector.broadcast %cst : f32 to vector<1x1x16xf32>
    %6 = vector.broadcast %cst_2 : f32 to vector<1x1x16xf32>
    %7 = arith.select %4, %5, %6 : vector<1x1x16xi1>, vector<1x1x16xf32>
    %c0_3 = arith.constant 0 : index
    %c0_4 = arith.constant 0 : index
    %c0_5 = arith.constant 0 : index
    %8 = vector.load %arg7[%c0_3, %c0_4, %c0_5] : memref<3x9x128xf32, #tpu.memory_space<vmem>>, vector<1x9x128xf32>
    %9 = vector.shape_cast %8 : vector<1x9x128xf32> to vector<9x128xf32>
    %10 = vector.extract_strided_slice %9 {offsets = [0, 0], sizes = [1, 32], strides = [1, 1]} : vector<9x128xf32> to vector<1x32xf32>
    %11 = vector.extract_strided_slice %9 {offsets = [1, 0], sizes = [1, 32], strides = [1, 1]} : vector<9x128xf32> to vector<1x32xf32>
    %12 = vector.extract_strided_slice %9 {offsets = [2, 0], sizes = [1, 32], strides = [1, 1]} : vector<9x128xf32> to vector<1x32xf32>
    %13 = vector.extract_strided_slice %9 {offsets = [3, 0], sizes = [1, 32], strides = [1, 1]} : vector<9x128xf32> to vector<1x32xf32>
    %14 = vector.extract_strided_slice %9 {offsets = [4, 0], sizes = [1, 32], strides = [1, 1]} : vector<9x128xf32> to vector<1x32xf32>
    %15 = vector.extract_strided_slice %9 {offsets = [5, 0], sizes = [1, 128], strides = [1, 1]} : vector<9x128xf32> to vector<1x128xf32>
    %16 = vector.extract_strided_slice %9 {offsets = [6, 0], sizes = [1, 32], strides = [1, 1]} : vector<9x128xf32> to vector<1x32xf32>
    %17 = vector.extract_strided_slice %9 {offsets = [7, 0], sizes = [1, 96], strides = [1, 1]} : vector<9x128xf32> to vector<1x96xf32>
    %c0_6 = arith.constant 0 : index
    %c0_7 = arith.constant 0 : index
    %c0_8 = arith.constant 0 : index
    %18 = vector.load %arg2[%c0_6, %c0_7, %c0_8] : memref<3x32x96xbf16, #tpu.memory_space<vmem>>, vector<1x32x96xbf16>
    %19 = vector.shape_cast %18 : vector<1x32x96xbf16> to vector<32x96xbf16>
    %20 = arith.truncf %1 : vector<32x32xf32> to vector<32x32xbf16>
    %cst_9 = arith.constant dense<0.000000e+00> : vector<32x96xf32>
    %21 = tpu.matmul %20, %19, %cst_9 {dimension_numbers = #tpu.dot_dimension_numbers<[1], [0], [0], [1], [0, 0, 1, 1], [], []>} : vector<32x32xbf16>, vector<32x96xbf16>, vector<32x96xf32> -> vector<32x96xf32>
    %22 = vector.broadcast %17 : vector<1x96xf32> to vector<32x96xf32>
    %23 = arith.addf %21, %22 : vector<32x96xf32>
    %24 = vector.extract_strided_slice %23 {offsets = [0, 0], sizes = [32, 24], strides = [1, 1]} : vector<32x96xf32> to vector<32x24xf32>
    %25 = vector.shape_cast %24 : vector<32x24xf32> to vector<2x16x24xf32>
    %26 = vector.extract_strided_slice %23 {offsets = [0, 24], sizes = [32, 24], strides = [1, 1]} : vector<32x96xf32> to vector<32x24xf32>
    %27 = vector.shape_cast %26 : vector<32x24xf32> to vector<2x16x24xf32>
    %28 = vector.extract_strided_slice %23 {offsets = [0, 48], sizes = [32, 24], strides = [1, 1]} : vector<32x96xf32> to vector<32x24xf32>
    %29 = vector.shape_cast %28 : vector<32x24xf32> to vector<2x16x24xf32>
    %30 = vector.extract_strided_slice %23 {offsets = [0, 72], sizes = [32, 24], strides = [1, 1]} : vector<32x96xf32> to vector<32x24xf32>
    %31 = vector.shape_cast %30 : vector<32x24xf32> to vector<2x16x24xf32>
    %32 = tpu.concatenate %25, %27, %29, %31 in 0 : vector<2x16x24xf32>, vector<2x16x24xf32>, vector<2x16x24xf32>, vector<2x16x24xf32> -> vector<8x16x24xf32>
    %33 = vector.extract_strided_slice %32 {offsets = [0, 0, 0], sizes = [8, 16, 8], strides = [1, 1, 1]} : vector<8x16x24xf32> to vector<8x16x8xf32>
    %34 = vector.extract_strided_slice %32 {offsets = [0, 0, 8], sizes = [8, 16, 8], strides = [1, 1, 1]} : vector<8x16x24xf32> to vector<8x16x8xf32>
    %35 = vector.extract_strided_slice %32 {offsets = [0, 0, 16], sizes = [8, 16, 8], strides = [1, 1, 1]} : vector<8x16x24xf32> to vector<8x16x8xf32>
    "tpu.trace_start"() <{level = 10 : i32, message = "gqd,gkd->gqk"}> : () -> ()
    %cst_10 = arith.constant dense<0.000000e+00> : vector<8x16x16xf32>
    %36 = tpu.matmul %33, %34, %cst_10 {dimension_numbers = #tpu.dot_dimension_numbers<[2], [2], [1], [1], [0, 0, 0, 1, 1, 1], [0], [0]>} : vector<8x16x8xf32>, vector<8x16x8xf32>, vector<8x16x16xf32> -> vector<8x16x16xf32>
    "tpu.trace_stop"() : () -> ()
    %cst_11 = arith.constant 0.353553385 : f32
    %37 = vector.broadcast %cst_11 : f32 to vector<8x16x16xf32>
    %38 = arith.mulf %36, %37 : vector<8x16x16xf32>
    %39 = vector.broadcast %7 : vector<1x1x16xf32> to vector<8x16x16xf32>
    %40 = arith.addf %38, %39 : vector<8x16x16xf32>
    %cst_12 = arith.constant dense<0xFF800000> : vector<8x16xf32>
    %41 = vector.multi_reduction <maximumf>, %40, %cst_12 [2] : vector<8x16x16xf32> to vector<8x16xf32>
    %42 = vector.shape_cast %41 : vector<8x16xf32> to vector<8x16x1xf32>
    %43 = vector.broadcast %42 : vector<8x16x1xf32> to vector<8x16x16xf32>
    %44 = arith.subf %40, %43 : vector<8x16x16xf32>
    %45 = math.exp %44 : vector<8x16x16xf32>
    %cst_13 = arith.constant dense<0.000000e+00> : vector<8x16xf32>
    %46 = vector.multi_reduction <add>, %45, %cst_13 [2] : vector<8x16x16xf32> to vector<8x16xf32>
    %47 = vector.shape_cast %46 : vector<8x16xf32> to vector<8x16x1xf32>
    %48 = tpu.reciprocal %47 {approx = true} : vector<8x16x1xf32> -> vector<8x16x1xf32>
    %49 = vector.broadcast %48 : vector<8x16x1xf32> to vector<8x16x16xf32>
    %50 = arith.mulf %45, %49 : vector<8x16x16xf32>
    "tpu.trace_start"() <{level = 10 : i32, message = "gqk,gkd->gqd"}> : () -> ()
    %cst_14 = arith.constant dense<0.000000e+00> : vector<8x16x8xf32>
    %51 = tpu.matmul %50, %35, %cst_14 {dimension_numbers = #tpu.dot_dimension_numbers<[2], [1], [1], [2], [0, 0, 0, 1, 1, 2], [0], [0]>} : vector<8x16x16xf32>, vector<8x16x8xf32>, vector<8x16x8xf32> -> vector<8x16x8xf32>
    "tpu.trace_stop"() : () -> ()
    %52 = vector.extract_strided_slice %51 {offsets = [0, 0, 0], sizes = [2, 16, 8], strides = [1, 1, 1]} : vector<8x16x8xf32> to vector<2x16x8xf32>
    %53 = vector.shape_cast %52 : vector<2x16x8xf32> to vector<32x8xf32>
    %54 = vector.extract_strided_slice %51 {offsets = [2, 0, 0], sizes = [2, 16, 8], strides = [1, 1, 1]} : vector<8x16x8xf32> to vector<2x16x8xf32>
    %55 = vector.shape_cast %54 : vector<2x16x8xf32> to vector<32x8xf32>
    %56 = vector.extract_strided_slice %51 {offsets = [4, 0, 0], sizes = [2, 16, 8], strides = [1, 1, 1]} : vector<8x16x8xf32> to vector<2x16x8xf32>
    %57 = vector.shape_cast %56 : vector<2x16x8xf32> to vector<32x8xf32>
    %58 = vector.extract_strided_slice %51 {offsets = [6, 0, 0], sizes = [2, 16, 8], strides = [1, 1, 1]} : vector<8x16x8xf32> to vector<2x16x8xf32>
    %59 = vector.shape_cast %58 : vector<2x16x8xf32> to vector<32x8xf32>
    %60 = tpu.concatenate %53, %55, %57, %59 in 1 : vector<32x8xf32>, vector<32x8xf32>, vector<32x8xf32>, vector<32x8xf32> -> vector<32x32xf32>
    %c0_15 = arith.constant 0 : index
    %c0_16 = arith.constant 0 : index
    %c0_17 = arith.constant 0 : index
    %61 = vector.load %arg3[%c0_15, %c0_16, %c0_17] : memref<3x32x32xbf16, #tpu.memory_space<vmem>>, vector<1x32x32xbf16>
    %62 = vector.shape_cast %61 : vector<1x32x32xbf16> to vector<32x32xbf16>
    %63 = arith.truncf %60 : vector<32x32xf32> to vector<32x32xbf16>
    %cst_18 = arith.constant dense<0.000000e+00> : vector<32x32xf32>
    %64 = tpu.matmul %63, %62, %cst_18 {dimension_numbers = #tpu.dot_dimension_numbers<[1], [0], [0], [1], [0, 0, 1, 1], [], []>} : vector<32x32xbf16>, vector<32x32xbf16>, vector<32x32xf32> -> vector<32x32xf32>
    %65 = vector.broadcast %14 : vector<1x32xf32> to vector<32x32xf32>
    %66 = arith.addf %64, %65 : vector<32x32xf32>
    %67 = arith.addf %1, %66 : vector<32x32xf32>
    %cst_19 = arith.constant dense<0.000000e+00> : vector<32xf32>
    %68 = vector.multi_reduction <add>, %67, %cst_19 [1] : vector<32x32xf32> to vector<32xf32>
    %69 = vector.shape_cast %68 : vector<32xf32> to vector<32x1xf32>
    %cst_20 = arith.constant 3.200000e+01 : f32
    %70 = vector.broadcast %cst_20 : f32 to vector<32x1xf32>
    %71 = arith.divf %69, %70 : vector<32x1xf32>
    %72 = vector.broadcast %71 : vector<32x1xf32> to vector<32x32xf32>
    %73 = arith.subf %67, %72 : vector<32x32xf32>
    %74 = arith.mulf %73, %73 : vector<32x32xf32>
    %cst_21 = arith.constant dense<0.000000e+00> : vector<32xf32>
    %75 = vector.multi_reduction <add>, %74, %cst_21 [1] : vector<32x32xf32> to vector<32xf32>
    %76 = vector.shape_cast %75 : vector<32xf32> to vector<32x1xf32>
    %cst_22 = arith.constant 3.200000e+01 : f32
    %77 = vector.broadcast %cst_22 : f32 to vector<32x1xf32>
    %78 = arith.divf %76, %77 : vector<32x1xf32>
    %79 = vector.broadcast %71 : vector<32x1xf32> to vector<32x32xf32>
    %80 = arith.subf %67, %79 : vector<32x32xf32>
    %cst_23 = arith.constant 9.99999974E-6 : f32
    %81 = vector.broadcast %cst_23 : f32 to vector<32x1xf32>
    %82 = arith.addf %78, %81 : vector<32x1xf32>
    %83 = math.rsqrt %82 : vector<32x1xf32>
    %84 = vector.broadcast %83 : vector<32x1xf32> to vector<32x32xf32>
    %85 = arith.mulf %80, %84 : vector<32x32xf32>
    %86 = vector.broadcast %10 : vector<1x32xf32> to vector<32x32xf32>
    %87 = arith.mulf %85, %86 : vector<32x32xf32>
    %88 = vector.broadcast %11 : vector<1x32xf32> to vector<32x32xf32>
    %89 = arith.addf %87, %88 : vector<32x32xf32>
    %c0_24 = arith.constant 0 : index
    %c0_25 = arith.constant 0 : index
    %c0_26 = arith.constant 0 : index
    %90 = vector.load %arg4[%c0_24, %c0_25, %c0_26] : memref<3x32x128xbf16, #tpu.memory_space<vmem>>, vector<1x32x128xbf16>
    %91 = vector.shape_cast %90 : vector<1x32x128xbf16> to vector<32x128xbf16>
    %92 = arith.truncf %89 : vector<32x32xf32> to vector<32x32xbf16>
    %cst_27 = arith.constant dense<0.000000e+00> : vector<32x128xf32>
    %93 = tpu.matmul %92, %91, %cst_27 {dimension_numbers = #tpu.dot_dimension_numbers<[1], [0], [0], [1], [0, 0, 1, 1], [], []>} : vector<32x32xbf16>, vector<32x128xbf16>, vector<32x128xf32> -> vector<32x128xf32>
    %94 = vector.broadcast %15 : vector<1x128xf32> to vector<32x128xf32>
    %95 = arith.addf %93, %94 : vector<32x128xf32>
    %cst_28 = arith.constant 0.000000e+00 : f32
    %96 = vector.broadcast %cst_28 : f32 to vector<32x128xf32>
    %97 = arith.maximumf %95, %96 : vector<32x128xf32>
    %c0_29 = arith.constant 0 : index
    %c0_30 = arith.constant 0 : index
    %c0_31 = arith.constant 0 : index
    %98 = vector.load %arg5[%c0_29, %c0_30, %c0_31] : memref<3x128x32xbf16, #tpu.memory_space<vmem>>, vector<1x128x32xbf16>
    %99 = vector.shape_cast %98 : vector<1x128x32xbf16> to vector<128x32xbf16>
    %100 = arith.truncf %97 : vector<32x128xf32> to vector<32x128xbf16>
    %cst_32 = arith.constant dense<0.000000e+00> : vector<32x32xf32>
    %101 = tpu.matmul %100, %99, %cst_32 {dimension_numbers = #tpu.dot_dimension_numbers<[1], [0], [0], [1], [0, 0, 1, 1], [], []>} : vector<32x128xbf16>, vector<128x32xbf16>, vector<32x32xf32> -> vector<32x32xf32>
    %102 = vector.broadcast %16 : vector<1x32xf32> to vector<32x32xf32>
    %103 = arith.addf %101, %102 : vector<32x32xf32>
    %104 = arith.addf %89, %103 : vector<32x32xf32>
    %cst_33 = arith.constant dense<0.000000e+00> : vector<32xf32>
    %105 = vector.multi_reduction <add>, %104, %cst_33 [1] : vector<32x32xf32> to vector<32xf32>
    %106 = vector.shape_cast %105 : vector<32xf32> to vector<32x1xf32>
    %cst_34 = arith.constant 3.200000e+01 : f32
    %107 = vector.broadcast %cst_34 : f32 to vector<32x1xf32>
    %108 = arith.divf %106, %107 : vector<32x1xf32>
    %109 = vector.broadcast %108 : vector<32x1xf32> to vector<32x32xf32>
    %110 = arith.subf %104, %109 : vector<32x32xf32>
    %111 = arith.mulf %110, %110 : vector<32x32xf32>
    %cst_35 = arith.constant dense<0.000000e+00> : vector<32xf32>
    %112 = vector.multi_reduction <add>, %111, %cst_35 [1] : vector<32x32xf32> to vector<32xf32>
    %113 = vector.shape_cast %112 : vector<32xf32> to vector<32x1xf32>
    %cst_36 = arith.constant 3.200000e+01 : f32
    %114 = vector.broadcast %cst_36 : f32 to vector<32x1xf32>
    %115 = arith.divf %113, %114 : vector<32x1xf32>
    %116 = vector.broadcast %108 : vector<32x1xf32> to vector<32x32xf32>
    %117 = arith.subf %104, %116 : vector<32x32xf32>
    %cst_37 = arith.constant 9.99999974E-6 : f32
    %118 = vector.broadcast %cst_37 : f32 to vector<32x1xf32>
    %119 = arith.addf %115, %118 : vector<32x1xf32>
    %120 = math.rsqrt %119 : vector<32x1xf32>
    %121 = vector.broadcast %120 : vector<32x1xf32> to vector<32x32xf32>
    %122 = arith.mulf %117, %121 : vector<32x32xf32>
    %123 = vector.broadcast %12 : vector<1x32xf32> to vector<32x32xf32>
    %124 = arith.mulf %122, %123 : vector<32x32xf32>
    %125 = vector.broadcast %13 : vector<1x32xf32> to vector<32x32xf32>
    %126 = arith.addf %124, %125 : vector<32x32xf32>
    %c1 = arith.constant 1 : index
    %c0_38 = arith.constant 0 : index
    %c0_39 = arith.constant 0 : index
    %127 = vector.load %arg7[%c1, %c0_38, %c0_39] : memref<3x9x128xf32, #tpu.memory_space<vmem>>, vector<1x9x128xf32>
    %128 = vector.shape_cast %127 : vector<1x9x128xf32> to vector<9x128xf32>
    %129 = vector.extract_strided_slice %128 {offsets = [0, 0], sizes = [1, 32], strides = [1, 1]} : vector<9x128xf32> to vector<1x32xf32>
    %130 = vector.extract_strided_slice %128 {offsets = [1, 0], sizes = [1, 32], strides = [1, 1]} : vector<9x128xf32> to vector<1x32xf32>
    %131 = vector.extract_strided_slice %128 {offsets = [2, 0], sizes = [1, 32], strides = [1, 1]} : vector<9x128xf32> to vector<1x32xf32>
    %132 = vector.extract_strided_slice %128 {offsets = [3, 0], sizes = [1, 32], strides = [1, 1]} : vector<9x128xf32> to vector<1x32xf32>
    %133 = vector.extract_strided_slice %128 {offsets = [4, 0], sizes = [1, 32], strides = [1, 1]} : vector<9x128xf32> to vector<1x32xf32>
    %134 = vector.extract_strided_slice %128 {offsets = [5, 0], sizes = [1, 128], strides = [1, 1]} : vector<9x128xf32> to vector<1x128xf32>
    %135 = vector.extract_strided_slice %128 {offsets = [6, 0], sizes = [1, 32], strides = [1, 1]} : vector<9x128xf32> to vector<1x32xf32>
    %136 = vector.extract_strided_slice %128 {offsets = [7, 0], sizes = [1, 96], strides = [1, 1]} : vector<9x128xf32> to vector<1x96xf32>
    %c1_40 = arith.constant 1 : index
    %c0_41 = arith.constant 0 : index
    %c0_42 = arith.constant 0 : index
    %137 = vector.load %arg2[%c1_40, %c0_41, %c0_42] : memref<3x32x96xbf16, #tpu.memory_space<vmem>>, vector<1x32x96xbf16>
    %138 = vector.shape_cast %137 : vector<1x32x96xbf16> to vector<32x96xbf16>
    %139 = arith.truncf %126 : vector<32x32xf32> to vector<32x32xbf16>
    %cst_43 = arith.constant dense<0.000000e+00> : vector<32x96xf32>
    %140 = tpu.matmul %139, %138, %cst_43 {dimension_numbers = #tpu.dot_dimension_numbers<[1], [0], [0], [1], [0, 0, 1, 1], [], []>} : vector<32x32xbf16>, vector<32x96xbf16>, vector<32x96xf32> -> vector<32x96xf32>
    %141 = vector.broadcast %136 : vector<1x96xf32> to vector<32x96xf32>
    %142 = arith.addf %140, %141 : vector<32x96xf32>
    %143 = vector.extract_strided_slice %142 {offsets = [0, 0], sizes = [32, 24], strides = [1, 1]} : vector<32x96xf32> to vector<32x24xf32>
    %144 = vector.shape_cast %143 : vector<32x24xf32> to vector<2x16x24xf32>
    %145 = vector.extract_strided_slice %142 {offsets = [0, 24], sizes = [32, 24], strides = [1, 1]} : vector<32x96xf32> to vector<32x24xf32>
    %146 = vector.shape_cast %145 : vector<32x24xf32> to vector<2x16x24xf32>
    %147 = vector.extract_strided_slice %142 {offsets = [0, 48], sizes = [32, 24], strides = [1, 1]} : vector<32x96xf32> to vector<32x24xf32>
    %148 = vector.shape_cast %147 : vector<32x24xf32> to vector<2x16x24xf32>
    %149 = vector.extract_strided_slice %142 {offsets = [0, 72], sizes = [32, 24], strides = [1, 1]} : vector<32x96xf32> to vector<32x24xf32>
    %150 = vector.shape_cast %149 : vector<32x24xf32> to vector<2x16x24xf32>
    %151 = tpu.concatenate %144, %146, %148, %150 in 0 : vector<2x16x24xf32>, vector<2x16x24xf32>, vector<2x16x24xf32>, vector<2x16x24xf32> -> vector<8x16x24xf32>
    %152 = vector.extract_strided_slice %151 {offsets = [0, 0, 0], sizes = [8, 16, 8], strides = [1, 1, 1]} : vector<8x16x24xf32> to vector<8x16x8xf32>
    %153 = vector.extract_strided_slice %151 {offsets = [0, 0, 8], sizes = [8, 16, 8], strides = [1, 1, 1]} : vector<8x16x24xf32> to vector<8x16x8xf32>
    %154 = vector.extract_strided_slice %151 {offsets = [0, 0, 16], sizes = [8, 16, 8], strides = [1, 1, 1]} : vector<8x16x24xf32> to vector<8x16x8xf32>
    "tpu.trace_start"() <{level = 10 : i32, message = "gqd,gkd->gqk"}> : () -> ()
    %cst_44 = arith.constant dense<0.000000e+00> : vector<8x16x16xf32>
    %155 = tpu.matmul %152, %153, %cst_44 {dimension_numbers = #tpu.dot_dimension_numbers<[2], [2], [1], [1], [0, 0, 0, 1, 1, 1], [0], [0]>} : vector<8x16x8xf32>, vector<8x16x8xf32>, vector<8x16x16xf32> -> vector<8x16x16xf32>
    "tpu.trace_stop"() : () -> ()
    %cst_45 = arith.constant 0.353553385 : f32
    %156 = vector.broadcast %cst_45 : f32 to vector<8x16x16xf32>
    %157 = arith.mulf %155, %156 : vector<8x16x16xf32>
    %158 = vector.broadcast %7 : vector<1x1x16xf32> to vector<8x16x16xf32>
    %159 = arith.addf %157, %158 : vector<8x16x16xf32>
    %cst_46 = arith.constant dense<0xFF800000> : vector<8x16xf32>
    %160 = vector.multi_reduction <maximumf>, %159, %cst_46 [2] : vector<8x16x16xf32> to vector<8x16xf32>
    %161 = vector.shape_cast %160 : vector<8x16xf32> to vector<8x16x1xf32>
    %162 = vector.broadcast %161 : vector<8x16x1xf32> to vector<8x16x16xf32>
    %163 = arith.subf %159, %162 : vector<8x16x16xf32>
    %164 = math.exp %163 : vector<8x16x16xf32>
    %cst_47 = arith.constant dense<0.000000e+00> : vector<8x16xf32>
    %165 = vector.multi_reduction <add>, %164, %cst_47 [2] : vector<8x16x16xf32> to vector<8x16xf32>
    %166 = vector.shape_cast %165 : vector<8x16xf32> to vector<8x16x1xf32>
    %167 = tpu.reciprocal %166 {approx = true} : vector<8x16x1xf32> -> vector<8x16x1xf32>
    %168 = vector.broadcast %167 : vector<8x16x1xf32> to vector<8x16x16xf32>
    %169 = arith.mulf %164, %168 : vector<8x16x16xf32>
    "tpu.trace_start"() <{level = 10 : i32, message = "gqk,gkd->gqd"}> : () -> ()
    %cst_48 = arith.constant dense<0.000000e+00> : vector<8x16x8xf32>
    %170 = tpu.matmul %169, %154, %cst_48 {dimension_numbers = #tpu.dot_dimension_numbers<[2], [1], [1], [2], [0, 0, 0, 1, 1, 2], [0], [0]>} : vector<8x16x16xf32>, vector<8x16x8xf32>, vector<8x16x8xf32> -> vector<8x16x8xf32>
    "tpu.trace_stop"() : () -> ()
    %171 = vector.extract_strided_slice %170 {offsets = [0, 0, 0], sizes = [2, 16, 8], strides = [1, 1, 1]} : vector<8x16x8xf32> to vector<2x16x8xf32>
    %172 = vector.shape_cast %171 : vector<2x16x8xf32> to vector<32x8xf32>
    %173 = vector.extract_strided_slice %170 {offsets = [2, 0, 0], sizes = [2, 16, 8], strides = [1, 1, 1]} : vector<8x16x8xf32> to vector<2x16x8xf32>
    %174 = vector.shape_cast %173 : vector<2x16x8xf32> to vector<32x8xf32>
    %175 = vector.extract_strided_slice %170 {offsets = [4, 0, 0], sizes = [2, 16, 8], strides = [1, 1, 1]} : vector<8x16x8xf32> to vector<2x16x8xf32>
    %176 = vector.shape_cast %175 : vector<2x16x8xf32> to vector<32x8xf32>
    %177 = vector.extract_strided_slice %170 {offsets = [6, 0, 0], sizes = [2, 16, 8], strides = [1, 1, 1]} : vector<8x16x8xf32> to vector<2x16x8xf32>
    %178 = vector.shape_cast %177 : vector<2x16x8xf32> to vector<32x8xf32>
    %179 = tpu.concatenate %172, %174, %176, %178 in 1 : vector<32x8xf32>, vector<32x8xf32>, vector<32x8xf32>, vector<32x8xf32> -> vector<32x32xf32>
    %c1_49 = arith.constant 1 : index
    %c0_50 = arith.constant 0 : index
    %c0_51 = arith.constant 0 : index
    %180 = vector.load %arg3[%c1_49, %c0_50, %c0_51] : memref<3x32x32xbf16, #tpu.memory_space<vmem>>, vector<1x32x32xbf16>
    %181 = vector.shape_cast %180 : vector<1x32x32xbf16> to vector<32x32xbf16>
    %182 = arith.truncf %179 : vector<32x32xf32> to vector<32x32xbf16>
    %cst_52 = arith.constant dense<0.000000e+00> : vector<32x32xf32>
    %183 = tpu.matmul %182, %181, %cst_52 {dimension_numbers = #tpu.dot_dimension_numbers<[1], [0], [0], [1], [0, 0, 1, 1], [], []>} : vector<32x32xbf16>, vector<32x32xbf16>, vector<32x32xf32> -> vector<32x32xf32>
    %184 = vector.broadcast %133 : vector<1x32xf32> to vector<32x32xf32>
    %185 = arith.addf %183, %184 : vector<32x32xf32>
    %186 = arith.addf %126, %185 : vector<32x32xf32>
    %cst_53 = arith.constant dense<0.000000e+00> : vector<32xf32>
    %187 = vector.multi_reduction <add>, %186, %cst_53 [1] : vector<32x32xf32> to vector<32xf32>
    %188 = vector.shape_cast %187 : vector<32xf32> to vector<32x1xf32>
    %cst_54 = arith.constant 3.200000e+01 : f32
    %189 = vector.broadcast %cst_54 : f32 to vector<32x1xf32>
    %190 = arith.divf %188, %189 : vector<32x1xf32>
    %191 = vector.broadcast %190 : vector<32x1xf32> to vector<32x32xf32>
    %192 = arith.subf %186, %191 : vector<32x32xf32>
    %193 = arith.mulf %192, %192 : vector<32x32xf32>
    %cst_55 = arith.constant dense<0.000000e+00> : vector<32xf32>
    %194 = vector.multi_reduction <add>, %193, %cst_55 [1] : vector<32x32xf32> to vector<32xf32>
    %195 = vector.shape_cast %194 : vector<32xf32> to vector<32x1xf32>
    %cst_56 = arith.constant 3.200000e+01 : f32
    %196 = vector.broadcast %cst_56 : f32 to vector<32x1xf32>
    %197 = arith.divf %195, %196 : vector<32x1xf32>
    %198 = vector.broadcast %190 : vector<32x1xf32> to vector<32x32xf32>
    %199 = arith.subf %186, %198 : vector<32x32xf32>
    %cst_57 = arith.constant 9.99999974E-6 : f32
    %200 = vector.broadcast %cst_57 : f32 to vector<32x1xf32>
    %201 = arith.addf %197, %200 : vector<32x1xf32>
    %202 = math.rsqrt %201 : vector<32x1xf32>
    %203 = vector.broadcast %202 : vector<32x1xf32> to vector<32x32xf32>
    %204 = arith.mulf %199, %203 : vector<32x32xf32>
    %205 = vector.broadcast %129 : vector<1x32xf32> to vector<32x32xf32>
    %206 = arith.mulf %204, %205 : vector<32x32xf32>
    %207 = vector.broadcast %130 : vector<1x32xf32> to vector<32x32xf32>
    %208 = arith.addf %206, %207 : vector<32x32xf32>
    %c1_58 = arith.constant 1 : index
    %c0_59 = arith.constant 0 : index
    %c0_60 = arith.constant 0 : index
    %209 = vector.load %arg4[%c1_58, %c0_59, %c0_60] : memref<3x32x128xbf16, #tpu.memory_space<vmem>>, vector<1x32x128xbf16>
    %210 = vector.shape_cast %209 : vector<1x32x128xbf16> to vector<32x128xbf16>
    %211 = arith.truncf %208 : vector<32x32xf32> to vector<32x32xbf16>
    %cst_61 = arith.constant dense<0.000000e+00> : vector<32x128xf32>
    %212 = tpu.matmul %211, %210, %cst_61 {dimension_numbers = #tpu.dot_dimension_numbers<[1], [0], [0], [1], [0, 0, 1, 1], [], []>} : vector<32x32xbf16>, vector<32x128xbf16>, vector<32x128xf32> -> vector<32x128xf32>
    %213 = vector.broadcast %134 : vector<1x128xf32> to vector<32x128xf32>
    %214 = arith.addf %212, %213 : vector<32x128xf32>
    %cst_62 = arith.constant 0.000000e+00 : f32
    %215 = vector.broadcast %cst_62 : f32 to vector<32x128xf32>
    %216 = arith.maximumf %214, %215 : vector<32x128xf32>
    %c1_63 = arith.constant 1 : index
    %c0_64 = arith.constant 0 : index
    %c0_65 = arith.constant 0 : index
    %217 = vector.load %arg5[%c1_63, %c0_64, %c0_65] : memref<3x128x32xbf16, #tpu.memory_space<vmem>>, vector<1x128x32xbf16>
    %218 = vector.shape_cast %217 : vector<1x128x32xbf16> to vector<128x32xbf16>
    %219 = arith.truncf %216 : vector<32x128xf32> to vector<32x128xbf16>
    %cst_66 = arith.constant dense<0.000000e+00> : vector<32x32xf32>
    %220 = tpu.matmul %219, %218, %cst_66 {dimension_numbers = #tpu.dot_dimension_numbers<[1], [0], [0], [1], [0, 0, 1, 1], [], []>} : vector<32x128xbf16>, vector<128x32xbf16>, vector<32x32xf32> -> vector<32x32xf32>
    %221 = vector.broadcast %135 : vector<1x32xf32> to vector<32x32xf32>
    %222 = arith.addf %220, %221 : vector<32x32xf32>
    %223 = arith.addf %208, %222 : vector<32x32xf32>
    %cst_67 = arith.constant dense<0.000000e+00> : vector<32xf32>
    %224 = vector.multi_reduction <add>, %223, %cst_67 [1] : vector<32x32xf32> to vector<32xf32>
    %225 = vector.shape_cast %224 : vector<32xf32> to vector<32x1xf32>
    %cst_68 = arith.constant 3.200000e+01 : f32
    %226 = vector.broadcast %cst_68 : f32 to vector<32x1xf32>
    %227 = arith.divf %225, %226 : vector<32x1xf32>
    %228 = vector.broadcast %227 : vector<32x1xf32> to vector<32x32xf32>
    %229 = arith.subf %223, %228 : vector<32x32xf32>
    %230 = arith.mulf %229, %229 : vector<32x32xf32>
    %cst_69 = arith.constant dense<0.000000e+00> : vector<32xf32>
    %231 = vector.multi_reduction <add>, %230, %cst_69 [1] : vector<32x32xf32> to vector<32xf32>
    %232 = vector.shape_cast %231 : vector<32xf32> to vector<32x1xf32>
    %cst_70 = arith.constant 3.200000e+01 : f32
    %233 = vector.broadcast %cst_70 : f32 to vector<32x1xf32>
    %234 = arith.divf %232, %233 : vector<32x1xf32>
    %235 = vector.broadcast %227 : vector<32x1xf32> to vector<32x32xf32>
    %236 = arith.subf %223, %235 : vector<32x32xf32>
    %cst_71 = arith.constant 9.99999974E-6 : f32
    %237 = vector.broadcast %cst_71 : f32 to vector<32x1xf32>
    %238 = arith.addf %234, %237 : vector<32x1xf32>
    %239 = math.rsqrt %238 : vector<32x1xf32>
    %240 = vector.broadcast %239 : vector<32x1xf32> to vector<32x32xf32>
    %241 = arith.mulf %236, %240 : vector<32x32xf32>
    %242 = vector.broadcast %131 : vector<1x32xf32> to vector<32x32xf32>
    %243 = arith.mulf %241, %242 : vector<32x32xf32>
    %244 = vector.broadcast %132 : vector<1x32xf32> to vector<32x32xf32>
    %245 = arith.addf %243, %244 : vector<32x32xf32>
    %c2 = arith.constant 2 : index
    %c0_72 = arith.constant 0 : index
    %c0_73 = arith.constant 0 : index
    %246 = vector.load %arg7[%c2, %c0_72, %c0_73] : memref<3x9x128xf32, #tpu.memory_space<vmem>>, vector<1x9x128xf32>
    %247 = vector.shape_cast %246 : vector<1x9x128xf32> to vector<9x128xf32>
    %248 = vector.extract_strided_slice %247 {offsets = [0, 0], sizes = [1, 32], strides = [1, 1]} : vector<9x128xf32> to vector<1x32xf32>
    %249 = vector.extract_strided_slice %247 {offsets = [1, 0], sizes = [1, 32], strides = [1, 1]} : vector<9x128xf32> to vector<1x32xf32>
    %250 = vector.extract_strided_slice %247 {offsets = [2, 0], sizes = [1, 32], strides = [1, 1]} : vector<9x128xf32> to vector<1x32xf32>
    %251 = vector.extract_strided_slice %247 {offsets = [3, 0], sizes = [1, 32], strides = [1, 1]} : vector<9x128xf32> to vector<1x32xf32>
    %252 = vector.extract_strided_slice %247 {offsets = [4, 0], sizes = [1, 32], strides = [1, 1]} : vector<9x128xf32> to vector<1x32xf32>
    %253 = vector.extract_strided_slice %247 {offsets = [5, 0], sizes = [1, 128], strides = [1, 1]} : vector<9x128xf32> to vector<1x128xf32>
    %254 = vector.extract_strided_slice %247 {offsets = [6, 0], sizes = [1, 32], strides = [1, 1]} : vector<9x128xf32> to vector<1x32xf32>
    %255 = vector.extract_strided_slice %247 {offsets = [7, 0], sizes = [1, 96], strides = [1, 1]} : vector<9x128xf32> to vector<1x96xf32>
    %c2_74 = arith.constant 2 : index
    %c0_75 = arith.constant 0 : index
    %c0_76 = arith.constant 0 : index
    %256 = vector.load %arg2[%c2_74, %c0_75, %c0_76] : memref<3x32x96xbf16, #tpu.memory_space<vmem>>, vector<1x32x96xbf16>
    %257 = vector.shape_cast %256 : vector<1x32x96xbf16> to vector<32x96xbf16>
    %258 = arith.truncf %245 : vector<32x32xf32> to vector<32x32xbf16>
    %cst_77 = arith.constant dense<0.000000e+00> : vector<32x96xf32>
    %259 = tpu.matmul %258, %257, %cst_77 {dimension_numbers = #tpu.dot_dimension_numbers<[1], [0], [0], [1], [0, 0, 1, 1], [], []>} : vector<32x32xbf16>, vector<32x96xbf16>, vector<32x96xf32> -> vector<32x96xf32>
    %260 = vector.broadcast %255 : vector<1x96xf32> to vector<32x96xf32>
    %261 = arith.addf %259, %260 : vector<32x96xf32>
    %262 = vector.extract_strided_slice %261 {offsets = [0, 0], sizes = [32, 24], strides = [1, 1]} : vector<32x96xf32> to vector<32x24xf32>
    %263 = vector.shape_cast %262 : vector<32x24xf32> to vector<2x16x24xf32>
    %264 = vector.extract_strided_slice %261 {offsets = [0, 24], sizes = [32, 24], strides = [1, 1]} : vector<32x96xf32> to vector<32x24xf32>
    %265 = vector.shape_cast %264 : vector<32x24xf32> to vector<2x16x24xf32>
    %266 = vector.extract_strided_slice %261 {offsets = [0, 48], sizes = [32, 24], strides = [1, 1]} : vector<32x96xf32> to vector<32x24xf32>
    %267 = vector.shape_cast %266 : vector<32x24xf32> to vector<2x16x24xf32>
    %268 = vector.extract_strided_slice %261 {offsets = [0, 72], sizes = [32, 24], strides = [1, 1]} : vector<32x96xf32> to vector<32x24xf32>
    %269 = vector.shape_cast %268 : vector<32x24xf32> to vector<2x16x24xf32>
    %270 = tpu.concatenate %263, %265, %267, %269 in 0 : vector<2x16x24xf32>, vector<2x16x24xf32>, vector<2x16x24xf32>, vector<2x16x24xf32> -> vector<8x16x24xf32>
    %271 = vector.extract_strided_slice %270 {offsets = [0, 0, 0], sizes = [8, 16, 8], strides = [1, 1, 1]} : vector<8x16x24xf32> to vector<8x16x8xf32>
    %272 = vector.extract_strided_slice %270 {offsets = [0, 0, 8], sizes = [8, 16, 8], strides = [1, 1, 1]} : vector<8x16x24xf32> to vector<8x16x8xf32>
    %273 = vector.extract_strided_slice %270 {offsets = [0, 0, 16], sizes = [8, 16, 8], strides = [1, 1, 1]} : vector<8x16x24xf32> to vector<8x16x8xf32>
    "tpu.trace_start"() <{level = 10 : i32, message = "gqd,gkd->gqk"}> : () -> ()
    %cst_78 = arith.constant dense<0.000000e+00> : vector<8x16x16xf32>
    %274 = tpu.matmul %271, %272, %cst_78 {dimension_numbers = #tpu.dot_dimension_numbers<[2], [2], [1], [1], [0, 0, 0, 1, 1, 1], [0], [0]>} : vector<8x16x8xf32>, vector<8x16x8xf32>, vector<8x16x16xf32> -> vector<8x16x16xf32>
    "tpu.trace_stop"() : () -> ()
    %cst_79 = arith.constant 0.353553385 : f32
    %275 = vector.broadcast %cst_79 : f32 to vector<8x16x16xf32>
    %276 = arith.mulf %274, %275 : vector<8x16x16xf32>
    %277 = vector.broadcast %7 : vector<1x1x16xf32> to vector<8x16x16xf32>
    %278 = arith.addf %276, %277 : vector<8x16x16xf32>
    %cst_80 = arith.constant dense<0xFF800000> : vector<8x16xf32>
    %279 = vector.multi_reduction <maximumf>, %278, %cst_80 [2] : vector<8x16x16xf32> to vector<8x16xf32>
    %280 = vector.shape_cast %279 : vector<8x16xf32> to vector<8x16x1xf32>
    %281 = vector.broadcast %280 : vector<8x16x1xf32> to vector<8x16x16xf32>
    %282 = arith.subf %278, %281 : vector<8x16x16xf32>
    %283 = math.exp %282 : vector<8x16x16xf32>
    %cst_81 = arith.constant dense<0.000000e+00> : vector<8x16xf32>
    %284 = vector.multi_reduction <add>, %283, %cst_81 [2] : vector<8x16x16xf32> to vector<8x16xf32>
    %285 = vector.shape_cast %284 : vector<8x16xf32> to vector<8x16x1xf32>
    %286 = tpu.reciprocal %285 {approx = true} : vector<8x16x1xf32> -> vector<8x16x1xf32>
    %287 = vector.broadcast %286 : vector<8x16x1xf32> to vector<8x16x16xf32>
    %288 = arith.mulf %283, %287 : vector<8x16x16xf32>
    "tpu.trace_start"() <{level = 10 : i32, message = "gqk,gkd->gqd"}> : () -> ()
    %cst_82 = arith.constant dense<0.000000e+00> : vector<8x16x8xf32>
    %289 = tpu.matmul %288, %273, %cst_82 {dimension_numbers = #tpu.dot_dimension_numbers<[2], [1], [1], [2], [0, 0, 0, 1, 1, 2], [0], [0]>} : vector<8x16x16xf32>, vector<8x16x8xf32>, vector<8x16x8xf32> -> vector<8x16x8xf32>
    "tpu.trace_stop"() : () -> ()
    %290 = vector.extract_strided_slice %289 {offsets = [0, 0, 0], sizes = [2, 16, 8], strides = [1, 1, 1]} : vector<8x16x8xf32> to vector<2x16x8xf32>
    %291 = vector.shape_cast %290 : vector<2x16x8xf32> to vector<32x8xf32>
    %292 = vector.extract_strided_slice %289 {offsets = [2, 0, 0], sizes = [2, 16, 8], strides = [1, 1, 1]} : vector<8x16x8xf32> to vector<2x16x8xf32>
    %293 = vector.shape_cast %292 : vector<2x16x8xf32> to vector<32x8xf32>
    %294 = vector.extract_strided_slice %289 {offsets = [4, 0, 0], sizes = [2, 16, 8], strides = [1, 1, 1]} : vector<8x16x8xf32> to vector<2x16x8xf32>
    %295 = vector.shape_cast %294 : vector<2x16x8xf32> to vector<32x8xf32>
    %296 = vector.extract_strided_slice %289 {offsets = [6, 0, 0], sizes = [2, 16, 8], strides = [1, 1, 1]} : vector<8x16x8xf32> to vector<2x16x8xf32>
    %297 = vector.shape_cast %296 : vector<2x16x8xf32> to vector<32x8xf32>
    %298 = tpu.concatenate %291, %293, %295, %297 in 1 : vector<32x8xf32>, vector<32x8xf32>, vector<32x8xf32>, vector<32x8xf32> -> vector<32x32xf32>
    %c2_83 = arith.constant 2 : index
    %c0_84 = arith.constant 0 : index
    %c0_85 = arith.constant 0 : index
    %299 = vector.load %arg3[%c2_83, %c0_84, %c0_85] : memref<3x32x32xbf16, #tpu.memory_space<vmem>>, vector<1x32x32xbf16>
    %300 = vector.shape_cast %299 : vector<1x32x32xbf16> to vector<32x32xbf16>
    %301 = arith.truncf %298 : vector<32x32xf32> to vector<32x32xbf16>
    %cst_86 = arith.constant dense<0.000000e+00> : vector<32x32xf32>
    %302 = tpu.matmul %301, %300, %cst_86 {dimension_numbers = #tpu.dot_dimension_numbers<[1], [0], [0], [1], [0, 0, 1, 1], [], []>} : vector<32x32xbf16>, vector<32x32xbf16>, vector<32x32xf32> -> vector<32x32xf32>
    %303 = vector.broadcast %252 : vector<1x32xf32> to vector<32x32xf32>
    %304 = arith.addf %302, %303 : vector<32x32xf32>
    %305 = arith.addf %245, %304 : vector<32x32xf32>
    %cst_87 = arith.constant dense<0.000000e+00> : vector<32xf32>
    %306 = vector.multi_reduction <add>, %305, %cst_87 [1] : vector<32x32xf32> to vector<32xf32>
    %307 = vector.shape_cast %306 : vector<32xf32> to vector<32x1xf32>
    %cst_88 = arith.constant 3.200000e+01 : f32
    %308 = vector.broadcast %cst_88 : f32 to vector<32x1xf32>
    %309 = arith.divf %307, %308 : vector<32x1xf32>
    %310 = vector.broadcast %309 : vector<32x1xf32> to vector<32x32xf32>
    %311 = arith.subf %305, %310 : vector<32x32xf32>
    %312 = arith.mulf %311, %311 : vector<32x32xf32>
    %cst_89 = arith.constant dense<0.000000e+00> : vector<32xf32>
    %313 = vector.multi_reduction <add>, %312, %cst_89 [1] : vector<32x32xf32> to vector<32xf32>
    %314 = vector.shape_cast %313 : vector<32xf32> to vector<32x1xf32>
    %cst_90 = arith.constant 3.200000e+01 : f32
    %315 = vector.broadcast %cst_90 : f32 to vector<32x1xf32>
    %316 = arith.divf %314, %315 : vector<32x1xf32>
    %317 = vector.broadcast %309 : vector<32x1xf32> to vector<32x32xf32>
    %318 = arith.subf %305, %317 : vector<32x32xf32>
    %cst_91 = arith.constant 9.99999974E-6 : f32
    %319 = vector.broadcast %cst_91 : f32 to vector<32x1xf32>
    %320 = arith.addf %316, %319 : vector<32x1xf32>
    %321 = math.rsqrt %320 : vector<32x1xf32>
    %322 = vector.broadcast %321 : vector<32x1xf32> to vector<32x32xf32>
    %323 = arith.mulf %318, %322 : vector<32x32xf32>
    %324 = vector.broadcast %248 : vector<1x32xf32> to vector<32x32xf32>
    %325 = arith.mulf %323, %324 : vector<32x32xf32>
    %326 = vector.broadcast %249 : vector<1x32xf32> to vector<32x32xf32>
    %327 = arith.addf %325, %326 : vector<32x32xf32>
    %c2_92 = arith.constant 2 : index
    %c0_93 = arith.constant 0 : index
    %c0_94 = arith.constant 0 : index
    %328 = vector.load %arg4[%c2_92, %c0_93, %c0_94] : memref<3x32x128xbf16, #tpu.memory_space<vmem>>, vector<1x32x128xbf16>
    %329 = vector.shape_cast %328 : vector<1x32x128xbf16> to vector<32x128xbf16>
    %330 = arith.truncf %327 : vector<32x32xf32> to vector<32x32xbf16>
    %cst_95 = arith.constant dense<0.000000e+00> : vector<32x128xf32>
    %331 = tpu.matmul %330, %329, %cst_95 {dimension_numbers = #tpu.dot_dimension_numbers<[1], [0], [0], [1], [0, 0, 1, 1], [], []>} : vector<32x32xbf16>, vector<32x128xbf16>, vector<32x128xf32> -> vector<32x128xf32>
    %332 = vector.broadcast %253 : vector<1x128xf32> to vector<32x128xf32>
    %333 = arith.addf %331, %332 : vector<32x128xf32>
    %cst_96 = arith.constant 0.000000e+00 : f32
    %334 = vector.broadcast %cst_96 : f32 to vector<32x128xf32>
    %335 = arith.maximumf %333, %334 : vector<32x128xf32>
    %c2_97 = arith.constant 2 : index
    %c0_98 = arith.constant 0 : index
    %c0_99 = arith.constant 0 : index
    %336 = vector.load %arg5[%c2_97, %c0_98, %c0_99] : memref<3x128x32xbf16, #tpu.memory_space<vmem>>, vector<1x128x32xbf16>
    %337 = vector.shape_cast %336 : vector<1x128x32xbf16> to vector<128x32xbf16>
    %338 = arith.truncf %335 : vector<32x128xf32> to vector<32x128xbf16>
    %cst_100 = arith.constant dense<0.000000e+00> : vector<32x32xf32>
    %339 = tpu.matmul %338, %337, %cst_100 {dimension_numbers = #tpu.dot_dimension_numbers<[1], [0], [0], [1], [0, 0, 1, 1], [], []>} : vector<32x128xbf16>, vector<128x32xbf16>, vector<32x32xf32> -> vector<32x32xf32>
    %340 = vector.broadcast %254 : vector<1x32xf32> to vector<32x32xf32>
    %341 = arith.addf %339, %340 : vector<32x32xf32>
    %342 = arith.addf %327, %341 : vector<32x32xf32>
    %cst_101 = arith.constant dense<0.000000e+00> : vector<32xf32>
    %343 = vector.multi_reduction <add>, %342, %cst_101 [1] : vector<32x32xf32> to vector<32xf32>
    %344 = vector.shape_cast %343 : vector<32xf32> to vector<32x1xf32>
    %cst_102 = arith.constant 3.200000e+01 : f32
    %345 = vector.broadcast %cst_102 : f32 to vector<32x1xf32>
    %346 = arith.divf %344, %345 : vector<32x1xf32>
    %347 = vector.broadcast %346 : vector<32x1xf32> to vector<32x32xf32>
    %348 = arith.subf %342, %347 : vector<32x32xf32>
    %349 = arith.mulf %348, %348 : vector<32x32xf32>
    %cst_103 = arith.constant dense<0.000000e+00> : vector<32xf32>
    %350 = vector.multi_reduction <add>, %349, %cst_103 [1] : vector<32x32xf32> to vector<32xf32>
    %351 = vector.shape_cast %350 : vector<32xf32> to vector<32x1xf32>
    %cst_104 = arith.constant 3.200000e+01 : f32
    %352 = vector.broadcast %cst_104 : f32 to vector<32x1xf32>
    %353 = arith.divf %351, %352 : vector<32x1xf32>
    %354 = vector.broadcast %346 : vector<32x1xf32> to vector<32x32xf32>
    %355 = arith.subf %342, %354 : vector<32x32xf32>
    %cst_105 = arith.constant 9.99999974E-6 : f32
    %356 = vector.broadcast %cst_105 : f32 to vector<32x1xf32>
    %357 = arith.addf %353, %356 : vector<32x1xf32>
    %358 = math.rsqrt %357 : vector<32x1xf32>
    %359 = vector.broadcast %358 : vector<32x1xf32> to vector<32x32xf32>
    %360 = arith.mulf %355, %359 : vector<32x32xf32>
    %361 = vector.broadcast %250 : vector<1x32xf32> to vector<32x32xf32>
    %362 = arith.mulf %360, %361 : vector<32x32xf32>
    %363 = vector.broadcast %251 : vector<1x32xf32> to vector<32x32xf32>
    %364 = arith.addf %362, %363 : vector<32x32xf32>
    %365 = vector.extract_strided_slice %364 {offsets = [0, 0], sizes = [1, 32], strides = [1, 1]} : vector<32x32xf32> to vector<1x32xf32>
    %366 = vector.extract_strided_slice %364 {offsets = [16, 0], sizes = [1, 32], strides = [1, 1]} : vector<32x32xf32> to vector<1x32xf32>
    %367 = tpu.concatenate %365, %366 in 0 : vector<1x32xf32>, vector<1x32xf32> -> vector<2x32xf32>
    %c0_106 = arith.constant 0 : index
    %c0_107 = arith.constant 0 : index
    %c0_108 = arith.constant 0 : index
    %368 = vector.load %arg7[%c0_106, %c0_107, %c0_108] : memref<3x9x128xf32, #tpu.memory_space<vmem>>, vector<1x9x128xf32>
    %369 = vector.shape_cast %368 : vector<1x9x128xf32> to vector<9x128xf32>
    %370 = vector.extract_strided_slice %369 {offsets = [8, 0], sizes = [1, 128], strides = [1, 1]} : vector<9x128xf32> to vector<1x128xf32>
    %c0_109 = arith.constant 0 : index
    %c0_110 = arith.constant 0 : index
    %371 = vector.load %arg6[%c0_109, %c0_110] : memref<32x128xbf16, #tpu.memory_space<vmem>>, vector<32x128xbf16>
    %372 = arith.truncf %367 : vector<2x32xf32> to vector<2x32xbf16>
    %cst_111 = arith.constant dense<0.000000e+00> : vector<2x128xf32>
    %373 = tpu.matmul %372, %371, %cst_111 {dimension_numbers = #tpu.dot_dimension_numbers<[1], [0], [0], [1], [0, 0, 1, 1], [], []>} : vector<2x32xbf16>, vector<32x128xbf16>, vector<2x128xf32> -> vector<2x128xf32>
    %374 = vector.broadcast %370 : vector<1x128xf32> to vector<2x128xf32>
    %375 = arith.addf %373, %374 : vector<2x128xf32>
    %c0_112 = arith.constant 0 : index
    %c0_113 = arith.constant 0 : index
    %c0_114 = arith.constant 0 : index
    %376 = vector.load %arg8[%c0_112, %c0_113, %c0_114] : memref<2x1x128xf32, #tpu.memory_space<vmem>>, vector<2x1x128xf32>
    %377 = vector.shape_cast %376 : vector<2x1x128xf32> to vector<2x128xf32>
    %378 = vector.shape_cast %375 : vector<2x128xf32> to vector<2x1x128xf32>
    tpu.vector_store %arg8[%c0_112, %c0_113, %c0_114], %378 {strides = array<i32>} : memref<2x1x128xf32, #tpu.memory_space<vmem>>, vector<2x1x128xf32>,
    return
  }
  func.func @transform_0(%arg0: i32) -> (i32, i32, i32) {
    %c0_i32 = arith.constant 0 : i32
    %c0_i32_0 = arith.constant 0 : i32
    %c0_i32_1 = arith.constant 0 : i32
    return %arg0, %c0_i32, %c0_i32_0 : i32, i32, i32
  }
  func.func @transform_1(%arg0: i32) -> (i32, i32, i32) {
    %c0_i32 = arith.constant 0 : i32
    %c0_i32_0 = arith.constant 0 : i32
    %c0_i32_1 = arith.constant 0 : i32
    %c0_i32_2 = arith.constant 0 : i32
    return %c0_i32, %c0_i32_0, %c0_i32_1 : i32, i32, i32
  }
  func.func @transform_2(%arg0: i32) -> (i32, i32, i32) {
    %c0_i32 = arith.constant 0 : i32
    %c0_i32_0 = arith.constant 0 : i32
    %c0_i32_1 = arith.constant 0 : i32
    %c0_i32_2 = arith.constant 0 : i32
    return %c0_i32, %c0_i32_0, %c0_i32_1 : i32, i32, i32
  }
  func.func @transform_3(%arg0: i32) -> (i32, i32, i32) {
    %c0_i32 = arith.constant 0 : i32
    %c0_i32_0 = arith.constant 0 : i32
    %c0_i32_1 = arith.constant 0 : i32
    %c0_i32_2 = arith.constant 0 : i32
    return %c0_i32, %c0_i32_0, %c0_i32_1 : i32, i32, i32
  }
  func.func @transform_4(%arg0: i32) -> (i32, i32, i32) {
    %c0_i32 = arith.constant 0 : i32
    %c0_i32_0 = arith.constant 0 : i32
    %c0_i32_1 = arith.constant 0 : i32
    %c0_i32_2 = arith.constant 0 : i32
    return %c0_i32, %c0_i32_0, %c0_i32_1 : i32, i32, i32
  }
  func.func @transform_5(%arg0: i32) -> (i32, i32) {
    %c0_i32 = arith.constant 0 : i32
    %c0_i32_0 = arith.constant 0 : i32
    %c0_i32_1 = arith.constant 0 : i32
    return %c0_i32, %c0_i32_0 : i32, i32
  }
  func.func @transform_6(%arg0: i32) -> (i32, i32, i32) {
    %c0_i32 = arith.constant 0 : i32
    %c0_i32_0 = arith.constant 0 : i32
    %c0_i32_1 = arith.constant 0 : i32
    %c0_i32_2 = arith.constant 0 : i32
    return %c0_i32, %c0_i32_0, %c0_i32_1 : i32, i32, i32
  }
  func.func @transform_7(%arg0: i32) -> (i32, i32, i32) {
    %c0_i32 = arith.constant 0 : i32
    %c0_i32_0 = arith.constant 0 : i32
    %c0_i32_1 = arith.constant 0 : i32
    return %arg0, %c0_i32, %c0_i32_0 : i32, i32, i32
  }
}

</mosaic_0001>

<bundles_post_ra>
// kernel: tpu_custom_call.1
= control target key start
LH: loop header
LB: loop body
LE: loop exit
PB: predicated region body
PF: predicated region fallthrough
CT: control target
= control target key end

     0   :  { %vm59_vm0 = vcmask 261120   ;;  %s10103_s0 = inlined_call_operand.vmem [shape: f32[2,16,32], index: 0, kind: input, shape index: {}]   ;;  %s10104_s1 = inlined_call_operand.vmem [shape: bf16[3,32,96], index: 1, kind: input, shape index: {}]   ;;  %s10105_s2 = inlined_call_operand.vmem [shape: bf16[3,32,32], index: 2, kind: input, shape index: {}]   ;;  %s10106_s3 = inlined_call_operand.vmem [shape: bf16[3,32,128], index: 3, kind: input, shape index: {}]   ;;  %s10107_s4 = inlined_call_operand.vmem [shape: bf16[3,128,32], index: 4, kind: input, shape index: {}]   ;;  %s10108_s5 = inlined_call_operand.vmem [shape: bf16[32,128], index: 5, kind: input, shape index: {}]   ;;  %s10109_s6 = inlined_call_operand.vmem [shape: f32[3,9,128], index: 6, kind: input, shape index: {}]   ;;  %s10110_s7 = inlined_call_operand.hbm [shape: f32[2,1,128], index: 7, kind: output, shape index: {}]  }
   0x1   :  { %v8279_v0 = vld [vmem:[%s10104_s1] sm:$0xff]   ;;  %v8280_v1 = vld [vmem:[%s10104_s1 + $0x8] sm:$0xff]   ;;  %v30_v5 = vld [vmem:[%s10103_s0 + $0x10] sm:$0xff] }
   0x2   :  { %7220 = vmatprep.subr.bf16.mxu1 %v8279_v0  ;;  %v28_v2 = vld [vmem:[%s10103_s0] sm:$0xff]  ;;  %v29_v3 = vld [vmem:[%s10103_s0 + $0x8] sm:$0xff]  ;;  %v31_v6 = vld [vmem:[%s10103_s0 + $0x18] sm:$0xff] }
   0x3   :  { %7221 = vmatpush3.bf16.msra.mxu1 %v8279_v0  ;;  %v41_v4 = vpack.c.bf16 %v29_v3, %v28_v2  ;;  %v42_v7 = vpack.c.bf16 %v31_v6, %v30_v5 }
   0x4   :  { %7222 = vmatprep.subr.bf16.mxu1 %v8280_v1 }
   0x5   :  { %7224 = vmatprep.mubr.msk.bf16.mxu1 %vm59_vm0, %v41_v4 }
   0x7   :  { %7223 = vmatpush3.bf16.msra.mxu1 %v8280_v1 }
   0xa   :  { %7225 = vmatmul.mubr.msk.bf16.vlgmr.msra.gmra.mrb[0].mxu1 %vm59_vm0, %v42_v7 }
   0xb   :  { %12 = vsyncpa [#allocation3], 0  ;;  %v32_v8 = vlaneseq  ;;  %v36_v11 = vld [vmem:[%s10109_s6] sm:$0xff]  ;;  %vm147_vm1 = vcmask 64512   ;;  %s8590_s15 = smov 104   ;;  %s8591_s16 = smov 80  }
   0xc   :  { %s8592_s17 = smov 56   ;;  %s8593_s18 = smov 120   ;;  %vm8737_vm2 = vmpackc.low %vm147_vm1, %vm147_vm1  ;;  %vm872_vm4 = vcmask 130048   ;;  %vm1801_vm5 = vcmask 195584   ;;  %vm8599_vm6 = vmmov 0   ;;  %vm6581_vm7 = vcmask 1040384  }
   0xd   :  { %v8664_v9 = vshrl.u32 %v32_v8, 7  ;;  %s8594_s19 = smov 112   ;;  %s8596_s20 = smov 8  }
   0xe   :  { %s8597_s25 = smov 16   ;;  %s8598_s26 = smov 24  }
   0xf   :  { %v8667_v10 = vsub.s32 7, %v8664_v9 }
  0x11   :  { %v46_v12 = vrot.slane %v36_v11, %v8667_v10 }
  0xdd   :  { %v7226_v13 = vpop.f32.mrb[0].mxu1 }
  0xde   :  { %v109_v14 = vadd.f32 %v7226_v13, %v46_v12  ;;  %v100_v15 = vpop.f32.mrb[1].mxu1 }
  0xdf   :  { %v101_v16 = vadd.f32 %v100_v15, %v46_v12  ;;  %v7227_v17 = vpop.f32.mrb[2].mxu1 }
  0xe0   :  { %123 = vrot.lane.b32.xlu1 %v109_v14, %s8590_s15  ;;  %v103_v18 = vpop.f32.mrb[3].mxu1  ;;  %7239 = vmatprep.mubr.msk.f32.mxu0 %vm147_vm1, %v109_v14  ;;  %v112_v19 = vadd.f32 %v7227_v17, %v46_v12 }
  0xe1   :  { %119 = vrot.lane.b32.xlu0 %v101_v16, %s8590_s15  ;;  %7232 = vmatprep.mubr.msk.f32.mxu1 %vm147_vm1, %v101_v16  ;;  %v104_v20 = vadd.f32 %v103_v18, %v46_v12 }
  0xe2   :  { %v7954_v21 = vpack.i.bf16 %v112_v19, %v109_v14 }
  0xe3   :  { %v7949_v22 = vpack.i.bf16 %v104_v20, %v101_v16 }
  0xe4   :  { %125 = vrot.lane.b32.xlu1 %v112_v19, %s8590_s15 }
  0xe5   :  { %121 = vrot.lane.b32.xlu0 %v104_v20, %s8590_s15 }
  0xe8   :  { %129 = vrot.lane.b32.xlu1 %v104_v20, %s8591_s16 }
  0xe9   :  { %127 = vrot.lane.b32.xlu0 %v101_v16, %s8591_s16 }
  0xec   :  { %133 = vrot.lane.b32.xlu1 %v112_v19, %s8591_s16 }
  0xed   :  { %131 = vrot.lane.b32.xlu0 %v109_v14, %s8591_s16 }
  0xf0   :  { %137 = vrot.lane.b32.xlu1 %v104_v20, %s8592_s17 }
  0xf1   :  { %135 = vrot.lane.b32.xlu0 %v101_v16, %s8592_s17 }
  0xf4   :  { %141 = vrot.lane.b32.xlu1 %v112_v19, %s8592_s17 }
  0xf5   :  { %139 = vrot.lane.b32.xlu0 %v109_v14, %s8592_s17 }
  0xf8   :  { %7955 = vrot.lane.b32.xlu1 %v7954_v21, %s8593_s18 }
  0xf9   :  { %7950 = vrot.lane.b32.xlu0 %v7949_v22, %s8593_s18 }
 0x152   :  { %v124_v23 = vpop.permute.xlu1 %123 }
 0x153   :  { %v120_v24 = vpop.permute.xlu0 %119 }
 0x156   :  { %v8689_v25 = vpop.permute.xlu1 %125 }
 0x157   :  { %v8691_v26 = vpop.permute.xlu0 %121  ;;  %v7964_v27 = vpack.i.bf16 %v8689_v25, %v124_v23 }
 0x158   :  { %v7959_v28 = vpack.i.bf16 %v8691_v26, %v120_v24 }
 0x159   :  { %7965 = vrot.lane.b32.xlu1 %v7964_v27, %s8593_s18 }
 0x15a   :  { %v8696_v29 = vpop.permute.xlu1 %129  ;;  %7960 = vrot.lane.b32.xlu0 %v7959_v28, %s8593_s18 }
 0x15b   :  { %v8699_v30 = vpop.permute.xlu0 %127 }
 0x15c   :  { %v8703_v31 = vpack.i.bf16 %v8696_v29, %v8699_v30 }
 0x15e   :  { %v8705_v32 = vpop.permute.xlu1 %133  ;;  %7970 = vrot.lane.b32.xlu0 %v8703_v31, %s8593_s18 }
 0x15f   :  { %v132_v33 = vpop.permute.xlu0 %131 }
 0x160   :  { %v8710_v34 = vpack.i.bf16 %v8705_v32, %v132_v33 }
 0x162   :  { %v8712_v35 = vpop.permute.xlu1 %137  ;;  %7975 = vrot.lane.b32.xlu1 %v8710_v34, %s8593_s18 }
 0x163   :  { %v8716_v36 = vpop.permute.xlu0 %135 }
 0x164   :  { %v8720_v37 = vpack.i.bf16 %v8712_v35, %v8716_v36 }
 0x166   :  { %v8722_v38 = vpop.permute.xlu1 %141  ;;  %7980 = vrot.lane.b32.xlu0 %v8720_v37, %s8593_s18 }
 0x167   :  { %v8726_v39 = vpop.permute.xlu0 %139 }
 0x168   :  { %v8730_v40 = vpack.i.bf16 %v8722_v38, %v8726_v39 }
 0x16a   :  { %v7956_v41 = vpop.permute.xlu1 %7955  ;;  %7995 = vrot.lane.b32.xlu0 %v7954_v21, %s8594_s19  ;;  %7985 = vrot.lane.b32.xlu1 %v8730_v40, %s8593_s18  ;;  %v33_v21 = vand.u32 127, %v32_v8 }
 0x16b   :  { %v7951_v42 = vpop.permute.xlu0 %7950  ;;  %v7958_v43 = vunpack.i.h.bf16 %v7956_v41  ;;  %v7957_v44 = vunpack.i.l.bf16 %v7956_v41 }
 0x16c   :  { %v7953_v45 = vunpack.i.h.bf16 %v7951_v42  ;;  %v7952_v46 = vunpack.i.l.bf16 %v7951_v42  ;;  %vm34_vm3 = vcmp.ge.s32.totalorder %v33_v21, 9 }
 0x16d   :  { %v7702_v48 = vpack.c.bf16 %v7958_v43, %v7957_v44 }
 0x16e   :  { %v7696_v49 = vpack.c.bf16 %v7953_v45, %v7952_v46  ;;  %7990 = vrot.lane.b32.xlu1 %v7949_v22, %s8594_s19  ;;  %v8595_v22 = vmov 0.0  }
 0x16f   :  { %7704 = vmatprep.subr.msk.bf16.mxu0 %vm8737_vm2, %v7702_v48 }
 0x170   :  { %7698 = vmatprep.subr.msk.bf16.mxu1 %vm8737_vm2, %v7696_v49  ;;  %7707 = vmatpush3.bf16.xpose.msk.msra.mxu0 %vm8737_vm2, %v7702_v48 }
 0x171   :  { %7701 = vmatpush3.bf16.xpose.msk.msra.mxu1 %vm8737_vm2, %v7696_v49 }
 0x172   :  { %8000 = vrot.lane.b32.xlu1 %v7964_v27, %s8594_s19 }
 0x176   :  { %8005 = vrot.lane.b32.xlu1 %v7959_v28, %s8594_s19 }
 0x177   :  { %7240 = vmatmul.mubr.msk.f32.vlgmr.msra.gmra.mrb[0].mxu0 %vm147_vm1, %v112_v19 }
 0x178   :  { %7233 = vmatmul.mubr.msk.f32.vlgmr.msra.gmra.mrb[4].mxu1 %vm147_vm1, %v104_v20  ;;  %7253 = vmatprep.mubr.msk.f32.mxu0 %vm147_vm1, %v124_v23  ;;  %v8804_v23 = vsel %vm34_vm3, -1e+30, %v8595_v22 }
 0x179   :  { %7246 = vmatprep.mubr.msk.f32.mxu1 %vm147_vm1, %v120_v24 }
 0x1cb   :  { %v7966_v50 = vpop.permute.xlu1 %7965 }
 0x1cc   :  { %v7968_v51 = vunpack.i.h.bf16 %v7966_v50  ;;  %v7967_v52 = vunpack.i.l.bf16 %v7966_v50  ;;  %v7961_v53 = vpop.permute.xlu0 %7960 }
 0x1cd   :  { %v7963_v54 = vunpack.i.h.bf16 %v7961_v53  ;;  %v7962_v55 = vunpack.i.l.bf16 %v7961_v53 }
 0x1ce   :  { %v7714_v56 = vpack.c.bf16 %v7968_v51, %v7967_v52 }
 0x1cf   :  { %v7708_v57 = vpack.c.bf16 %v7963_v54, %v7962_v55 }
 0x1d0   :  { %7716 = vmatprep.subr.msk.bf16.mxu0 %vm8737_vm2, %v7714_v56  ;;  %v7971_v58 = vpop.permute.xlu0 %7970 }
 0x1d1   :  { %v7973_v59 = vunpack.i.h.bf16 %v7971_v58  ;;  %v7972_v60 = vunpack.i.l.bf16 %v7971_v58  ;;  %7710 = vmatprep.subr.msk.bf16.mxu1 %vm8737_vm2, %v7708_v57  ;;  %7719 = vmatpush3.bf16.xpose.msk.msra.mxu0 %vm8737_vm2, %v7714_v56 }
 0x1d2   :  { %7713 = vmatpush3.bf16.xpose.msk.msra.mxu1 %vm8737_vm2, %v7708_v57 }
 0x1d3   :  { %v7720_v61 = vpack.c.bf16 %v7973_v59, %v7972_v60 }
 0x1d4   :  { %v7976_v62 = vpop.permute.xlu1 %7975 }
 0x1d5   :  { %v7978_v63 = vunpack.i.h.bf16 %v7976_v62  ;;  %v7977_v0 = vunpack.i.l.bf16 %v7976_v62  ;;  %7722 = vmatprep.subr.msk.bf16.mxu1 %vm8737_vm2, %v7720_v61 }
 0x1d7   :  { %v7726_v1 = vpack.c.bf16 %v7978_v63, %v7977_v0 }
 0x1d8   :  { %7254 = vmatmul.mubr.msk.f32.vlgmr.msra.gmra.mrb[2].mxu0 %vm147_vm1, %v8689_v25  ;;  %v7981_v2 = vpop.permute.xlu0 %7980 }
 0x1d9   :  { %v7983_v3 = vunpack.i.h.bf16 %v7981_v2  ;;  %v7982_v4 = vunpack.i.l.bf16 %v7981_v2  ;;  %7247 = vmatmul.mubr.msk.f32.vlgmr.msra.gmra.mrb[6].mxu1 %vm147_vm1, %v8691_v26  ;;  %7728 = vmatprep.subr.msk.bf16.mxu0 %vm8737_vm2, %v7726_v1 }
 0x1da   :  { %7267 = vmatprep.mubr.msk.f32.mxu0 %vm147_vm1, %v132_v33  ;;  %7725 = vmatpush3.bf16.xpose.msk.msra.mxu1 %vm8737_vm2, %v7720_v61 }
 0x1db   :  { %v7732_v5 = vpack.c.bf16 %v7983_v3, %v7982_v4  ;;  %7260 = vmatprep.mubr.msk.f32.mxu1 %vm147_vm1, %v8699_v30  ;;  %7731 = vmatpush3.bf16.xpose.msk.msra.mxu0 %vm8737_vm2, %v7726_v1 }
 0x1dc   :  { %v7986_v6 = vpop.permute.xlu1 %7985  ;;  %v7996_v16 = vpop.permute.xlu0 %7995 }
 0x1dd   :  { %v7988_v7 = vunpack.i.h.bf16 %v7986_v6  ;;  %v7987_v11 = vunpack.i.l.bf16 %v7986_v6  ;;  %7734 = vmatprep.subr.msk.bf16.mxu1 %vm8737_vm2, %v7732_v5  ;;  %v7998_v18 = vunpack.i.h.bf16 %v7996_v16  ;;  %v7997_v19 = vunpack.i.l.bf16 %v7996_v16 }
 0x1df   :  { %v7738_v12 = vpack.c.bf16 %v7988_v7, %v7987_v11  ;;  %v8797_v20 = vpack.c.bf16 %v7998_v18, %v7997_v19 }
 0x1e0   :  { %v7991_v13 = vpop.permute.xlu1 %7990 }
 0x1e1   :  { %v7993_v14 = vunpack.i.h.bf16 %v7991_v13  ;;  %v7992_v15 = vunpack.i.l.bf16 %v7991_v13  ;;  %7261 = vmatmul.mubr.msk.f32.vlgmr.msra.gmra.mrb[8].mxu1 %vm147_vm1, %v8696_v29  ;;  %7740 = vmatprep.subr.msk.bf16.mxu0 %vm8737_vm2, %v7738_v12 }
 0x1e2   :  { %7268 = vmatmul.mubr.msk.f32.vlgmr.msra.gmra.mrb[4].mxu0 %vm147_vm1, %v8705_v32  ;;  %7737 = vmatpush3.bf16.xpose.msk.msra.mxu1 %vm8737_vm2, %v7732_v5 }
 0x1e3   :  { %7274 = vmatprep.mubr.msk.f32.mxu1 %vm147_vm1, %v8716_v36  ;;  %7743 = vmatpush3.bf16.xpose.msk.msra.mxu0 %vm8737_vm2, %v7738_v12  ;;  %v7744_v17 = vpack.c.bf16 %v7993_v14, %v7992_v15 }
 0x1e4   :  { %7281 = vmatprep.mubr.msk.f32.mxu0 %vm147_vm1, %v8726_v39 }
 0x1e5   :  { %7745 = vmatprep.subr.bf16.mxu1 %v7744_v17 }
 0x1e9   :  { %7275 = vmatmul.mubr.msk.f32.vlgmr.msra.gmra.mrb[10].mxu1 %vm147_vm1, %v8712_v35 }
 0x1ea   :  { %7282 = vmatmul.mubr.msk.f32.vlgmr.msra.gmra.mrb[6].mxu0 %vm147_vm1, %v8722_v38  ;;  %7747 = vmatpush3.bf16.msra.mxu1 %v7744_v17 }
 0x1eb   :  { %7749 = vmatprep.subr.bf16.mxu1 %v8797_v20 }
 0x24a   :  { %v7241_v24 = vpop.f32.mrb[0].mxu0 }
 0x24b   :  { %v843_v25 = vmul.f32 0.35355338, %v7241_v24  ;;  %v7234_v26 = vpop.f32.mrb[4].mxu1  ;;  %v309_v27 = vpop.f32.mrb[1].mxu0 }
 0x24c   :  { %v841_v28 = vmul.f32 0.35355338, %v7234_v26  ;;  %v842_v29 = vmul.f32 0.35355338, %v309_v27  ;;  %v222_v30 = vpop.f32.mrb[5].mxu1 }
 0x24d   :  { %v8807_v32 = vadd.f32 %v843_v25, %v8804_v23  ;;  %v840_v8 = vmul.f32 0.35355338, %v222_v30 }
 0x24e   :  { %v8810_v33 = vadd.f32 %v841_v28, %v8804_v23  ;;  %v8815_v36 = vadd.f32 %v842_v29, %v8804_v23 }
 0x24f   :  { %v882_v35 = vsel %vm872_vm4, %v8807_v32, -inf  ;;  %v8822_v41 = vadd.f32 %v840_v8, %v8804_v23 }
 0x250   :  { %883 = vmax.xlane.f32.xlu0 %v882_v35  ;;  %v876_v38 = vsel %vm872_vm4, %v8810_v33, -inf  ;;  %v879_v39 = vsel %vm872_vm4, %v8815_v36, -inf }
 0x251   :  { %877 = vmax.xlane.f32.xlu1 %v876_v38  ;;  %v873_v42 = vsel %vm872_vm4, %v8822_v41, -inf }
 0x254   :  { %880 = vmax.xlane.f32.xlu0 %v879_v39  ;;  %v8888_v39 = vpop.permute.xlu1 %8000 }
 0x258   :  { %874 = vmax.xlane.f32.xlu0 %v873_v42 }
 0x2ab   :  { %v7255_v43 = vpop.f32.mrb[2].mxu0 }
 0x2ac   :  { %v847_v44 = vmul.f32 0.35355338, %v7255_v43  ;;  %v7248_v45 = vpop.f32.mrb[6].mxu1  ;;  %v483_v46 = vpop.f32.mrb[3].mxu0 }
 0x2ad   :  { %v845_v48 = vmul.f32 0.35355338, %v7248_v45  ;;  %v846_v49 = vmul.f32 0.35355338, %v483_v46  ;;  %v396_v50 = vpop.f32.mrb[7].mxu1 }
 0x2ae   :  { %v844_v51 = vmul.f32 0.35355338, %v396_v50  ;;  %v8827_v52 = vadd.f32 %v847_v44, %v8804_v23  ;;  %v8892_v44 = vpop.permute.xlu1 %8005 }
 0x2af   :  { %v8830_v53 = vadd.f32 %v846_v49, %v8804_v23  ;;  %v8835_v55 = vadd.f32 %v845_v48, %v8804_v23 }
 0x2b0   :  { %v894_v54 = vsel %vm872_vm4, %v8827_v52, -inf  ;;  %v8840_v57 = vadd.f32 %v844_v51, %v8804_v23 }
 0x2b1   :  { %895 = vmax.xlane.f32.xlu0 %v894_v54  ;;  %v891_v56 = vsel %vm872_vm4, %v8830_v53, -inf  ;;  %v888_v59 = vsel %vm872_vm4, %v8835_v55, -inf }
 0x2b2   :  { %892 = vmax.xlane.f32.xlu1 %v891_v56  ;;  %v885_v62 = vsel %vm872_vm4, %v8840_v57, -inf }
 0x2b4   :  { %v7262_v58 = vpop.f32.mrb[8].mxu1 }
 0x2b5   :  { %v7269_v60 = vpop.f32.mrb[4].mxu0  ;;  %889 = vmax.xlane.f32.xlu0 %v888_v59  ;;  %v570_v61 = vpop.f32.mrb[9].mxu1  ;;  %v849_v63 = vmul.f32 0.35355338, %v7262_v58 }
 0x2b6   :  { %v851_v0 = vmul.f32 0.35355338, %v7269_v60  ;;  %v657_v1 = vpop.f32.mrb[5].mxu0  ;;  %886 = vmax.xlane.f32.xlu1 %v885_v62  ;;  %v848_v3 = vmul.f32 0.35355338, %v570_v61 }
 0x2b7   :  { %v850_v2 = vmul.f32 0.35355338, %v657_v1  ;;  %v8855_v7 = vadd.f32 %v849_v63, %v8804_v23 }
 0x2b8   :  { %v8847_v4 = vadd.f32 %v851_v0, %v8804_v23  ;;  %v8860_v12 = vadd.f32 %v848_v3, %v8804_v23 }
 0x2b9   :  { %v8850_v5 = vadd.f32 %v850_v2, %v8804_v23  ;;  %v900_v19 = vsel %vm872_vm4, %v8855_v7, -inf }
 0x2ba   :  { %v906_v6 = vsel %vm872_vm4, %v8847_v4, -inf  ;;  %v897_v25 = vsel %vm872_vm4, %v8860_v12, -inf }
 0x2bb   :  { %907 = vmax.xlane.f32.xlu0 %v906_v6  ;;  %v903_v11 = vsel %vm872_vm4, %v8850_v5, -inf }
 0x2bc   :  { %904 = vmax.xlane.f32.xlu1 %v903_v11  ;;  %v7276_v13 = vpop.f32.mrb[10].mxu1 }
 0x2bd   :  { %v7283_v14 = vpop.f32.mrb[6].mxu0  ;;  %v744_v15 = vpop.f32.mrb[11].mxu1  ;;  %v853_v16 = vmul.f32 0.35355338, %v7276_v13 }
 0x2be   :  { %v855_v17 = vmul.f32 0.35355338, %v7283_v14  ;;  %v831_v18 = vpop.f32.mrb[7].mxu0  ;;  %v852_v21 = vmul.f32 0.35355338, %v744_v15 }
 0x2bf   :  { %v854_v24 = vmul.f32 0.35355338, %v831_v18  ;;  %901 = vmax.xlane.f32.xlu0 %v900_v19  ;;  %v8875_v29 = vadd.f32 %v853_v16, %v8804_v23 }
 0x2c0   :  { %898 = vmax.xlane.f32.xlu1 %v897_v25  ;;  %v8867_v26 = vadd.f32 %v855_v17, %v8804_v23  ;;  %v8880_v8 = vadd.f32 %v852_v21, %v8804_v23 }
 0x2c1   :  { %v8870_v27 = vadd.f32 %v854_v24, %v8804_v23  ;;  %v912_v35 = vsel %vm872_vm4, %v8875_v29, -inf }
 0x2c2   :  { %v918_v28 = vsel %vm872_vm4, %v8867_v26, -inf  ;;  %v909_v38 = vsel %vm872_vm4, %v8880_v8, -inf }
 0x2c3   :  { %919 = vmax.xlane.f32.xlu0 %v918_v28  ;;  %v915_v30 = vsel %vm872_vm4, %v8870_v27, -inf }
 0x2c4   :  { %916 = vmax.xlane.f32.xlu1 %v915_v30 }
 0x2c7   :  { %913 = vmax.xlane.f32.xlu0 %v912_v35 }
 0x2c8   :  { %910 = vmax.xlane.f32.xlu1 %v909_v38 }
 0x2d9   :  { %8015 = vrot.lane.b32.xlu1 %v8710_v34, %s8594_s19 }
 0x2dd   :  { %8010 = vrot.lane.b32.xlu0 %v8703_v31, %s8594_s19  ;;  %v884_v42 = vpop.xlane.xlu0 %883 }
 0x2de   :  { %v924_v45 = vsub.f32 %v8807_v32, %v884_v42  ;;  %v878_v46 = vpop.xlane.xlu1 %877 }
 0x2df   :  { %v922_v51 = vsub.f32 %v8810_v33, %v878_v46 }
 0x2e0   :  { %v943_v50 = vmul.f32 1.442695, %v924_v45 }
 0x2e1   :  { %v881_v43 = vpop.xlane.xlu0 %880  ;;  %v939_v56 = vmul.f32 1.442695, %v922_v51 }
 0x2e2   :  { %v923_v48 = vsub.f32 %v8815_v36, %v881_v43  ;;  %8323 = vpow2.f32 %v943_v50 }
 0x2e4   :  { %v941_v54 = vmul.f32 1.442695, %v923_v48 }
 0x2e5   :  { %v875_v49 = vpop.xlane.xlu0 %874 }
 0x2e6   :  { %v921_v34 = vsub.f32 %v8822_v41, %v875_v49  ;;  %8325 = vpow2.f32 %v941_v54 }
 0x2e7   :  { %8327 = vpow2.f32 %v939_v56 }
 0x2e8   :  { %v937_v31 = vmul.f32 1.442695, %v921_v34 }
 0x2ea   :  { %8329 = vpow2.f32 %v937_v31 }
 0x2ec   :  { %v8898_v58 = vpop.eup %8323 }
 0x2ed   :  { %v978_v32 = vsel %vm872_vm4, %v8898_v58, 0.0 }
 0x2f0   :  { %v8900_v59 = vpop.eup %8325 }
 0x2f1   :  { %v8904_v36 = vpop.eup %8327  ;;  %v975_v33 = vsel %vm872_vm4, %v8900_v59, 0.0 }
 0x2f2   :  { %v972_v60 = vsel %vm872_vm4, %v8904_v36, 0.0 }
 0x2f4   :  { %v8908_v41 = vpop.eup %8329 }
 0x2f5   :  { %v969_v61 = vsel %vm872_vm4, %v8908_v41, 0.0 }
 0x2fc   :  { %979 = vadd.xlane.f32.xlu0 %v978_v32 }
 0x2fd   :  { %976 = vadd.xlane.f32.xlu1 %v975_v33 }
 0x300   :  { %973 = vadd.xlane.f32.xlu0 %v972_v60 }
 0x301   :  { %970 = vadd.xlane.f32.xlu1 %v969_v61 }
 0x33e   :  { %v896_v62 = vpop.xlane.xlu0 %895 }
 0x33f   :  { %v928_v63 = vsub.f32 %v8827_v52, %v896_v62  ;;  %v893_v0 = vpop.xlane.xlu1 %892 }
 0x340   :  { %v927_v1 = vsub.f32 %v8830_v53, %v893_v0 }
 0x341   :  { %v951_v2 = vmul.f32 1.442695, %v928_v63 }
 0x342   :  { %v949_v3 = vmul.f32 1.442695, %v927_v1  ;;  %v890_v6 = vpop.xlane.xlu0 %889 }
 0x343   :  { %8331 = vpow2.f32 %v951_v2  ;;  %v926_v11 = vsub.f32 %v8835_v55, %v890_v6  ;;  %v887_v13 = vpop.xlane.xlu1 %886 }
 0x344   :  { %8333 = vpow2.f32 %v949_v3  ;;  %v925_v14 = vsub.f32 %v8840_v57, %v887_v13 }
 0x345   :  { %v947_v15 = vmul.f32 1.442695, %v926_v11 }
 0x346   :  { %v945_v16 = vmul.f32 1.442695, %v925_v14 }
 0x347   :  { %8335 = vpow2.f32 %v947_v15 }
 0x348   :  { %8337 = vpow2.f32 %v945_v16  ;;  %v908_v17 = vpop.xlane.xlu0 %907 }
 0x349   :  { %v932_v52 = vsub.f32 %v8847_v4, %v908_v17  ;;  %v905_v18 = vpop.xlane.xlu1 %904 }
 0x34a   :  { %v931_v53 = vsub.f32 %v8850_v5, %v905_v18 }
 0x34b   :  { %v959_v19 = vmul.f32 1.442695, %v932_v52 }
 0x34c   :  { %v957_v21 = vmul.f32 1.442695, %v931_v53  ;;  %v902_v24 = vpop.xlane.xlu0 %901 }
 0x34d   :  { %v8920_v25 = vpop.eup %8331  ;;  %8339 = vpow2.f32 %v959_v19  ;;  %v930_v55 = vsub.f32 %v8855_v7, %v902_v24  ;;  %v899_v28 = vpop.xlane.xlu1 %898 }
 0x34e   :  { %v8923_v57 = vpop.eup %8333  ;;  %8341 = vpow2.f32 %v957_v21  ;;  %v929_v30 = vsub.f32 %v8860_v12, %v899_v28  ;;  %v990_v4 = vsel %vm872_vm4, %v8920_v25, 0.0 }
 0x34f   :  { %v955_v35 = vmul.f32 1.442695, %v930_v55  ;;  %991 = vadd.xlane.f32.xlu0 %v990_v4  ;;  %v987_v5 = vsel %vm872_vm4, %v8923_v57, 0.0  ;;  %v8008_v4 = vunpack.i.h.bf16 %v8892_v44 }
 0x350   :  { %v953_v38 = vmul.f32 1.442695, %v929_v30  ;;  %v920_v42 = vpop.xlane.xlu0 %919  ;;  %988 = vadd.xlane.f32.xlu1 %v987_v5 }
 0x351   :  { %v8930_v43 = vpop.eup %8335  ;;  %8343 = vpow2.f32 %v955_v35  ;;  %v936_v7 = vsub.f32 %v8867_v26, %v920_v42  ;;  %v917_v45 = vpop.xlane.xlu1 %916  ;;  %v8007_v35 = vunpack.i.l.bf16 %v8892_v44  ;;  %v8003_v42 = vunpack.i.h.bf16 %v8888_v39 }
 0x352   :  { %v8933_v46 = vpop.eup %8337  ;;  %8345 = vpow2.f32 %v953_v38  ;;  %v935_v12 = vsub.f32 %v8870_v27, %v917_v45  ;;  %v984_v48 = vsel %vm872_vm4, %v8930_v43, 0.0 }
 0x353   :  { %v967_v49 = vmul.f32 1.442695, %v936_v7  ;;  %985 = vadd.xlane.f32.xlu0 %v984_v48  ;;  %v981_v50 = vsel %vm872_vm4, %v8933_v46, 0.0  ;;  %v8002_v7 = vunpack.i.l.bf16 %v8888_v39  ;;  %v7752_v45 = vpack.c.bf16 %v8008_v4, %v8007_v35 }
 0x354   :  { %v965_v51 = vmul.f32 1.442695, %v935_v12  ;;  %v914_v54 = vpop.xlane.xlu0 %913  ;;  %982 = vadd.xlane.f32.xlu1 %v981_v50 }
 0x355   :  { %8347 = vpow2.f32 %v967_v49  ;;  %v934_v26 = vsub.f32 %v8875_v29, %v914_v54  ;;  %v911_v34 = vpop.xlane.xlu1 %910 }
 0x356   :  { %8349 = vpow2.f32 %v965_v51  ;;  %v933_v56 = vsub.f32 %v8880_v8, %v911_v34 }
 0x357   :  { %v8942_v31 = vpop.eup %8339  ;;  %v963_v27 = vmul.f32 1.442695, %v934_v26 }
 0x358   :  { %v8944_v32 = vpop.eup %8341  ;;  %v961_v33 = vmul.f32 1.442695, %v933_v56  ;;  %v8011_v60 = vpop.permute.xlu0 %8010  ;;  %v1002_v61 = vsel %vm872_vm4, %v8942_v31, 0.0 }
 0x359   :  { %8351 = vpow2.f32 %v963_v27  ;;  %v8013_v62 = vunpack.i.h.bf16 %v8011_v60  ;;  %v8012_v63 = vunpack.i.l.bf16 %v8011_v60  ;;  %1003 = vadd.xlane.f32.xlu0 %v1002_v61  ;;  %v999_v29 = vsel %vm872_vm4, %v8944_v32, 0.0  ;;  %v8016_v18 = vpop.permute.xlu1 %8015 }
 0x35a   :  { %8353 = vpow2.f32 %v961_v33  ;;  %1000 = vadd.xlane.f32.xlu1 %v999_v29  ;;  %v8018_v26 = vunpack.i.h.bf16 %v8016_v18  ;;  %v8017_v34 = vunpack.i.l.bf16 %v8016_v18 }
 0x35b   :  { %v8950_v8 = vpop.eup %8343  ;;  %v7760_v0 = vpack.c.bf16 %v8013_v62, %v8012_v63 }
 0x35c   :  { %v8952_v1 = vpop.eup %8345  ;;  %v996_v2 = vsel %vm872_vm4, %v8950_v8, 0.0  ;;  %v7764_v63 = vpack.c.bf16 %v8018_v26, %v8017_v34 }
 0x35d   :  { %997 = vadd.xlane.f32.xlu0 %v996_v2  ;;  %7761 = vmatprep.subr.bf16.mxu0 %v7760_v0  ;;  %v993_v3 = vsel %vm872_vm4, %v8952_v1, 0.0 }
 0x35e   :  { %7763 = vmatpush3.bf16.msra.mxu0 %v7760_v0  ;;  %994 = vadd.xlane.f32.xlu1 %v993_v3 }
 0x35f   :  { %v8958_v6 = vpop.eup %8347 }
 0x360   :  { %v8960_v11 = vpop.eup %8349  ;;  %v1014_v13 = vsel %vm872_vm4, %v8958_v6, 0.0 }
 0x361   :  { %1015 = vadd.xlane.f32.xlu0 %v1014_v13  ;;  %v1011_v14 = vsel %vm872_vm4, %v8960_v11, 0.0 }
 0x362   :  { %1012 = vadd.xlane.f32.xlu1 %v1011_v14 }
 0x363   :  { %v8966_v15 = vpop.eup %8351 }
 0x364   :  { %v8968_v16 = vpop.eup %8353  ;;  %v1008_v17 = vsel %vm872_vm4, %v8966_v15, 0.0 }
 0x365   :  { %1009 = vadd.xlane.f32.xlu0 %v1008_v17  ;;  %v1005_v52 = vsel %vm872_vm4, %v8968_v16, 0.0 }
 0x366   :  { %1006 = vadd.xlane.f32.xlu1 %v1005_v52 }
 0x377   :  { %8025 = vrot.lane.b32.xlu1 %v8730_v40, %s8594_s19 }
 0x37b   :  { %8020 = vrot.lane.b32.xlu0 %v8720_v37, %s8594_s19 }
 0x389   :  { %v980_v53 = vpop.xlane.xlu0 %979 }
 0x38a   :  { %v977_v19 = vpop.xlane.xlu1 %976 }
 0x38b   :  { %8355 = vrcp.f32 %v977_v19 }
 0x38d   :  { %v974_v21 = vpop.xlane.xlu0 %973 }
 0x38e   :  { %8357 = vrcp.f32 %v974_v21  ;;  %v971_v24 = vpop.xlane.xlu1 %970 }
 0x38f   :  { %8359 = vrcp.f32 %v971_v24 }
 0x390   :  { %8361 = vrcp.f32 %v980_v53 }
 0x395   :  { %v8356_v55 = vpop.eup %8355 }
 0x396   :  { %v1035_v38 = vmul.f32 %v8356_v55, %v8900_v59 }
 0x398   :  { %v8358_v28 = vpop.eup %8357 }
 0x399   :  { %v8360_v30 = vpop.eup %8359  ;;  %v1034_v37 = vmul.f32 %v8358_v28, %v8904_v36  ;;  %v7756_v36 = vpack.c.bf16 %v8003_v42, %v8002_v7 }
 0x39a   :  { %v1033_v40 = vmul.f32 %v8360_v30, %v8908_v41  ;;  %v8362_v5 = vpop.eup %8361 }
 0x39b   :  { %v1036_v44 = vmul.f32 %v8362_v5, %v8898_v58 }
 0x39c   :  { %7288 = vmatprep.mubr.msk.f32.mxu1 %vm872_vm4, %v1033_v40 }
 0x39d   :  { %7289 = vmatmul.mubr.msk.f32.vlgmr.msra.gmra.mrb[12].mxu1 %vm872_vm4, %v1034_v37 }
 0x39e   :  { %7751 = vmatpush3.bf16.msra.mxu1 %v8797_v20  ;;  %7295 = vmatprep.mubr.msk.f32.mxu1 %vm872_vm4, %v1035_v38 }
 0x39f   :  { %7753 = vmatprep.subr.bf16.mxu1 %v7752_v45 }
 0x3a1   :  { %7296 = vmatmul.mubr.msk.f32.vlgmr.msra.gmra.mrb[14].mxu1 %vm872_vm4, %v1036_v44 }
 0x3a2   :  { %7755 = vmatpush3.bf16.msra.mxu1 %v7752_v45 }
 0x3a3   :  { %7757 = vmatprep.subr.bf16.mxu1 %v7756_v36 }
 0x3dc   :  { %v992_v59 = vpop.xlane.xlu0 %991 }
 0x3dd   :  { %v989_v41 = vpop.xlane.xlu1 %988 }
 0x3de   :  { %8363 = vrcp.f32 %v989_v41 }
 0x3e0   :  { %v986_v12 = vpop.xlane.xlu0 %985 }
 0x3e1   :  { %8365 = vrcp.f32 %v986_v12  ;;  %v983_v39 = vpop.xlane.xlu1 %982 }
 0x3e2   :  { %8367 = vrcp.f32 %v983_v39  ;;  %v8282_v39 = vld [vmem:[%s10105_s2 + $0x8] sm:$0xff]  }
 0x3e3   :  { %8369 = vrcp.f32 %v992_v59 }
 0x3e6   :  { %v1004_v48 = vpop.xlane.xlu0 %1003 }
 0x3e7   :  { %v1001_v20 = vpop.xlane.xlu1 %1000 }
 0x3e8   :  { %8371 = vrcp.f32 %v1001_v20  ;;  %v8364_v49 = vpop.eup %8363 }
 0x3e9   :  { %8373 = vrcp.f32 %v1004_v48  ;;  %v1039_v62 = vmul.f32 %v8364_v49, %v8923_v57 }
 0x3ea   :  { %v998_v50 = vpop.xlane.xlu0 %997 }
 0x3eb   :  { %v8366_v58 = vpop.eup %8365  ;;  %8375 = vrcp.f32 %v998_v50  ;;  %v995_v51 = vpop.xlane.xlu1 %994 }
 0x3ec   :  { %v8368_v54 = vpop.eup %8367  ;;  %8377 = vrcp.f32 %v995_v51  ;;  %v1038_v33 = vmul.f32 %v8366_v58, %v8930_v43 }
 0x3ed   :  { %v1037_v56 = vmul.f32 %v8368_v54, %v8933_v46  ;;  %v8370_v60 = vpop.eup %8369 }
 0x3ee   :  { %v1016_v27 = vpop.xlane.xlu0 %1015  ;;  %v1040_v46 = vmul.f32 %v8370_v60, %v8920_v25 }
 0x3ef   :  { %v1013_v61 = vpop.xlane.xlu1 %1012  ;;  %7302 = vmatprep.mubr.msk.f32.mxu1 %vm872_vm4, %v1037_v56 }
 0x3f0   :  { %8379 = vrcp.f32 %v1013_v61  ;;  %7303 = vmatmul.mubr.msk.f32.vlgmr.msra.gmra.mrb[16].mxu1 %vm872_vm4, %v1038_v33 }
 0x3f1   :  { %8381 = vrcp.f32 %v1016_v27  ;;  %7759 = vmatpush3.bf16.msra.mxu1 %v7756_v36  ;;  %7309 = vmatprep.mubr.msk.f32.mxu1 %vm872_vm4, %v1039_v62 }
 0x3f2   :  { %v8372_v29 = vpop.eup %8371  ;;  %v1010_v0 = vpop.xlane.xlu0 %1009  ;;  %7765 = vmatprep.subr.bf16.mxu1 %v7764_v63 }
 0x3f3   :  { %v8374_v43 = vpop.eup %8373  ;;  %8383 = vrcp.f32 %v1010_v0  ;;  %v1007_v2 = vpop.xlane.xlu1 %1006  ;;  %v1043_v3 = vmul.f32 %v8372_v29, %v8944_v32 }
 0x3f4   :  { %8385 = vrcp.f32 %v1007_v2  ;;  %7310 = vmatmul.mubr.msk.f32.vlgmr.msra.gmra.mrb[18].mxu1 %vm872_vm4, %v1040_v46  ;;  %v1044_v17 = vmul.f32 %v8374_v43, %v8942_v31 }
 0x3f5   :  { %v8376_v57 = vpop.eup %8375  ;;  %7767 = vmatpush3.bf16.msra.mxu1 %v7764_v63  ;;  %7323 = vmatprep.mubr.msk.f32.mxu1 %vm872_vm4, %v1043_v3 }
 0x3f6   :  { %v8378_v13 = vpop.eup %8377  ;;  %v8021_v14 = vpop.permute.xlu0 %8020  ;;  %v1042_v32 = vmul.f32 %v8376_v57, %v8950_v8 }
 0x3f7   :  { %v8023_v52 = vunpack.i.h.bf16 %v8021_v14  ;;  %v8022_v18 = vunpack.i.l.bf16 %v8021_v14  ;;  %v8026_v53 = vpop.permute.xlu1 %8025  ;;  %v1041_v25 = vmul.f32 %v8378_v13, %v8952_v1 }
 0x3f8   :  { %v8028_v19 = vunpack.i.h.bf16 %v8026_v53  ;;  %v8027_v21 = vunpack.i.l.bf16 %v8026_v53  ;;  %7324 = vmatmul.mubr.msk.f32.vlgmr.msra.gmra.mrb[20].mxu1 %vm872_vm4, %v1044_v17 }
 0x3f9   :  { %7316 = vmatprep.mubr.msk.f32.mxu0 %vm872_vm4, %v1041_v25  ;;  %v7768_v24 = vpack.c.bf16 %v8023_v52, %v8022_v18 }
 0x3fa   :  { %v8380_v55 = vpop.eup %8379  ;;  %7317 = vmatmul.mubr.msk.f32.vlgmr.msra.gmra.mrb[8].mxu0 %vm872_vm4, %v1042_v32  ;;  %v7772_v28 = vpack.c.bf16 %v8028_v19, %v8027_v21 }
 0x3fb   :  { %v8382_v30 = vpop.eup %8381  ;;  %7769 = vmatprep.subr.bf16.mxu0 %v7768_v24  ;;  %v1047_v31 = vmul.f32 %v8380_v55, %v8960_v11 }
 0x3fc   :  { %7771 = vmatpush3.bf16.msra.mxu0 %v7768_v24  ;;  %7773 = vmatprep.subr.bf16.mxu1 %v7772_v28  ;;  %v1048_v8 = vmul.f32 %v8382_v30, %v8958_v6 }
 0x3fd   :  { %v8384_v1 = vpop.eup %8383  ;;  %7775 = vmatpush3.bf16.msra.mxu1 %v7772_v28  ;;  %7337 = vmatprep.mubr.msk.f32.mxu1 %vm872_vm4, %v1047_v31 }
 0x3fe   :  { %v8386_v4 = vpop.eup %8385  ;;  %v1046_v40 = vmul.f32 %v8384_v1, %v8966_v15  ;;  %v8281_v15 = vld [vmem:[%s10105_s2] sm:$0xff]  }
 0x3ff   :  { %v1045_v35 = vmul.f32 %v8386_v4, %v8968_v16  ;;  %7340 = vmatprep.subr.bf16.mxu0 %v8281_v15 }
 0x400   :  { %7338 = vmatmul.mubr.msk.f32.vlgmr.msra.gmra.mrb[22].mxu1 %vm872_vm4, %v1048_v8  ;;  %v9042_v8 = vsub.s32 4, %v8664_v9 }
 0x401   :  { %7330 = vmatprep.mubr.msk.f32.mxu0 %vm872_vm4, %v1045_v35  ;;  %v9047_v35 = vld [vmem:[%s10109_s6] sm:$0xff] }
 0x402   :  { %7331 = vmatmul.mubr.msk.f32.vlgmr.msra.gmra.mrb[10].mxu0 %vm872_vm4, %v1046_v40  ;;  %v1815_v40 = vrot.slane %v9047_v35, %v9042_v8 }
 0x403   :  { %7341 = vmatpush3.bf16.msra.mxu0 %v8281_v15 }
 0x404   :  { %7342 = vmatprep.subr.bf16.mxu0 %v8282_v39 }
 0x407   :  { %7343 = vmatpush3.bf16.msra.mxu0 %v8282_v39 }
 0x470   :  { %v7290_v11 = vpop.f32.mrb[12].mxu1 }
 0x471   :  { %v1127_v37 = vpop.f32.mrb[13].mxu1 }
 0x474   :  { %v7297_v5 = vpop.f32.mrb[14].mxu1 }
 0x475   :  { %v1214_v38 = vpop.f32.mrb[15].mxu1 }
 0x4c3   :  { %v7304_v42 = vpop.f32.mrb[16].mxu1 }
 0x4c4   :  { %v1301_v7 = vpop.f32.mrb[17].mxu1 }
 0x4c5   :  { %v8029_v45 = vpack.i.bf16 %v7304_v42, %v1301_v7 }
 0x4c7   :  { %8030 = vrot.lane.b32.xlu0 %v8029_v45, %s8596_s20  ;;  %v7311_v6 = vpop.f32.mrb[18].mxu1 }
 0x4c8   :  { %v1388_v16 = vpop.f32.mrb[19].mxu1 }
 0x4c9   :  { %v8034_v44 = vpack.i.bf16 %v7311_v6, %v1388_v16  ;;  %v8560_v6 = vld [vmem:[%s10103_s0] sm:$0xff] }
 0x4cb   :  { %8035 = vrot.lane.b32.xlu1 %v8034_v44, %s8596_s20  ;;  %v7325_v36 = vpop.f32.mrb[20].mxu1 }
 0x4cc   :  { %v1562_v59 = vpop.f32.mrb[21].mxu1 }
 0x4cd   :  { %v7318_v41 = vpop.f32.mrb[8].mxu0  ;;  %v8044_v12 = vpack.i.bf16 %v7325_v36, %v1562_v59  ;;  %v8561_v36 = vld [vmem:[%s10103_s0 + $0x8] sm:$0xff] }
 0x4ce   :  { %v1475_v48 = vpop.f32.mrb[9].mxu0 }
 0x4cf   :  { %v8039_v20 = vpack.i.bf16 %v7318_v41, %v1475_v48  ;;  %8045 = vrot.lane.b32.xlu1 %v8044_v12, %s8597_s25  ;;  %v8562_v41 = vld [vmem:[%s10103_s0 + $0x10] sm:$0xff] }
 0x4d1   :  { %8040 = vrot.lane.b32.xlu0 %v8039_v20, %s8597_s25  ;;  %v8563_v20 = vld [vmem:[%s10103_s0 + $0x18] sm:$0xff] }
 0x4d3   :  { %v7339_v49 = vpop.f32.mrb[22].mxu1 }
 0x4d4   :  { %v1736_v50 = vpop.f32.mrb[23].mxu1 }
 0x4d5   :  { %v8054_v58 = vpack.i.bf16 %v7339_v49, %v1736_v50  ;;  %v7332_v51 = vpop.f32.mrb[10].mxu0 }
 0x4d6   :  { %v1649_v54 = vpop.f32.mrb[11].mxu0 }
 0x4d7   :  { %v8049_v26 = vpack.i.bf16 %v7332_v51, %v1649_v54  ;;  %8055 = vrot.lane.b32.xlu1 %v8054_v58, %s8598_s26 }
 0x4d9   :  { %8050 = vrot.lane.b32.xlu0 %v8049_v26, %s8598_s26 }
 0x539   :  { %v8031_v56 = vpop.permute.xlu0 %8030 }
 0x53a   :  { %v8033_v62 = vunpack.i.h.bf16 %v8031_v56  ;;  %v8032_v63 = vunpack.i.l.bf16 %v8031_v56 }
 0x53c   :  { %v1794_v17 = vsel %vm147_vm1, %v7290_v11, %v8033_v62  ;;  %v1793_v52 = vsel %vm147_vm1, %v1127_v37, %v8032_v63 }
 0x53d   :  { %v8036_v34 = vpop.permute.xlu1 %8035 }
 0x53e   :  { %v8038_v33 = vunpack.i.h.bf16 %v8036_v34  ;;  %v8037_v60 = vunpack.i.l.bf16 %v8036_v34 }
 0x540   :  { %v1796_v3 = vsel %vm147_vm1, %v7297_v5, %v8038_v33  ;;  %v1795_v57 = vsel %vm147_vm1, %v1214_v38, %v8037_v60 }
 0x541   :  { %v8046_v27 = vpop.permute.xlu1 %8045 }
 0x542   :  { %v8048_v29 = vunpack.i.h.bf16 %v8046_v27  ;;  %v8047_v0 = vunpack.i.l.bf16 %v8046_v27 }
 0x543   :  { %v8041_v61 = vpop.permute.xlu0 %8040 }
 0x544   :  { %v8043_v46 = vunpack.i.h.bf16 %v8041_v61  ;;  %v8042_v43 = vunpack.i.l.bf16 %v8041_v61  ;;  %v1800_v18 = vsel %vm872_vm4, %v1796_v3, %v8048_v29  ;;  %v1799_v53 = vsel %vm872_vm4, %v1795_v57, %v8047_v0 }
 0x546   :  { %v1798_v55 = vsel %vm872_vm4, %v1794_v17, %v8043_v46  ;;  %v1797_v28 = vsel %vm872_vm4, %v1793_v52, %v8042_v43  ;;  %v8284_v17 = vld [vmem:[%s10106_s3 + $0x8] sm:$0xff]   ;;  %v8285_v52 = vld [vmem:[%s10107_s4] sm:$0xff]  }
 0x547   :  { %7356 = vmatprep.subr.bf16.mxu0 %v8285_v52 }
 0x549   :  { %v8056_v2 = vpop.permute.xlu1 %8055 }
 0x54a   :  { %v8058_v13 = vunpack.i.h.bf16 %v8056_v2  ;;  %v8057_v14 = vunpack.i.l.bf16 %v8056_v2 }
 0x54b   :  { %v8051_v25 = vpop.permute.xlu0 %8050 }
 0x54c   :  { %v1805_v19 = vsel %vm1801_vm5, %v1800_v18, %v8058_v13  ;;  %v1804_v21 = vsel %vm1801_vm5, %v1799_v53, %v8057_v14  ;;  %v8053_v32 = vunpack.i.h.bf16 %v8051_v25  ;;  %v8052_v24 = vunpack.i.l.bf16 %v8051_v25  ;;  %v8283_v14 = vld [vmem:[%s10106_s3] sm:$0xff]   ;;  %v8286_v18 = vld [vmem:[%s10107_s4 + $0x8] sm:$0xff]   ;;  %v8287_v53 = vld [vmem:[%s10107_s4 + $0x10] sm:$0xff]  }
 0x54d   :  { %v1811_v30 = vpack.c.bf16 %v1805_v19, %v1804_v21  ;;  %7348 = vmatprep.subr.bf16.mxu1 %v8283_v14  ;;  %v8288_v25 = vld [vmem:[%s10107_s4 + $0x18] sm:$0xff]   ;;  %v8289_v19 = vld [vmem:[%s10107_s4 + $0x20] sm:$0xff]   ;;  %v8290_v21 = vld [vmem:[%s10107_s4 + $0x28] sm:$0xff]  }
 0x54e   :  { %v1803_v31 = vsel %vm1801_vm5, %v1798_v55, %v8053_v32  ;;  %v1802_v1 = vsel %vm1801_vm5, %v1797_v28, %v8052_v24  ;;  %7349 = vmatpush3.bf16.msra.mxu1 %v8283_v14 }
 0x54f   :  { %v1810_v4 = vpack.c.bf16 %v1803_v31, %v1802_v1  ;;  %7350 = vmatprep.subr.bf16.mxu1 %v8284_v17 }
 0x551   :  { %7344 = vmatprep.mubr.msk.bf16.mxu0 %vm59_vm0, %v1810_v4 }
 0x552   :  { %7345 = vmatmul.mubr.msk.bf16.vlgmr.msra.gmra.mrb[12].mxu0 %vm59_vm0, %v1811_v30  ;;  %7351 = vmatpush3.bf16.msra.mxu1 %v8284_v17 }
 0x553   :  { %7357 = vmatpush3.bf16.msra.mxu0 %v8285_v52 }
 0x554   :  { %7358 = vmatprep.subr.bf16.mxu0 %v8286_v18 }
 0x557   :  { %7359 = vmatpush3.bf16.msra.mxu0 %v8286_v18  ;;  %v9134_v18 = vsub.s32 6, %v8664_v9 }
 0x558   :  { %7360 = vmatprep.subr.bf16.mxu0 %v8287_v53 }
 0x55b   :  { %7361 = vmatpush3.bf16.msra.mxu0 %v8287_v53  ;;  %v2058_v53 = vrot.slane %v9047_v35, %v9134_v18 }
 0x55c   :  { %7362 = vmatprep.subr.bf16.mxu0 %v8288_v25 }
 0x55f   :  { %7363 = vmatpush3.bf16.msra.mxu0 %v8288_v25 }
 0x560   :  { %7364 = vmatprep.subr.bf16.mxu0 %v8289_v19 }
 0x563   :  { %7365 = vmatpush3.bf16.msra.mxu0 %v8289_v19 }
 0x564   :  { %7366 = vmatprep.subr.bf16.mxu0 %v8290_v21 }
 0x567   :  { %7367 = vmatpush3.bf16.msra.mxu0 %v8290_v21 }
 0x625   :  { %v7346_v11 = vpop.f32.mrb[12].mxu0 }
 0x626   :  { %v1868_v37 = vpop.f32.mrb[13].mxu0  ;;  %v1877_v5 = vadd.f32 %v7346_v11, %v1815_v40 }
 0x627   :  { %v1869_v38 = vadd.f32 %v1868_v37, %v1815_v40  ;;  %v7347_v42 = vpop.f32.mrb[14].mxu0 }
 0x628   :  { %v1871_v7 = vpop.f32.mrb[15].mxu0  ;;  %v1880_v44 = vadd.f32 %v7347_v42, %v1815_v40  ;;  %v1885_v12 = vadd.f32 %v8562_v41, %v1877_v5  ;;  %v9108_v5 = vsub.s32 0, %v8664_v9 }
 0x629   :  { %v1872_v45 = vadd.f32 %v1871_v7, %v1815_v40  ;;  %v1883_v16 = vadd.f32 %v8560_v6, %v1869_v38  ;;  %v9113_v7 = vsub.s32 1, %v8664_v9 }
 0x62a   :  { %v1893_v48 = vsel %vm59_vm0, %v1885_v12, 0.0  ;;  %v1886_v49 = vadd.f32 %v8563_v20, %v1880_v44  ;;  %v1943_v42 = vrot.slane %v9047_v35, %v9108_v5 }
 0x62b   :  { %v1887_v15 = vsel %vm59_vm0, %v1883_v16, 0.0  ;;  %v1884_v59 = vadd.f32 %v8561_v36, %v1872_v45  ;;  %v1951_v36 = vrot.slane %v9047_v35, %v9113_v7 }
 0x62c   :  { %1888 = vadd.xlane.f32.xlu0 %v1887_v15  ;;  %v1896_v50 = vsel %vm59_vm0, %v1886_v49, 0.0 }
 0x62d   :  { %v1890_v39 = vsel %vm59_vm0, %v1884_v59, 0.0 }
 0x62e   :  { %1891 = vadd.xlane.f32.xlu1 %v1890_v39 }
 0x630   :  { %1894 = vadd.xlane.f32.xlu0 %v1893_v48 }
 0x634   :  { %1897 = vadd.xlane.f32.xlu0 %v1896_v50 }
 0x6b9   :  { %v1889_v58 = vpop.xlane.xlu0 %1888 }
 0x6ba   :  { %v1900_v51 = vmul.f32 0.03125, %v1889_v58 }
 0x6bb   :  { %v1892_v54 = vpop.xlane.xlu1 %1891 }
 0x6bc   :  { %v9067_v26 = vsub.f32 %v1883_v16, %v1900_v51  ;;  %v1901_v34 = vmul.f32 0.03125, %v1892_v54 }
 0x6bd   :  { %v1895_v56 = vpop.xlane.xlu0 %1894 }
 0x6be   :  { %v9069_v27 = vsub.f32 %v1884_v59, %v1901_v34  ;;  %v1902_v33 = vmul.f32 0.03125, %v1895_v56  ;;  %v1908_v60 = vmul.f32 %v9067_v26, %v9067_v26  ;;  %v8291_v56 = vld [vmem:[%s10107_s4 + $0x30] sm:$0xff]  }
 0x6bf   :  { %7368 = vmatprep.subr.bf16.mxu0 %v8291_v56 }
 0x6c0   :  { %v9073_v61 = vsub.f32 %v1885_v12, %v1902_v33  ;;  %v1912_v62 = vsel %vm59_vm0, %v1908_v60, 0.0  ;;  %v1909_v63 = vmul.f32 %v9069_v27, %v9069_v27  ;;  %7369 = vmatpush3.bf16.msra.mxu0 %v8291_v56  ;;  %v9129_v33 = vsub.s32 5, %v8664_v9 }
 0x6c1   :  { %1913 = vadd.xlane.f32.xlu1 %v1912_v62  ;;  %v1898_v29 = vpop.xlane.xlu0 %1897 }
 0x6c2   :  { %v1903_v0 = vmul.f32 0.03125, %v1898_v29  ;;  %v1915_v46 = vsel %vm59_vm0, %v1909_v63, 0.0  ;;  %v1910_v43 = vmul.f32 %v9073_v61, %v9073_v61  ;;  %v1965_v60 = vrot.slane %v9047_v35, %v9129_v33 }
 0x6c3   :  { %1916 = vadd.xlane.f32.xlu0 %v1915_v46 }
 0x6c4   :  { %v1907_v2 = vsub.f32 %v1886_v49, %v1903_v0  ;;  %v1918_v3 = vsel %vm59_vm0, %v1910_v43, 0.0 }
 0x6c5   :  { %1919 = vadd.xlane.f32.xlu1 %v1918_v3 }
 0x6c6   :  { %v1911_v57 = vmul.f32 %v1907_v2, %v1907_v2 }
 0x6c8   :  { %v1921_v13 = vsel %vm59_vm0, %v1911_v57, 0.0 }
 0x6c9   :  { %1922 = vadd.xlane.f32.xlu0 %v1921_v13 }
 0x74e   :  { %v1914_v32 = vpop.xlane.xlu1 %1913 }
 0x74f   :  { %v1924_v24 = vmul.f32 0.03125, %v1914_v32 }
 0x750   :  { %v1917_v55 = vpop.xlane.xlu0 %1916 }
 0x751   :  { %v1928_v28 = vadd.f32 1e-05, %v1924_v24  ;;  %v1925_v30 = vmul.f32 0.03125, %v1917_v55 }
 0x752   :  { %v1920_v31 = vpop.xlane.xlu1 %1919 }
 0x753   :  { %8387 = vrsqrt.f32 %v1928_v28  ;;  %v1929_v1 = vadd.f32 1e-05, %v1925_v30  ;;  %v1926_v4 = vmul.f32 0.03125, %v1920_v31 }
 0x755   :  { %8389 = vrsqrt.f32 %v1929_v1  ;;  %v1930_v40 = vadd.f32 1e-05, %v1926_v4 }
 0x756   :  { %v1923_v11 = vpop.xlane.xlu0 %1922 }
 0x757   :  { %8391 = vrsqrt.f32 %v1930_v40  ;;  %v1927_v37 = vmul.f32 0.03125, %v1923_v11 }
 0x759   :  { %v1931_v38 = vadd.f32 1e-05, %v1927_v37 }
 0x75b   :  { %8393 = vrsqrt.f32 %v1931_v38 }
 0x75d   :  { %v8388_v45 = vpop.eup %8387 }
 0x75e   :  { %v1936_v6 = vmul.f32 %v8388_v45, %v9067_v26 }
 0x75f   :  { %v8390_v16 = vpop.eup %8389 }
 0x760   :  { %v1937_v44 = vmul.f32 %v8390_v16, %v9069_v27  ;;  %v1944_v15 = vmul.f32 %v1943_v42, %v1936_v6  ;;  %v8292_v27 = vld [vmem:[%s10107_s4 + $0x38] sm:$0xff]  }
 0x761   :  { %v8392_v59 = vpop.eup %8391  ;;  %7370 = vmatprep.subr.bf16.mxu0 %v8292_v27 }
 0x762   :  { %v1938_v41 = vmul.f32 %v8392_v59, %v9073_v61  ;;  %v1945_v12 = vmul.f32 %v1943_v42, %v1937_v44  ;;  %v1952_v39 = vadd.f32 %v1951_v36, %v1944_v15  ;;  %7371 = vmatpush3.bf16.msra.mxu0 %v8292_v27  ;;  %v8293_v27 = vld [vmem:[%s10104_s1 + $0x10] sm:$0xff]  }
 0x763   :  { %7376 = vmatprep.subr.bf16.mxu1 %v8293_v27 }
 0x764   :  { %v1953_v48 = vadd.f32 %v1951_v36, %v1945_v12  ;;  %v1946_v49 = vmul.f32 %v1943_v42, %v1938_v41 }
 0x765   :  { %v8394_v20 = vpop.eup %8393 }
 0x766   :  { %v1939_v50 = vmul.f32 %v8394_v20, %v1907_v2  ;;  %v1960_v58 = vpack.c.bf16 %v1953_v48, %v1952_v39  ;;  %v1954_v54 = vadd.f32 %v1951_v36, %v1946_v49 }
 0x768   :  { %v1947_v51 = vmul.f32 %v1943_v42, %v1939_v50  ;;  %7352 = vmatprep.mubr.msk.bf16.mxu1 %vm59_vm0, %v1960_v58 }
 0x76a   :  { %v1955_v26 = vadd.f32 %v1951_v36, %v1947_v51 }
 0x76c   :  { %v1961_v34 = vpack.c.bf16 %v1955_v26, %v1954_v54 }
 0x76e   :  { %7353 = vmatmul.mubr.msk.bf16.vlgmr.msra.gmra.mrb[24].mxu1 %vm59_vm0, %v1961_v34 }
 0x76f   :  { %7377 = vmatpush3.bf16.msra.mxu1 %v8293_v27 }
 0x841   :  { %v7354_v61 = vpop.f32.mrb[24].mxu1 }
 0x842   :  { %v2027_v62 = vadd.f32 %v7354_v61, %v1965_v60  ;;  %v2018_v63 = vpop.f32.mrb[25].mxu1 }
 0x843   :  { %v2019_v29 = vadd.f32 %v2018_v63, %v1965_v60  ;;  %v7355_v0 = vpop.f32.mrb[26].mxu1 }
 0x844   :  { %v2030_v46 = vadd.f32 %v7355_v0, %v1965_v60  ;;  %v2021_v43 = vpop.f32.mrb[27].mxu1  ;;  %v2035_v3 = vmax.f32 %v2027_v62, 0.0 }
 0x845   :  { %v2022_v2 = vadd.f32 %v2021_v43, %v1965_v60  ;;  %v2033_v13 = vmax.f32 %v2019_v29, 0.0  ;;  %v8294_v60 = vld [vmem:[%s10104_s1 + $0x18] sm:$0xff]  }
 0x846   :  { %v2036_v57 = vmax.f32 %v2030_v46, 0.0  ;;  %7378 = vmatprep.subr.bf16.mxu1 %v8294_v60 }
 0x847   :  { %v2034_v14 = vmax.f32 %v2022_v2, 0.0  ;;  %7379 = vmatpush3.bf16.msra.mxu1 %v8294_v60 }
 0x848   :  { %v2054_v17 = vpack.c.bf16 %v2036_v57, %v2035_v3 }
 0x849   :  { %v2053_v52 = vpack.c.bf16 %v2034_v14, %v2033_v13 }
 0x84b   :  { %7372 = vmatprep.mubr.bf16.mxu0 %v2053_v52 }
 0x84c   :  { %7373 = vmatmul.mubr.bf16.vlgmr.msra.gmra.mrb[16].mxu0 %v2054_v17  ;;  %v9153_v17 = vsub.s32 2, %v8664_v9 }
 0x84e   :  { %v2215_v52 = vrot.slane %v9047_v35, %v9153_v17 }
 0x91f   :  { %v7374_v25 = vpop.f32.mrb[16].mxu0 }
 0x920   :  { %v2141_v19 = vpop.f32.mrb[17].mxu0  ;;  %v2150_v21 = vadd.f32 %v7374_v25, %v2058_v53 }
 0x921   :  { %v2142_v32 = vadd.f32 %v2141_v19, %v2058_v53  ;;  %v7375_v24 = vpop.f32.mrb[18].mxu0 }
 0x922   :  { %v2144_v55 = vpop.f32.mrb[19].mxu0  ;;  %v2153_v28 = vadd.f32 %v7375_v24, %v2058_v53  ;;  %v2158_v40 = vadd.f32 %v2150_v21, %v1954_v54 }
 0x923   :  { %v2145_v30 = vadd.f32 %v2144_v55, %v2058_v53  ;;  %v2156_v31 = vadd.f32 %v2142_v32, %v1952_v39  ;;  %v9158_v53 = vsub.s32 3, %v8664_v9 }
 0x924   :  { %v2159_v37 = vadd.f32 %v2153_v28, %v1955_v26  ;;  %v2166_v38 = vsel %vm59_vm0, %v2158_v40, 0.0 }
 0x925   :  { %v2160_v1 = vsel %vm59_vm0, %v2156_v31, 0.0  ;;  %v2157_v4 = vadd.f32 %v2145_v30, %v1953_v48  ;;  %v2223_v55 = vrot.slane %v9047_v35, %v9158_v53 }
 0x926   :  { %2161 = vadd.xlane.f32.xlu1 %v2160_v1  ;;  %v2169_v42 = vsel %vm59_vm0, %v2159_v37, 0.0 }
 0x927   :  { %v2163_v11 = vsel %vm59_vm0, %v2157_v4, 0.0 }
 0x928   :  { %2164 = vadd.xlane.f32.xlu0 %v2163_v11 }
 0x92a   :  { %2167 = vadd.xlane.f32.xlu1 %v2166_v38 }
 0x92c   :  { %2170 = vadd.xlane.f32.xlu0 %v2169_v42 }
 0x9b3   :  { %v2162_v45 = vpop.xlane.xlu1 %2161 }
 0x9b4   :  { %v2172_v6 = vmul.f32 0.03125, %v2162_v45 }
 0x9b5   :  { %v2165_v16 = vpop.xlane.xlu0 %2164 }
 0x9b6   :  { %v2176_v44 = vsub.f32 %v2156_v31, %v2172_v6  ;;  %v2173_v15 = vmul.f32 0.03125, %v2165_v16  ;;  %v6759_v16 = vld [vmem:[%s10109_s6 + $0x10] sm:$0xff] }
 0x9b7   :  { %v2168_v36 = vpop.xlane.xlu1 %2167 }
 0x9b8   :  { %v2177_v59 = vsub.f32 %v2157_v4, %v2173_v15  ;;  %v2174_v41 = vmul.f32 0.03125, %v2168_v36  ;;  %v2180_v12 = vmul.f32 %v2176_v44, %v2176_v44 }
 0x9b9   :  { %v2171_v39 = vpop.xlane.xlu0 %2170 }
 0x9ba   :  { %v2178_v48 = vsub.f32 %v2158_v40, %v2174_v41  ;;  %v2175_v20 = vmul.f32 0.03125, %v2171_v39  ;;  %v2184_v49 = vsel %vm59_vm0, %v2180_v12, 0.0  ;;  %v2181_v50 = vmul.f32 %v2177_v59, %v2177_v59 }
 0x9bb   :  { %2185 = vadd.xlane.f32.xlu1 %v2184_v49 }
 0x9bc   :  { %v2179_v58 = vsub.f32 %v2159_v37, %v2175_v20  ;;  %v2187_v51 = vsel %vm59_vm0, %v2181_v50, 0.0  ;;  %v2182_v54 = vmul.f32 %v2178_v48, %v2178_v48 }
 0x9bd   :  { %2188 = vadd.xlane.f32.xlu0 %v2187_v51 }
 0x9be   :  { %v2190_v26 = vsel %vm59_vm0, %v2182_v54, 0.0  ;;  %v2183_v34 = vmul.f32 %v2179_v58, %v2179_v58 }
 0x9bf   :  { %2191 = vadd.xlane.f32.xlu1 %v2190_v26 }
 0x9c0   :  { %v2193_v56 = vsel %vm59_vm0, %v2183_v34, 0.0 }
 0x9c1   :  { %2194 = vadd.xlane.f32.xlu0 %v2193_v56 }
 0xa48   :  { %v2186_v61 = vpop.xlane.xlu1 %2185 }
 0xa49   :  { %v2196_v62 = vmul.f32 0.03125, %v2186_v61 }
 0xa4a   :  { %v2189_v63 = vpop.xlane.xlu0 %2188 }
 0xa4b   :  { %v2200_v29 = vadd.f32 1e-05, %v2196_v62  ;;  %v2197_v0 = vmul.f32 0.03125, %v2189_v63 }
 0xa4c   :  { %v2192_v46 = vpop.xlane.xlu1 %2191 }
 0xa4d   :  { %8395 = vrsqrt.f32 %v2200_v29  ;;  %v2201_v43 = vadd.f32 1e-05, %v2197_v0  ;;  %v2198_v2 = vmul.f32 0.03125, %v2192_v46 }
 0xa4e   :  { %v2195_v3 = vpop.xlane.xlu0 %2194 }
 0xa4f   :  { %8397 = vrsqrt.f32 %v2201_v43  ;;  %v2202_v57 = vadd.f32 1e-05, %v2198_v2  ;;  %v2199_v13 = vmul.f32 0.03125, %v2195_v3 }
 0xa51   :  { %8399 = vrsqrt.f32 %v2202_v57  ;;  %v2203_v14 = vadd.f32 1e-05, %v2199_v13 }
 0xa53   :  { %8401 = vrsqrt.f32 %v2203_v14 }
 0xa57   :  { %v8396_v25 = vpop.eup %8395 }
 0xa58   :  { %v2208_v19 = vmul.f32 %v8396_v25, %v2176_v44  ;;  %v2240_v44 = vrot.slane %v6759_v16, %v8667_v10 }
 0xa59   :  { %v8398_v21 = vpop.eup %8397 }
 0xa5a   :  { %v2209_v32 = vmul.f32 %v8398_v21, %v2177_v59  ;;  %v2216_v24 = vmul.f32 %v2215_v52, %v2208_v19 }
 0xa5b   :  { %v8400_v28 = vpop.eup %8399 }
 0xa5c   :  { %v2210_v30 = vmul.f32 %v8400_v28, %v2178_v48  ;;  %v2217_v31 = vmul.f32 %v2215_v52, %v2209_v32  ;;  %v9162_v11 = vadd.f32 %v2223_v55, %v2216_v24 }
 0xa5d   :  { %v8402_v1 = vpop.eup %8401 }
 0xa5e   :  { %v2218_v4 = vmul.f32 %v2215_v52, %v2210_v30  ;;  %v2211_v40 = vmul.f32 %v8402_v1, %v2179_v58  ;;  %v9164_v37 = vadd.f32 %v2223_v55, %v2217_v31 }
 0xa60   :  { %v2219_v38 = vmul.f32 %v2215_v52, %v2211_v40  ;;  %v2235_v42 = vpack.c.bf16 %v9164_v37, %v9162_v11  ;;  %v9169_v45 = vadd.f32 %v2223_v55, %v2218_v4 }
 0xa62   :  { %7380 = vmatprep.mubr.msk.bf16.mxu1 %vm59_vm0, %v2235_v42  ;;  %v9171_v6 = vadd.f32 %v2223_v55, %v2219_v38 }
 0xa64   :  { %v2236_v35 = vpack.c.bf16 %v9171_v6, %v9169_v45 }
 0xa66   :  { %7381 = vmatmul.mubr.msk.bf16.vlgmr.msra.gmra.mrb[28].mxu1 %vm59_vm0, %v2236_v35 }
 0xb39   :  { %v7382_v15 = vpop.f32.mrb[28].mxu1 }
 0xb3a   :  { %v2293_v36 = vpop.f32.mrb[29].mxu1  ;;  %v2302_v48 = vadd.f32 %v7382_v15, %v2240_v44 }
 0xb3b   :  { %v2294_v59 = vadd.f32 %v2293_v36, %v2240_v44  ;;  %v7383_v41 = vpop.f32.mrb[30].mxu1 }
 0xb3c   :  { %v2296_v12 = vpop.f32.mrb[31].mxu1  ;;  %v2305_v20 = vadd.f32 %v7383_v41, %v2240_v44 }
 0xb3d   :  { %v2297_v39 = vadd.f32 %v2296_v12, %v2240_v44  ;;  %2312 = vrot.lane.b32.xlu1 %v2294_v59, %s8590_s15  ;;  %7388 = vmatprep.mubr.msk.f32.mxu1 %vm147_vm1, %v2294_v59 }
 0xb3e   :  { %v8064_v50 = vpack.i.bf16 %v2305_v20, %v2302_v48 }
 0xb3f   :  { %2314 = vrot.lane.b32.xlu0 %v2297_v39, %s8590_s15  ;;  %v8059_v49 = vpack.i.bf16 %v2297_v39, %v2294_v59 }
 0xb41   :  { %2316 = vrot.lane.b32.xlu1 %v2302_v48, %s8590_s15 }
 0xb43   :  { %2320 = vrot.lane.b32.xlu0 %v2294_v59, %s8591_s16 }
 0xb45   :  { %2318 = vrot.lane.b32.xlu1 %v2305_v20, %s8590_s15 }
 0xb47   :  { %2324 = vrot.lane.b32.xlu0 %v2302_v48, %s8591_s16 }
 0xb49   :  { %2322 = vrot.lane.b32.xlu1 %v2297_v39, %s8591_s16 }
 0xb4b   :  { %2328 = vrot.lane.b32.xlu0 %v2294_v59, %s8592_s17 }
 0xb4d   :  { %2326 = vrot.lane.b32.xlu1 %v2305_v20, %s8591_s16 }
 0xb4f   :  { %2332 = vrot.lane.b32.xlu0 %v2302_v48, %s8592_s17 }
 0xb51   :  { %2330 = vrot.lane.b32.xlu1 %v2297_v39, %s8592_s17 }
 0xb53   :  { %8060 = vrot.lane.b32.xlu0 %v8059_v49, %s8593_s18 }
 0xb55   :  { %2334 = vrot.lane.b32.xlu1 %v2305_v20, %s8592_s17 }
 0xb59   :  { %8065 = vrot.lane.b32.xlu1 %v8064_v50, %s8593_s18 }
 0xbaf   :  { %v2313_v58 = vpop.permute.xlu1 %2312 }
 0xbb1   :  { %v2315_v51 = vpop.permute.xlu0 %2314 }
 0xbb2   :  { %v8069_v54 = vpack.i.bf16 %v2315_v51, %v2313_v58 }
 0xbb3   :  { %v2317_v26 = vpop.permute.xlu1 %2316 }
 0xbb4   :  { %8070 = vrot.lane.b32.xlu0 %v8069_v54, %s8593_s18  ;;  %7409 = vmatprep.mubr.msk.f32.mxu0 %vm147_vm1, %v2317_v26 }
 0xbb5   :  { %v2321_v34 = vpop.permute.xlu0 %2320 }
 0xbb7   :  { %v9197_v56 = vpop.permute.xlu1 %2318 }
 0xbb8   :  { %v8074_v27 = vpack.i.bf16 %v9197_v56, %v2317_v26 }
 0xbb9   :  { %v9200_v60 = vpop.permute.xlu0 %2324 }
 0xbba   :  { %8075 = vrot.lane.b32.xlu1 %v8074_v27, %s8593_s18 }
 0xbbb   :  { %v9203_v61 = vpop.permute.xlu1 %2322 }
 0xbbc   :  { %v9206_v62 = vpack.i.bf16 %v9203_v61, %v2321_v34 }
 0xbbd   :  { %v9208_v63 = vpop.permute.xlu0 %2328 }
 0xbbe   :  { %8080 = vrot.lane.b32.xlu0 %v9206_v62, %s8593_s18 }
 0xbbf   :  { %v9212_v29 = vpop.permute.xlu1 %2326 }
 0xbc0   :  { %v9216_v0 = vpack.i.bf16 %v9212_v29, %v9200_v60 }
 0xbc1   :  { %v9218_v46 = vpop.permute.xlu0 %2332 }
 0xbc2   :  { %8085 = vrot.lane.b32.xlu1 %v9216_v0, %s8593_s18 }
 0xbc3   :  { %v9222_v43 = vpop.permute.xlu1 %2330 }
 0xbc4   :  { %v9226_v2 = vpack.i.bf16 %v9222_v43, %v9208_v63 }
 0xbc5   :  { %v8061_v3 = vpop.permute.xlu0 %8060 }
 0xbc6   :  { %v8063_v57 = vunpack.i.h.bf16 %v8061_v3  ;;  %v8062_v13 = vunpack.i.l.bf16 %v8061_v3  ;;  %8090 = vrot.lane.b32.xlu0 %v9226_v2, %s8593_s18 }
 0xbc7   :  { %v9230_v14 = vpop.permute.xlu1 %2334 }
 0xbc8   :  { %v7776_v52 = vpack.c.bf16 %v8063_v57, %v8062_v13  ;;  %v9234_v25 = vpack.i.bf16 %v9230_v14, %v9218_v46 }
 0xbca   :  { %7778 = vmatprep.subr.msk.bf16.mxu1 %vm8737_vm2, %v7776_v52  ;;  %8105 = vrot.lane.b32.xlu0 %v8064_v50, %s8594_s19 }
 0xbcb   :  { %8095 = vrot.lane.b32.xlu1 %v9234_v25, %s8593_s18  ;;  %7781 = vmatpush3.bf16.xpose.msk.msra.mxu1 %vm8737_vm2, %v7776_v52  ;;  %v8066_v19 = vpop.permute.xlu1 %8065 }
 0xbcc   :  { %v8068_v21 = vunpack.i.h.bf16 %v8066_v19  ;;  %v8067_v32 = vunpack.i.l.bf16 %v8066_v19 }
 0xbce   :  { %v7782_v24 = vpack.c.bf16 %v8068_v21, %v8067_v32 }
 0xbcf   :  { %8100 = vrot.lane.b32.xlu1 %v8059_v49, %s8594_s19 }
 0xbd0   :  { %7784 = vmatprep.subr.msk.bf16.mxu1 %vm8737_vm2, %v7782_v24 }
 0xbd2   :  { %7389 = vmatmul.mubr.msk.f32.vlgmr.msra.gmra.mrb[32].mxu1 %vm147_vm1, %v2297_v39 }
 0xbd3   :  { %8110 = vrot.lane.b32.xlu1 %v8074_v27, %s8594_s19  ;;  %7787 = vmatpush3.bf16.xpose.msk.msra.mxu1 %vm8737_vm2, %v7782_v24 }
 0xbd4   :  { %7395 = vmatprep.mubr.msk.f32.mxu1 %vm147_vm1, %v2302_v48 }
 0xbd7   :  { %8115 = vrot.lane.b32.xlu1 %v8069_v54, %s8594_s19 }
 0xbda   :  { %7396 = vmatmul.mubr.msk.f32.vlgmr.msra.gmra.mrb[34].mxu1 %vm147_vm1, %v2305_v20 }
 0xbdb   :  { %7402 = vmatprep.mubr.msk.f32.mxu1 %vm147_vm1, %v2313_v58 }
 0xc26   :  { %v8071_v55 = vpop.permute.xlu0 %8070 }
 0xc27   :  { %v8073_v28 = vunpack.i.h.bf16 %v8071_v55  ;;  %v8072_v30 = vunpack.i.l.bf16 %v8071_v55 }
 0xc29   :  { %v7788_v31 = vpack.c.bf16 %v8073_v28, %v8072_v30 }
 0xc2b   :  { %7790 = vmatprep.subr.msk.bf16.mxu1 %vm8737_vm2, %v7788_v31 }
 0xc2c   :  { %v8076_v1 = vpop.permute.xlu1 %8075  ;;  %7793 = vmatpush3.bf16.xpose.msk.msra.mxu1 %vm8737_vm2, %v7788_v31 }
 0xc2d   :  { %v8078_v4 = vunpack.i.h.bf16 %v8076_v1  ;;  %v8077_v40 = vunpack.i.l.bf16 %v8076_v1 }
 0xc2f   :  { %v7794_v38 = vpack.c.bf16 %v8078_v4, %v8077_v40 }
 0xc30   :  { %v8081_v42 = vpop.permute.xlu0 %8080 }
 0xc31   :  { %v8083_v35 = vunpack.i.h.bf16 %v8081_v42  ;;  %v8082_v16 = vunpack.i.l.bf16 %v8081_v42  ;;  %7796 = vmatprep.subr.msk.bf16.mxu0 %vm8737_vm2, %v7794_v38 }
 0xc32   :  { %7799 = vmatpush3.bf16.xpose.msk.msra.mxu0 %vm8737_vm2, %v7794_v38 }
 0xc33   :  { %v7800_v44 = vpack.c.bf16 %v8083_v35, %v8082_v16  ;;  %7403 = vmatmul.mubr.msk.f32.vlgmr.msra.gmra.mrb[36].mxu1 %vm147_vm1, %v2315_v51 }
 0xc34   :  { %v8086_v15 = vpop.permute.xlu1 %8085  ;;  %7416 = vmatprep.mubr.msk.f32.mxu1 %vm147_vm1, %v2321_v34 }
 0xc35   :  { %v8088_v36 = vunpack.i.h.bf16 %v8086_v15  ;;  %v8087_v59 = vunpack.i.l.bf16 %v8086_v15  ;;  %7802 = vmatprep.subr.msk.bf16.mxu1 %vm8737_vm2, %v7800_v44 }
 0xc36   :  { %7805 = vmatpush3.bf16.xpose.msk.msra.mxu1 %vm8737_vm2, %v7800_v44 }
 0xc37   :  { %v7806_v41 = vpack.c.bf16 %v8088_v36, %v8087_v59 }
 0xc38   :  { %v8091_v12 = vpop.permute.xlu0 %8090 }
 0xc39   :  { %v8093_v39 = vunpack.i.h.bf16 %v8091_v12  ;;  %v8092_v48 = vunpack.i.l.bf16 %v8091_v12  ;;  %7410 = vmatmul.mubr.msk.f32.vlgmr.msra.gmra.mrb[20].mxu0 %vm147_vm1, %v9197_v56  ;;  %7808 = vmatprep.subr.msk.bf16.mxu0 %vm8737_vm2, %v7806_v41 }
 0xc3a   :  { %7811 = vmatpush3.bf16.xpose.msk.msra.mxu0 %vm8737_vm2, %v7806_v41  ;;  %7423 = vmatprep.mubr.msk.f32.mxu0 %vm147_vm1, %v9200_v60 }
 0xc3b   :  { %v7812_v20 = vpack.c.bf16 %v8093_v39, %v8092_v48 }
 0xc3c   :  { %v8106_v51 = vpop.permute.xlu0 %8105 }
 0xc3d   :  { %v8096_v49 = vpop.permute.xlu1 %8095  ;;  %7417 = vmatmul.mubr.msk.f32.vlgmr.msra.gmra.mrb[38].mxu1 %vm147_vm1, %v9203_v61  ;;  %7814 = vmatprep.subr.msk.bf16.mxu1 %vm8737_vm2, %v7812_v20  ;;  %v8108_v34 = vunpack.i.h.bf16 %v8106_v51  ;;  %v8107_v56 = vunpack.i.l.bf16 %v8106_v51 }
 0xc3e   :  { %v8098_v50 = vunpack.i.h.bf16 %v8096_v49  ;;  %v8097_v58 = vunpack.i.l.bf16 %v8096_v49  ;;  %7817 = vmatpush3.bf16.xpose.msk.msra.mxu1 %vm8737_vm2, %v7812_v20  ;;  %7430 = vmatprep.mubr.msk.f32.mxu1 %vm147_vm1, %v9208_v63 }
 0xc40   :  { %v7818_v54 = vpack.c.bf16 %v8098_v50, %v8097_v58 }
 0xc41   :  { %v8101_v26 = vpop.permute.xlu1 %8100  ;;  %7424 = vmatmul.mubr.msk.f32.vlgmr.msra.gmra.mrb[22].mxu0 %vm147_vm1, %v9212_v29  ;;  %v9296_v29 = vpack.c.bf16 %v8108_v34, %v8107_v56 }
 0xc42   :  { %v8103_v27 = vunpack.i.h.bf16 %v8101_v26  ;;  %v8102_v60 = vunpack.i.l.bf16 %v8101_v26  ;;  %7820 = vmatprep.subr.msk.bf16.mxu0 %vm8737_vm2, %v7818_v54  ;;  %7437 = vmatprep.mubr.msk.f32.mxu0 %vm147_vm1, %v9218_v46 }
 0xc43   :  { %7823 = vmatpush3.bf16.xpose.msk.msra.mxu0 %vm8737_vm2, %v7818_v54 }
 0xc44   :  { %v7824_v61 = vpack.c.bf16 %v8103_v27, %v8102_v60 }
 0xc45   :  { %v9292_v63 = vpop.permute.xlu1 %8110  ;;  %7431 = vmatmul.mubr.msk.f32.vlgmr.msra.gmra.mrb[40].mxu1 %vm147_vm1, %v9222_v43 }
 0xc46   :  { %7825 = vmatprep.subr.bf16.mxu1 %v7824_v61 }
 0xc47   :  { %7827 = vmatpush3.bf16.msra.mxu1 %v7824_v61 }
 0xc48   :  { %7829 = vmatprep.subr.bf16.mxu1 %v9296_v29 }
 0xc49   :  { %v8116_v3 = vpop.permute.xlu1 %8115 }
 0xc4a   :  { %v8118_v57 = vunpack.i.h.bf16 %v8116_v3  ;;  %v8117_v13 = vunpack.i.l.bf16 %v8116_v3  ;;  %7438 = vmatmul.mubr.msk.f32.vlgmr.msra.gmra.mrb[24].mxu0 %vm147_vm1, %v9230_v14 }
 0xc4c   :  { %v7832_v46 = vpack.c.bf16 %v8118_v57, %v8117_v13 }
 0xc4e   :  { %7833 = vmatprep.subr.bf16.mxu0 %v7832_v46 }
 0xc4f   :  { %7835 = vmatpush3.bf16.msra.mxu0 %v7832_v46 }
 0xca5   :  { %v7390_v52 = vpop.f32.mrb[32].mxu1 }
 0xca6   :  { %v3033_v19 = vmul.f32 0.35355338, %v7390_v52  ;;  %v2414_v21 = vpop.f32.mrb[33].mxu1 }
 0xca7   :  { %v3032_v32 = vmul.f32 0.35355338, %v2414_v21 }
 0xca8   :  { %v9302_v43 = vadd.f32 %v3033_v19, %v8804_v23 }
 0xca9   :  { %v9305_v24 = vadd.f32 %v3032_v32, %v8804_v23 }
 0xcaa   :  { %v3067_v55 = vsel %vm872_vm4, %v9302_v43, -inf }
 0xcab   :  { %3068 = vmax.xlane.f32.xlu1 %v3067_v55  ;;  %v3064_v14 = vsel %vm872_vm4, %v9305_v24, -inf }
 0xcac   :  { %3065 = vmax.xlane.f32.xlu0 %v3064_v14 }
 0xcad   :  { %v7397_v28 = vpop.f32.mrb[34].mxu1 }
 0xcae   :  { %v3035_v30 = vmul.f32 0.35355338, %v7397_v28  ;;  %v2501_v31 = vpop.f32.mrb[35].mxu1 }
 0xcaf   :  { %v3034_v1 = vmul.f32 0.35355338, %v2501_v31 }
 0xcb0   :  { %v9312_v4 = vadd.f32 %v3035_v30, %v8804_v23 }
 0xcb1   :  { %v9315_v40 = vadd.f32 %v3034_v1, %v8804_v23 }
 0xcb2   :  { %v3073_v38 = vsel %vm872_vm4, %v9312_v4, -inf }
 0xcb3   :  { %3074 = vmax.xlane.f32.xlu0 %v3073_v38  ;;  %v3070_v42 = vsel %vm872_vm4, %v9315_v40, -inf }
 0xcb7   :  { %3071 = vmax.xlane.f32.xlu0 %v3070_v42 }
 0xd06   :  { %v7404_v35 = vpop.f32.mrb[36].mxu1 }
 0xd07   :  { %v2588_v16 = vpop.f32.mrb[37].mxu1  ;;  %v3037_v15 = vmul.f32 0.35355338, %v7404_v35 }
 0xd08   :  { %v3036_v41 = vmul.f32 0.35355338, %v2588_v16 }
 0xd09   :  { %v9328_v49 = vadd.f32 %v3037_v15, %v8804_v23 }
 0xd0a   :  { %v9333_v51 = vadd.f32 %v3036_v41, %v8804_v23 }
 0xd0b   :  { %v3079_v60 = vsel %vm872_vm4, %v9328_v49, -inf }
 0xd0c   :  { %v7411_v44 = vpop.f32.mrb[20].mxu0  ;;  %v3076_v57 = vsel %vm872_vm4, %v9333_v51, -inf }
 0xd0d   :  { %v3039_v36 = vmul.f32 0.35355338, %v7411_v44  ;;  %v2675_v59 = vpop.f32.mrb[21].mxu0 }
 0xd0e   :  { %v3038_v12 = vmul.f32 0.35355338, %v2675_v59 }
 0xd0f   :  { %v9322_v39 = vadd.f32 %v3039_v36, %v8804_v23 }
 0xd10   :  { %v9325_v48 = vadd.f32 %v3038_v12, %v8804_v23  ;;  %v7418_v20 = vpop.f32.mrb[38].mxu1 }
 0xd11   :  { %v2762_v50 = vpop.f32.mrb[39].mxu1  ;;  %v3085_v58 = vsel %vm872_vm4, %v9322_v39, -inf  ;;  %v3041_v34 = vmul.f32 0.35355338, %v7418_v20 }
 0xd12   :  { %3086 = vmax.xlane.f32.xlu0 %v3085_v58  ;;  %v3082_v54 = vsel %vm872_vm4, %v9325_v48, -inf  ;;  %v3040_v61 = vmul.f32 0.35355338, %v2762_v50 }
 0xd13   :  { %3083 = vmax.xlane.f32.xlu1 %v3082_v54  ;;  %v9348_v19 = vadd.f32 %v3041_v34, %v8804_v23 }
 0xd14   :  { %v7425_v26 = vpop.f32.mrb[22].mxu0  ;;  %v9353_v55 = vadd.f32 %v3040_v61, %v8804_v23 }
 0xd15   :  { %v3043_v56 = vmul.f32 0.35355338, %v7425_v26  ;;  %v2849_v27 = vpop.f32.mrb[23].mxu0  ;;  %v3091_v30 = vsel %vm872_vm4, %v9348_v19, -inf }
 0xd16   :  { %v3042_v3 = vmul.f32 0.35355338, %v2849_v27  ;;  %3080 = vmax.xlane.f32.xlu0 %v3079_v60  ;;  %v3088_v42 = vsel %vm872_vm4, %v9353_v55, -inf }
 0xd17   :  { %v9342_v13 = vadd.f32 %v3043_v56, %v8804_v23  ;;  %3077 = vmax.xlane.f32.xlu1 %v3076_v57 }
 0xd18   :  { %v9345_v46 = vadd.f32 %v3042_v3, %v8804_v23  ;;  %v7432_v52 = vpop.f32.mrb[40].mxu1 }
 0xd19   :  { %v2936_v21 = vpop.f32.mrb[41].mxu1  ;;  %v3097_v32 = vsel %vm872_vm4, %v9342_v13, -inf  ;;  %v3045_v31 = vmul.f32 0.35355338, %v7432_v52 }
 0xd1a   :  { %3098 = vmax.xlane.f32.xlu0 %v3097_v32  ;;  %v3094_v14 = vsel %vm872_vm4, %v9345_v46, -inf  ;;  %v3044_v35 = vmul.f32 0.35355338, %v2936_v21 }
 0xd1b   :  { %3095 = vmax.xlane.f32.xlu1 %v3094_v14  ;;  %v9368_v36 = vadd.f32 %v3045_v31, %v8804_v23 }
 0xd1c   :  { %v9373_v41 = vadd.f32 %v3044_v35, %v8804_v23 }
 0xd1d   :  { %v7439_v28 = vpop.f32.mrb[24].mxu0  ;;  %v3103_v20 = vsel %vm872_vm4, %v9368_v36, -inf }
 0xd1e   :  { %v3047_v1 = vmul.f32 0.35355338, %v7439_v28  ;;  %v3023_v38 = vpop.f32.mrb[25].mxu0  ;;  %3092 = vmax.xlane.f32.xlu0 %v3091_v30  ;;  %v3100_v50 = vsel %vm872_vm4, %v9373_v41, -inf }
 0xd1f   :  { %v3046_v16 = vmul.f32 0.35355338, %v3023_v38  ;;  %3089 = vmax.xlane.f32.xlu1 %v3088_v42 }
 0xd20   :  { %v9362_v44 = vadd.f32 %v3047_v1, %v8804_v23 }
 0xd21   :  { %v9365_v15 = vadd.f32 %v3046_v16, %v8804_v23 }
 0xd22   :  { %v3109_v59 = vsel %vm872_vm4, %v9362_v44, -inf }
 0xd23   :  { %3110 = vmax.xlane.f32.xlu0 %v3109_v59  ;;  %v3106_v12 = vsel %vm872_vm4, %v9365_v15, -inf }
 0xd24   :  { %3107 = vmax.xlane.f32.xlu1 %v3106_v12 }
 0xd27   :  { %3104 = vmax.xlane.f32.xlu0 %v3103_v20 }
 0xd28   :  { %3101 = vmax.xlane.f32.xlu1 %v3100_v50 }
 0xd38   :  { %v3069_v26 = vpop.xlane.xlu1 %3068 }
 0xd39   :  { %8125 = vrot.lane.b32.xlu1 %v9216_v0, %s8594_s19  ;;  %v3066_v58 = vpop.xlane.xlu0 %3065  ;;  %v3113_v34 = vsub.f32 %v9302_v43, %v3069_v26 }
 0xd3a   :  { %v3112_v56 = vsub.f32 %v9305_v24, %v3066_v58 }
 0xd3b   :  { %v3130_v60 = vmul.f32 1.442695, %v3113_v34 }
 0xd3c   :  { %v3128_v3 = vmul.f32 1.442695, %v3112_v56 }
 0xd3d   :  { %8120 = vrot.lane.b32.xlu0 %v9206_v62, %s8594_s19  ;;  %8403 = vpow2.f32 %v3130_v60 }
 0xd3e   :  { %8405 = vpow2.f32 %v3128_v3 }
 0xd40   :  { %v3075_v54 = vpop.xlane.xlu0 %3074 }
 0xd41   :  { %v3115_v61 = vsub.f32 %v9312_v4, %v3075_v54 }
 0xd43   :  { %v3134_v52 = vmul.f32 1.442695, %v3115_v61 }
 0xd44   :  { %v3072_v27 = vpop.xlane.xlu0 %3071 }
 0xd45   :  { %v3114_v57 = vsub.f32 %v9315_v40, %v3072_v27  ;;  %8407 = vpow2.f32 %v3134_v52 }
 0xd47   :  { %v3132_v0 = vmul.f32 1.442695, %v3114_v57  ;;  %v9389_v62 = vpop.eup %8403 }
 0xd48   :  { %v9391_v21 = vpop.eup %8405  ;;  %v3163_v43 = vsel %vm872_vm4, %v9389_v62, 0.0 }
 0xd49   :  { %8409 = vpow2.f32 %v3132_v0  ;;  %v3160_v4 = vsel %vm872_vm4, %v9391_v21, 0.0 }
 0xd4f   :  { %v9395_v24 = vpop.eup %8407 }
 0xd50   :  { %v3169_v32 = vsel %vm872_vm4, %v9395_v24, 0.0 }
 0xd53   :  { %v9399_v40 = vpop.eup %8409 }
 0xd54   :  { %v3166_v14 = vsel %vm872_vm4, %v9399_v40, 0.0 }
 0xd5c   :  { %3164 = vadd.xlane.f32.xlu0 %v3163_v43 }
 0xd5d   :  { %3161 = vadd.xlane.f32.xlu1 %v3160_v4 }
 0xd60   :  { %3170 = vadd.xlane.f32.xlu0 %v3169_v32 }
 0xd61   :  { %3167 = vadd.xlane.f32.xlu1 %v3166_v14 }
 0xd9f   :  { %v3087_v28 = vpop.xlane.xlu0 %3086 }
 0xda0   :  { %v3119_v30 = vsub.f32 %v9322_v39, %v3087_v28  ;;  %v3084_v31 = vpop.xlane.xlu1 %3083 }
 0xda1   :  { %v3118_v1 = vsub.f32 %v9325_v48, %v3084_v31 }
 0xda2   :  { %v3142_v38 = vmul.f32 1.442695, %v3119_v30 }
 0xda3   :  { %v3140_v42 = vmul.f32 1.442695, %v3118_v1  ;;  %v3081_v35 = vpop.xlane.xlu0 %3080 }
 0xda4   :  { %8411 = vpow2.f32 %v3142_v38  ;;  %v3117_v16 = vsub.f32 %v9328_v49, %v3081_v35  ;;  %v3078_v59 = vpop.xlane.xlu1 %3077 }
 0xda5   :  { %8413 = vpow2.f32 %v3140_v42  ;;  %v3116_v12 = vsub.f32 %v9333_v51, %v3078_v59 }
 0xda6   :  { %v3138_v20 = vmul.f32 1.442695, %v3117_v16 }
 0xda7   :  { %v3136_v50 = vmul.f32 1.442695, %v3116_v12  ;;  %v3099_v58 = vpop.xlane.xlu0 %3098 }
 0xda8   :  { %8415 = vpow2.f32 %v3138_v20  ;;  %v3123_v54 = vsub.f32 %v9342_v13, %v3099_v58  ;;  %v3096_v39 = vpop.xlane.xlu1 %3095 }
 0xda9   :  { %8417 = vpow2.f32 %v3136_v50  ;;  %v3122_v48 = vsub.f32 %v9345_v46, %v3096_v39 }
 0xdaa   :  { %v3150_v26 = vmul.f32 1.442695, %v3123_v54 }
 0xdab   :  { %v3148_v34 = vmul.f32 1.442695, %v3122_v48  ;;  %v3093_v56 = vpop.xlane.xlu0 %3092 }
 0xdac   :  { %8419 = vpow2.f32 %v3150_v26  ;;  %v3121_v49 = vsub.f32 %v9348_v19, %v3093_v56  ;;  %v3090_v27 = vpop.xlane.xlu1 %3089 }
 0xdad   :  { %8421 = vpow2.f32 %v3148_v34  ;;  %v3120_v51 = vsub.f32 %v9353_v55, %v3090_v27 }
 0xdae   :  { %v9413_v60 = vpop.eup %8411  ;;  %v3146_v61 = vmul.f32 1.442695, %v3121_v49 }
 0xdaf   :  { %v9415_v3 = vpop.eup %8413  ;;  %v3144_v13 = vmul.f32 1.442695, %v3120_v51  ;;  %v3181_v57 = vsel %vm872_vm4, %v9413_v60, 0.0 }
 0xdb0   :  { %8423 = vpow2.f32 %v3146_v61  ;;  %v3111_v46 = vpop.xlane.xlu0 %3110  ;;  %3182 = vadd.xlane.f32.xlu0 %v3181_v57  ;;  %v3178_v52 = vsel %vm872_vm4, %v9415_v3, 0.0 }
 0xdb1   :  { %8425 = vpow2.f32 %v3144_v13  ;;  %v3127_v19 = vsub.f32 %v9362_v44, %v3111_v46  ;;  %v3108_v0 = vpop.xlane.xlu1 %3107  ;;  %3179 = vadd.xlane.f32.xlu1 %v3178_v52 }
 0xdb2   :  { %v9422_v55 = vpop.eup %8415  ;;  %v3126_v43 = vsub.f32 %v9365_v15, %v3108_v0 }
 0xdb3   :  { %v9425_v4 = vpop.eup %8417  ;;  %v3158_v32 = vmul.f32 1.442695, %v3127_v19  ;;  %v3175_v14 = vsel %vm872_vm4, %v9422_v55, 0.0 }
 0xdb4   :  { %v3156_v28 = vmul.f32 1.442695, %v3126_v43  ;;  %v3105_v30 = vpop.xlane.xlu0 %3104  ;;  %3176 = vadd.xlane.f32.xlu0 %v3175_v14  ;;  %v3172_v31 = vsel %vm872_vm4, %v9425_v4, 0.0  ;;  %v8113_v14 = vunpack.i.h.bf16 %v9292_v63 }
 0xdb5   :  { %8427 = vpow2.f32 %v3158_v32  ;;  %v3125_v44 = vsub.f32 %v9368_v36, %v3105_v30  ;;  %v3102_v1 = vpop.xlane.xlu1 %3101  ;;  %3173 = vadd.xlane.f32.xlu1 %v3172_v31 }
 0xdb6   :  { %v9432_v38 = vpop.eup %8419  ;;  %8429 = vpow2.f32 %v3156_v28  ;;  %v3124_v15 = vsub.f32 %v9373_v41, %v3102_v1  ;;  %v8112_v28 = vunpack.i.l.bf16 %v9292_v63 }
 0xdb7   :  { %v9435_v42 = vpop.eup %8421  ;;  %v3154_v35 = vmul.f32 1.442695, %v3125_v44  ;;  %v3193_v16 = vsel %vm872_vm4, %v9432_v38, 0.0 }
 0xdb8   :  { %v3152_v59 = vmul.f32 1.442695, %v3124_v15  ;;  %v8121_v12 = vpop.permute.xlu0 %8120  ;;  %3194 = vadd.xlane.f32.xlu0 %v3193_v16  ;;  %v3190_v20 = vsel %vm872_vm4, %v9435_v42, 0.0  ;;  %v7836_v15 = vpack.c.bf16 %v8113_v14, %v8112_v28 }
 0xdb9   :  { %8431 = vpow2.f32 %v3154_v35  ;;  %v8123_v36 = vunpack.i.h.bf16 %v8121_v12  ;;  %v8122_v50 = vunpack.i.l.bf16 %v8121_v12  ;;  %3191 = vadd.xlane.f32.xlu1 %v3190_v20  ;;  %v8126_v57 = vpop.permute.xlu1 %8125 }
 0xdba   :  { %v9441_v58 = vpop.eup %8423  ;;  %8433 = vpow2.f32 %v3152_v59  ;;  %v8128_v44 = vunpack.i.h.bf16 %v8126_v57  ;;  %v8127_v1 = vunpack.i.l.bf16 %v8126_v57 }
 0xdbb   :  { %v9443_v41 = vpop.eup %8425  ;;  %v3187_v54 = vsel %vm872_vm4, %v9441_v58, 0.0  ;;  %v9447_v39 = vpack.c.bf16 %v8123_v36, %v8122_v50 }
 0xdbc   :  { %3188 = vadd.xlane.f32.xlu0 %v3187_v54  ;;  %v3184_v48 = vsel %vm872_vm4, %v9443_v41, 0.0 }
 0xdbd   :  { %7841 = vmatprep.subr.bf16.mxu0 %v9447_v39  ;;  %3185 = vadd.xlane.f32.xlu1 %v3184_v48 }
 0xdbf   :  { %v9452_v26 = vpop.eup %8427 }
 0xdc0   :  { %v9454_v34 = vpop.eup %8429  ;;  %v3205_v56 = vsel %vm872_vm4, %v9452_v26, 0.0 }
 0xdc1   :  { %3206 = vadd.xlane.f32.xlu0 %v3205_v56  ;;  %v3202_v49 = vsel %vm872_vm4, %v9454_v34, 0.0 }
 0xdc2   :  { %3203 = vadd.xlane.f32.xlu1 %v3202_v49 }
 0xdc3   :  { %v9460_v27 = vpop.eup %8431 }
 0xdc4   :  { %v9462_v51 = vpop.eup %8433  ;;  %v3199_v61 = vsel %vm872_vm4, %v9460_v27, 0.0 }
 0xdc5   :  { %3200 = vadd.xlane.f32.xlu0 %v3199_v61  ;;  %v3196_v13 = vsel %vm872_vm4, %v9462_v51, 0.0 }
 0xdc6   :  { %3197 = vadd.xlane.f32.xlu1 %v3196_v13 }
 0xdd7   :  { %8135 = vrot.lane.b32.xlu1 %v9234_v25, %s8594_s19 }
 0xddb   :  { %8130 = vrot.lane.b32.xlu0 %v9226_v2, %s8594_s19 }
 0xde9   :  { %v3165_v46 = vpop.xlane.xlu0 %3164 }
 0xdea   :  { %8435 = vrcp.f32 %v3165_v46  ;;  %v3162_v52 = vpop.xlane.xlu1 %3161 }
 0xdeb   :  { %8437 = vrcp.f32 %v3162_v52 }
 0xded   :  { %v3171_v19 = vpop.xlane.xlu0 %3170 }
 0xdee   :  { %8439 = vrcp.f32 %v3171_v19  ;;  %v3168_v0 = vpop.xlane.xlu1 %3167 }
 0xdef   :  { %8441 = vrcp.f32 %v3168_v0 }
 0xdf4   :  { %v8436_v43 = vpop.eup %8435 }
 0xdf5   :  { %v8438_v32 = vpop.eup %8437  ;;  %v3225_v30 = vmul.f32 %v8436_v43, %v9389_v62  ;;  %v7844_v62 = vpack.c.bf16 %v8128_v44, %v8127_v1 }
 0xdf6   :  { %v3224_v25 = vmul.f32 %v8438_v32, %v9391_v21 }
 0xdf8   :  { %v8440_v2 = vpop.eup %8439  ;;  %7444 = vmatprep.mubr.msk.f32.mxu1 %vm872_vm4, %v3224_v25 }
 0xdf9   :  { %v8442_v31 = vpop.eup %8441  ;;  %7445 = vmatmul.mubr.msk.f32.vlgmr.msra.gmra.mrb[42].mxu1 %vm872_vm4, %v3225_v30  ;;  %v3227_v63 = vmul.f32 %v8440_v2, %v9395_v24 }
 0xdfa   :  { %7831 = vmatpush3.bf16.msra.mxu1 %v9296_v29  ;;  %v3226_v35 = vmul.f32 %v8442_v31, %v9399_v40 }
 0xdfb   :  { %7837 = vmatprep.subr.bf16.mxu1 %v7836_v15 }
 0xdfc   :  { %7451 = vmatprep.mubr.msk.f32.mxu1 %vm872_vm4, %v3226_v35 }
 0xdfd   :  { %7452 = vmatmul.mubr.msk.f32.vlgmr.msra.gmra.mrb[44].mxu1 %vm872_vm4, %v3227_v63 }
 0xdfe   :  { %7839 = vmatpush3.bf16.msra.mxu1 %v7836_v15 }
 0xdff   :  { %7845 = vmatprep.subr.bf16.mxu1 %v7844_v62 }
 0xe3d   :  { %v3183_v21 = vpop.xlane.xlu0 %3182 }
 0xe3e   :  { %8443 = vrcp.f32 %v3183_v21  ;;  %v3180_v16 = vpop.xlane.xlu1 %3179 }
 0xe3f   :  { %8445 = vrcp.f32 %v3180_v16 }
 0xe41   :  { %v3177_v59 = vpop.xlane.xlu0 %3176 }
 0xe42   :  { %8447 = vrcp.f32 %v3177_v59  ;;  %v3174_v12 = vpop.xlane.xlu1 %3173 }
 0xe43   :  { %8449 = vrcp.f32 %v3174_v12 }
 0xe45   :  { %v3195_v29 = vpop.xlane.xlu0 %3194 }
 0xe46   :  { %8451 = vrcp.f32 %v3195_v29  ;;  %v3192_v40 = vpop.xlane.xlu1 %3191 }
 0xe47   :  { %8453 = vrcp.f32 %v3192_v40 }
 0xe48   :  { %v8444_v24 = vpop.eup %8443 }
 0xe49   :  { %v8446_v20 = vpop.eup %8445  ;;  %v3189_v36 = vpop.xlane.xlu0 %3188  ;;  %v3231_v48 = vmul.f32 %v8444_v24, %v9413_v60 }
 0xe4a   :  { %8455 = vrcp.f32 %v3189_v36  ;;  %v3186_v50 = vpop.xlane.xlu1 %3185  ;;  %v3230_v54 = vmul.f32 %v8446_v20, %v9415_v3  ;;  %v8295_v36 = vld [vmem:[%s10105_s2 + $0x10] sm:$0xff]  }
 0xe4b   :  { %8457 = vrcp.f32 %v3186_v50 }
 0xe4c   :  { %v8448_v56 = vpop.eup %8447  ;;  %7465 = vmatprep.mubr.msk.f32.mxu1 %vm872_vm4, %v3230_v54 }
 0xe4d   :  { %v8450_v49 = vpop.eup %8449  ;;  %7466 = vmatmul.mubr.msk.f32.vlgmr.msra.gmra.mrb[46].mxu1 %vm872_vm4, %v3231_v48  ;;  %v3229_v46 = vmul.f32 %v8448_v56, %v9422_v55  ;;  %v8296_v56 = vld [vmem:[%s10105_s2 + $0x18] sm:$0xff]  }
 0xe4e   :  { %v3207_v61 = vpop.xlane.xlu0 %3206  ;;  %7847 = vmatpush3.bf16.msra.mxu1 %v7844_v62  ;;  %v3228_v13 = vmul.f32 %v8450_v49, %v9425_v4 }
 0xe4f   :  { %v3204_v57 = vpop.xlane.xlu1 %3203 }
 0xe50   :  { %v8452_v52 = vpop.eup %8451  ;;  %8459 = vrcp.f32 %v3204_v57  ;;  %7458 = vmatprep.mubr.msk.f32.mxu0 %vm872_vm4, %v3228_v13 }
 0xe51   :  { %v8454_v3 = vpop.eup %8453  ;;  %8461 = vrcp.f32 %v3207_v61  ;;  %7459 = vmatmul.mubr.msk.f32.vlgmr.msra.gmra.mrb[26].mxu0 %vm872_vm4, %v3229_v46  ;;  %v3235_v4 = vmul.f32 %v8452_v52, %v9432_v38 }
 0xe52   :  { %v3201_v60 = vpop.xlane.xlu0 %3200  ;;  %7843 = vmatpush3.bf16.msra.mxu0 %v9447_v39  ;;  %v3234_v19 = vmul.f32 %v8454_v3, %v9435_v42 }
 0xe53   :  { %8463 = vrcp.f32 %v3201_v60  ;;  %v3198_v0 = vpop.xlane.xlu1 %3197 }
 0xe54   :  { %v8456_v43 = vpop.eup %8455  ;;  %8465 = vrcp.f32 %v3198_v0  ;;  %7479 = vmatprep.mubr.msk.f32.mxu1 %vm872_vm4, %v3234_v19 }
 0xe55   :  { %v8458_v55 = vpop.eup %8457  ;;  %7480 = vmatmul.mubr.msk.f32.vlgmr.msra.gmra.mrb[48].mxu1 %vm872_vm4, %v3235_v4  ;;  %v3233_v39 = vmul.f32 %v8456_v43, %v9441_v58 }
 0xe56   :  { %v8131_v32 = vpop.permute.xlu0 %8130  ;;  %v3232_v14 = vmul.f32 %v8458_v55, %v9443_v41 }
 0xe57   :  { %v8133_v28 = vunpack.i.h.bf16 %v8131_v32  ;;  %v8132_v25 = vunpack.i.l.bf16 %v8131_v32  ;;  %v8136_v30 = vpop.permute.xlu1 %8135 }
 0xe58   :  { %v8138_v42 = vunpack.i.h.bf16 %v8136_v30  ;;  %v8137_v2 = vunpack.i.l.bf16 %v8136_v30  ;;  %7472 = vmatprep.mubr.msk.f32.mxu0 %vm872_vm4, %v3232_v14 }
 0xe59   :  { %7473 = vmatmul.mubr.msk.f32.vlgmr.msra.gmra.mrb[28].mxu0 %vm872_vm4, %v3233_v39  ;;  %v7848_v38 = vpack.c.bf16 %v8133_v28, %v8132_v25 }
 0xe5a   :  { %v8460_v31 = vpop.eup %8459  ;;  %v7852_v44 = vpack.c.bf16 %v8138_v42, %v8137_v2 }
 0xe5b   :  { %v8462_v1 = vpop.eup %8461  ;;  %7849 = vmatprep.subr.bf16.mxu0 %v7848_v38  ;;  %v3238_v15 = vmul.f32 %v8460_v31, %v9454_v34 }
 0xe5c   :  { %7851 = vmatpush3.bf16.msra.mxu0 %v7848_v38  ;;  %7853 = vmatprep.subr.bf16.mxu1 %v7852_v44  ;;  %v3239_v35 = vmul.f32 %v8462_v1, %v9452_v26 }
 0xe5d   :  { %v8464_v41 = vpop.eup %8463  ;;  %7855 = vmatpush3.bf16.msra.mxu1 %v7852_v44  ;;  %7493 = vmatprep.mubr.msk.f32.mxu1 %vm872_vm4, %v3238_v15 }
 0xe5e   :  { %v8466_v58 = vpop.eup %8465  ;;  %v3237_v62 = vmul.f32 %v8464_v41, %v9460_v27  ;;  %7496 = vmatprep.subr.bf16.mxu0 %v8295_v36 }
 0xe5f   :  { %v3236_v63 = vmul.f32 %v8466_v58, %v9462_v51 }
 0xe60   :  { %7494 = vmatmul.mubr.msk.f32.vlgmr.msra.gmra.mrb[50].mxu1 %vm872_vm4, %v3239_v35 }
 0xe61   :  { %7486 = vmatprep.mubr.msk.f32.mxu0 %vm872_vm4, %v3236_v63 }
 0xe62   :  { %7487 = vmatmul.mubr.msk.f32.vlgmr.msra.gmra.mrb[30].mxu0 %vm872_vm4, %v3237_v62 }
 0xe63   :  { %7497 = vmatpush3.bf16.msra.mxu0 %v8295_v36 }
 0xe64   :  { %7498 = vmatprep.subr.bf16.mxu0 %v8296_v56 }
 0xe67   :  { %7499 = vmatpush3.bf16.msra.mxu0 %v8296_v56 }
 0xecc   :  { %v7446_v34 = vpop.f32.mrb[42].mxu1 }
 0xecd   :  { %v3318_v21 = vpop.f32.mrb[43].mxu1 }
 0xed0   :  { %v7453_v16 = vpop.f32.mrb[44].mxu1 }
 0xed1   :  { %v3405_v59 = vpop.f32.mrb[45].mxu1 }
 0xf20   :  { %v7467_v12 = vpop.f32.mrb[46].mxu1 }
 0xf21   :  { %v3579_v29 = vpop.f32.mrb[47].mxu1 }
 0xf22   :  { %v8139_v40 = vpack.i.bf16 %v7467_v12, %v3579_v29 }
 0xf24   :  { %8140 = vrot.lane.b32.xlu1 %v8139_v40, %s8596_s20  ;;  %v7460_v26 = vpop.f32.mrb[26].mxu0 }
 0xf25   :  { %v3492_v24 = vpop.f32.mrb[27].mxu0 }
 0xf26   :  { %v8144_v51 = vpack.i.bf16 %v7460_v26, %v3492_v24  ;;  %v9537_v24 = vld [vmem:[%s10109_s6 + $0x10] sm:$0xff] }
 0xf28   :  { %8145 = vrot.lane.b32.xlu0 %v8144_v51, %s8596_s20  ;;  %v7481_v20 = vpop.f32.mrb[48].mxu1  ;;  %v4006_v51 = vrot.slane %v9537_v24, %v9042_v8 }
 0xf29   :  { %v3753_v27 = vpop.f32.mrb[49].mxu1 }
 0xf2a   :  { %v8149_v50 = vpack.i.bf16 %v7481_v20, %v3753_v27 }
 0xf2c   :  { %v7474_v54 = vpop.f32.mrb[28].mxu0  ;;  %8150 = vrot.lane.b32.xlu1 %v8149_v50, %s8597_s25 }
 0xf2d   :  { %v3666_v48 = vpop.f32.mrb[29].mxu0 }
 0xf2e   :  { %v8154_v49 = vpack.i.bf16 %v7474_v54, %v3666_v48 }
 0xf30   :  { %8155 = vrot.lane.b32.xlu0 %v8154_v49, %s8597_s25 }
 0xf33   :  { %v7495_v61 = vpop.f32.mrb[50].mxu1 }
 0xf34   :  { %v3927_v13 = vpop.f32.mrb[51].mxu1 }
 0xf35   :  { %v8164_v57 = vpack.i.bf16 %v7495_v61, %v3927_v13  ;;  %v7488_v46 = vpop.f32.mrb[30].mxu0 }
 0xf36   :  { %v3840_v52 = vpop.f32.mrb[31].mxu0 }
 0xf37   :  { %v8159_v3 = vpack.i.bf16 %v7488_v46, %v3840_v52  ;;  %8165 = vrot.lane.b32.xlu1 %v8164_v57, %s8598_s26 }
 0xf39   :  { %8160 = vrot.lane.b32.xlu0 %v8159_v3, %s8598_s26 }
 0xf96   :  { %v8141_v60 = vpop.permute.xlu1 %8140 }
 0xf97   :  { %v8143_v4 = vunpack.i.h.bf16 %v8141_v60  ;;  %v8142_v43 = vunpack.i.l.bf16 %v8141_v60 }
 0xf99   :  { %v3987_v2 = vsel %vm147_vm1, %v7453_v16, %v8143_v4  ;;  %v3986_v38 = vsel %vm147_vm1, %v3405_v59, %v8142_v43 }
 0xf9a   :  { %v8146_v19 = vpop.permute.xlu0 %8145 }
 0xf9b   :  { %v8148_v32 = vunpack.i.h.bf16 %v8146_v19  ;;  %v8147_v14 = vunpack.i.l.bf16 %v8146_v19 }
 0xf9d   :  { %v3985_v1 = vsel %vm147_vm1, %v7446_v34, %v8148_v32  ;;  %v3984_v15 = vsel %vm147_vm1, %v3318_v21, %v8147_v14 }
 0xf9e   :  { %v8151_v0 = vpop.permute.xlu1 %8150 }
 0xf9f   :  { %v8153_v28 = vunpack.i.h.bf16 %v8151_v0  ;;  %v8152_v25 = vunpack.i.l.bf16 %v8151_v0 }
 0xfa1   :  { %v3991_v41 = vsel %vm872_vm4, %v3987_v2, %v8153_v28  ;;  %v3990_v58 = vsel %vm872_vm4, %v3986_v38, %v8152_v25 }
 0xfa2   :  { %v8156_v55 = vpop.permute.xlu0 %8155 }
 0xfa3   :  { %v8158_v30 = vunpack.i.h.bf16 %v8156_v55  ;;  %v8157_v39 = vunpack.i.l.bf16 %v8156_v55 }
 0xfa5   :  { %v3989_v16 = vsel %vm872_vm4, %v3985_v1, %v8158_v30  ;;  %v3988_v59 = vsel %vm872_vm4, %v3984_v15, %v8157_v39  ;;  %v8297_v15 = vld [vmem:[%s10106_s3 + $0x10] sm:$0xff]  }
 0xfa6   :  { %7504 = vmatprep.subr.bf16.mxu1 %v8297_v15 }
 0xfa7   :  { %7505 = vmatpush3.bf16.msra.mxu1 %v8297_v15 }
 0xfa9   :  { %v8166_v42 = vpop.permute.xlu1 %8165 }
 0xfaa   :  { %v8168_v31 = vunpack.i.h.bf16 %v8166_v42  ;;  %v8167_v44 = vunpack.i.l.bf16 %v8166_v42 }
 0xfab   :  { %v8161_v35 = vpop.permute.xlu0 %8160 }
 0xfac   :  { %v3995_v63 = vsel %vm1801_vm5, %v3991_v41, %v8168_v31  ;;  %v3994_v62 = vsel %vm1801_vm5, %v3990_v58, %v8167_v44  ;;  %v8163_v12 = vunpack.i.h.bf16 %v8161_v35  ;;  %v8162_v29 = vunpack.i.l.bf16 %v8161_v35  ;;  %v8298_v41 = vld [vmem:[%s10106_s3 + $0x18] sm:$0xff]   ;;  %v8299_v58 = vld [vmem:[%s10107_s4 + $0x40] sm:$0xff]   ;;  %v8300_v35 = vld [vmem:[%s10107_s4 + $0x48] sm:$0xff]  }
 0xfad   :  { %v4002_v40 = vpack.c.bf16 %v3995_v63, %v3994_v62  ;;  %7506 = vmatprep.subr.bf16.mxu1 %v8298_v41  ;;  %7512 = vmatprep.subr.bf16.mxu0 %v8299_v58  ;;  %v8301_v63 = vld [vmem:[%s10107_s4 + $0x50] sm:$0xff]   ;;  %v8302_v62 = vld [vmem:[%s10107_s4 + $0x58] sm:$0xff]  }
 0xfae   :  { %v3993_v34 = vsel %vm1801_vm5, %v3989_v16, %v8163_v12  ;;  %v3992_v21 = vsel %vm1801_vm5, %v3988_v59, %v8162_v29  ;;  %7507 = vmatpush3.bf16.msra.mxu1 %v8298_v41  ;;  %v8303_v12 = vld [vmem:[%s10107_s4 + $0x60] sm:$0xff]   ;;  %v8304_v29 = vld [vmem:[%s10107_s4 + $0x68] sm:$0xff]  }
 0xfaf   :  { %v4001_v26 = vpack.c.bf16 %v3993_v34, %v3992_v21 }
 0xfb1   :  { %7500 = vmatprep.mubr.msk.bf16.mxu0 %vm59_vm0, %v4001_v26 }
 0xfb2   :  { %7501 = vmatmul.mubr.msk.bf16.vlgmr.msra.gmra.mrb[32].mxu0 %vm59_vm0, %v4002_v40 }
 0xfb3   :  { %7513 = vmatpush3.bf16.msra.mxu0 %v8299_v58 }
 0xfb4   :  { %7514 = vmatprep.subr.bf16.mxu0 %v8300_v35 }
 0xfb7   :  { %7515 = vmatpush3.bf16.msra.mxu0 %v8300_v35 }
 0xfb8   :  { %7516 = vmatprep.subr.bf16.mxu0 %v8301_v63 }
 0xfbb   :  { %7517 = vmatpush3.bf16.msra.mxu0 %v8301_v63 }
 0xfbc   :  { %7518 = vmatprep.subr.bf16.mxu0 %v8302_v62 }
 0xfbf   :  { %7519 = vmatpush3.bf16.msra.mxu0 %v8302_v62 }
 0xfc0   :  { %7520 = vmatprep.subr.bf16.mxu0 %v8303_v12 }
 0xfc3   :  { %7521 = vmatpush3.bf16.msra.mxu0 %v8303_v12  ;;  %v4250_v12 = vrot.slane %v9537_v24, %v9134_v18 }
 0xfc4   :  { %7522 = vmatprep.subr.bf16.mxu0 %v8304_v29 }
 0xfc7   :  { %7523 = vmatpush3.bf16.msra.mxu0 %v8304_v29 }
0x1085   :  { %v7502_v20 = vpop.f32.mrb[32].mxu0 }
0x1086   :  { %v4059_v27 = vpop.f32.mrb[33].mxu0  ;;  %v4068_v36 = vadd.f32 %v7502_v20, %v4006_v51 }
0x1087   :  { %v4060_v50 = vadd.f32 %v4059_v27, %v4006_v51  ;;  %v7503_v54 = vpop.f32.mrb[34].mxu0 }
0x1088   :  { %v4062_v48 = vpop.f32.mrb[35].mxu0  ;;  %v4076_v61 = vadd.f32 %v4068_v36, %v9169_v45  ;;  %v4071_v13 = vadd.f32 %v7503_v54, %v4006_v51 }
0x1089   :  { %v4074_v56 = vadd.f32 %v4060_v50, %v9162_v11  ;;  %v4063_v49 = vadd.f32 %v4062_v48, %v4006_v51  ;;  %v4133_v48 = vrot.slane %v9537_v24, %v9108_v5 }
0x108a   :  { %v4077_v3 = vadd.f32 %v4071_v13, %v9171_v6  ;;  %v4084_v60 = vsel %vm59_vm0, %v4076_v61, 0.0 }
0x108b   :  { %v4075_v57 = vadd.f32 %v4063_v49, %v9164_v37  ;;  %v4078_v46 = vsel %vm59_vm0, %v4074_v56, 0.0 }
0x108c   :  { %4079 = vadd.xlane.f32.xlu0 %v4078_v46  ;;  %v4087_v19 = vsel %vm59_vm0, %v4077_v3, 0.0  ;;  %v4141_v46 = vrot.slane %v9537_v24, %v9113_v7 }
0x108d   :  { %v4081_v52 = vsel %vm59_vm0, %v4075_v57, 0.0 }
0x108e   :  { %4082 = vadd.xlane.f32.xlu1 %v4081_v52 }
0x1090   :  { %4085 = vadd.xlane.f32.xlu0 %v4084_v60 }
0x1094   :  { %4088 = vadd.xlane.f32.xlu0 %v4087_v19 }
0x1119   :  { %v4080_v11 = vpop.xlane.xlu0 %4079 }
0x111a   :  { %v4090_v0 = vmul.f32 0.03125, %v4080_v11 }
0x111b   :  { %v4083_v45 = vpop.xlane.xlu1 %4082 }
0x111c   :  { %v9549_v4 = vsub.f32 %v4074_v56, %v4090_v0  ;;  %v4091_v37 = vmul.f32 0.03125, %v4083_v45 }
0x111d   :  { %v4086_v43 = vpop.xlane.xlu0 %4085 }
0x111e   :  { %v4095_v55 = vsub.f32 %v4075_v57, %v4091_v37  ;;  %v4092_v32 = vmul.f32 0.03125, %v4086_v43  ;;  %v4098_v14 = vmul.f32 %v9549_v4, %v9549_v4 }
0x1120   :  { %v9553_v28 = vsub.f32 %v4076_v61, %v4092_v32  ;;  %v4102_v6 = vsel %vm59_vm0, %v4098_v14, 0.0  ;;  %v4099_v25 = vmul.f32 %v4095_v55, %v4095_v55 }
0x1121   :  { %4103 = vadd.xlane.f32.xlu1 %v4102_v6  ;;  %v4089_v30 = vpop.xlane.xlu0 %4088  ;;  %v8305_v6 = vld [vmem:[%s10107_s4 + $0x70] sm:$0xff]  }
0x1122   :  { %v4093_v39 = vmul.f32 0.03125, %v4089_v30  ;;  %v4105_v42 = vsel %vm59_vm0, %v4099_v25, 0.0  ;;  %v4100_v2 = vmul.f32 %v9553_v28, %v9553_v28  ;;  %7524 = vmatprep.subr.bf16.mxu0 %v8305_v6  ;;  %v4156_v25 = vrot.slane %v9537_v24, %v9129_v33 }
0x1123   :  { %4106 = vadd.xlane.f32.xlu0 %v4105_v42  ;;  %7525 = vmatpush3.bf16.msra.mxu0 %v8305_v6 }
0x1124   :  { %v4097_v38 = vsub.f32 %v4077_v3, %v4093_v39  ;;  %v4108_v31 = vsel %vm59_vm0, %v4100_v2, 0.0 }
0x1125   :  { %4109 = vadd.xlane.f32.xlu1 %v4108_v31 }
0x1126   :  { %v4101_v44 = vmul.f32 %v4097_v38, %v4097_v38 }
0x1128   :  { %v4111_v1 = vsel %vm59_vm0, %v4101_v44, 0.0 }
0x1129   :  { %4112 = vadd.xlane.f32.xlu0 %v4111_v1 }
0x11ae   :  { %v4104_v16 = vpop.xlane.xlu1 %4103 }
0x11af   :  { %v4114_v59 = vmul.f32 0.03125, %v4104_v16 }
0x11b0   :  { %v4107_v40 = vpop.xlane.xlu0 %4106 }
0x11b1   :  { %v4118_v34 = vadd.f32 1e-05, %v4114_v59  ;;  %v4115_v21 = vmul.f32 0.03125, %v4107_v40 }
0x11b2   :  { %v4110_v26 = vpop.xlane.xlu1 %4109 }
0x11b3   :  { %8467 = vrsqrt.f32 %v4118_v34  ;;  %v4119_v51 = vadd.f32 1e-05, %v4115_v21  ;;  %v4116_v20 = vmul.f32 0.03125, %v4110_v26 }
0x11b5   :  { %8469 = vrsqrt.f32 %v4119_v51  ;;  %v4120_v27 = vadd.f32 1e-05, %v4116_v20 }
0x11b6   :  { %v4113_v36 = vpop.xlane.xlu0 %4112 }
0x11b7   :  { %8471 = vrsqrt.f32 %v4120_v27  ;;  %v4117_v50 = vmul.f32 0.03125, %v4113_v36 }
0x11b9   :  { %v4121_v54 = vadd.f32 1e-05, %v4117_v50 }
0x11bb   :  { %8473 = vrsqrt.f32 %v4121_v54 }
0x11bd   :  { %v8468_v56 = vpop.eup %8467 }
0x11be   :  { %v4126_v49 = vmul.f32 %v8468_v56, %v9549_v4 }
0x11bf   :  { %v8470_v61 = vpop.eup %8469 }
0x11c0   :  { %v4127_v13 = vmul.f32 %v8470_v61, %v4095_v55  ;;  %v4134_v57 = vmul.f32 %v4133_v48, %v4126_v49 }
0x11c1   :  { %v8472_v52 = vpop.eup %8471 }
0x11c2   :  { %v4128_v3 = vmul.f32 %v8472_v52, %v9553_v28  ;;  %v4135_v60 = vmul.f32 %v4133_v48, %v4127_v13  ;;  %v4142_v19 = vadd.f32 %v4141_v46, %v4134_v57  ;;  %v8306_v28 = vld [vmem:[%s10107_s4 + $0x78] sm:$0xff]  }
0x11c3   :  { %7526 = vmatprep.subr.bf16.mxu0 %v8306_v28 }
0x11c4   :  { %v4143_v11 = vadd.f32 %v4141_v46, %v4135_v60  ;;  %v4136_v45 = vmul.f32 %v4133_v48, %v4128_v3  ;;  %7527 = vmatpush3.bf16.msra.mxu0 %v8306_v28 }
0x11c5   :  { %v8474_v0 = vpop.eup %8473 }
0x11c6   :  { %v4129_v37 = vmul.f32 %v8474_v0, %v4097_v38  ;;  %v4151_v43 = vpack.c.bf16 %v4143_v11, %v4142_v19  ;;  %v4144_v4 = vadd.f32 %v4141_v46, %v4136_v45 }
0x11c8   :  { %v4137_v32 = vmul.f32 %v4133_v48, %v4129_v37  ;;  %7508 = vmatprep.mubr.msk.bf16.mxu1 %vm59_vm0, %v4151_v43 }
0x11ca   :  { %v4145_v14 = vadd.f32 %v4141_v46, %v4137_v32 }
0x11cc   :  { %v4152_v55 = vpack.c.bf16 %v4145_v14, %v4144_v4 }
0x11ce   :  { %7509 = vmatmul.mubr.msk.bf16.vlgmr.msra.gmra.mrb[52].mxu1 %vm59_vm0, %v4152_v55 }
0x12a1   :  { %v7510_v30 = vpop.f32.mrb[52].mxu1 }
0x12a2   :  { %v4218_v39 = vadd.f32 %v7510_v30, %v4156_v25  ;;  %v4209_v42 = vpop.f32.mrb[53].mxu1  ;;  %v8307_v30 = vld [vmem:[%s10104_s1 + $0x20] sm:$0xff]  }
0x12a3   :  { %v4210_v2 = vadd.f32 %v4209_v42, %v4156_v25  ;;  %v7511_v38 = vpop.f32.mrb[54].mxu1  ;;  %7532 = vmatprep.subr.bf16.mxu1 %v8307_v30 }
0x12a4   :  { %v4221_v31 = vadd.f32 %v7511_v38, %v4156_v25  ;;  %v4212_v44 = vpop.f32.mrb[55].mxu1  ;;  %v4226_v15 = vmax.f32 %v4218_v39, 0.0  ;;  %7533 = vmatpush3.bf16.msra.mxu1 %v8307_v30  ;;  %v8308_v39 = vld [vmem:[%s10104_s1 + $0x28] sm:$0xff]  }
0x12a5   :  { %v4213_v1 = vadd.f32 %v4212_v44, %v4156_v25  ;;  %v4224_v58 = vmax.f32 %v4210_v2, 0.0  ;;  %7534 = vmatprep.subr.bf16.mxu1 %v8308_v39 }
0x12a6   :  { %v4227_v41 = vmax.f32 %v4221_v31, 0.0 }
0x12a7   :  { %v4225_v35 = vmax.f32 %v4213_v1, 0.0 }
0x12a8   :  { %v4246_v63 = vpack.c.bf16 %v4227_v41, %v4226_v15  ;;  %7535 = vmatpush3.bf16.msra.mxu1 %v8308_v39 }
0x12a9   :  { %v4245_v62 = vpack.c.bf16 %v4225_v35, %v4224_v58 }
0x12ab   :  { %7528 = vmatprep.mubr.bf16.mxu0 %v4245_v62 }
0x12ac   :  { %7529 = vmatmul.mubr.bf16.vlgmr.msra.gmra.mrb[36].mxu0 %v4246_v63 }
0x137f   :  { %v7530_v29 = vpop.f32.mrb[36].mxu0 }
0x1380   :  { %v4333_v16 = vpop.f32.mrb[37].mxu0  ;;  %v4342_v59 = vadd.f32 %v7530_v29, %v4250_v12 }
0x1381   :  { %v4334_v40 = vadd.f32 %v4333_v16, %v4250_v12  ;;  %v7531_v34 = vpop.f32.mrb[38].mxu0 }
0x1382   :  { %v4336_v21 = vpop.f32.mrb[39].mxu0  ;;  %v4345_v51 = vadd.f32 %v7531_v34, %v4250_v12  ;;  %v4350_v27 = vadd.f32 %v4342_v59, %v4144_v4 }
0x1383   :  { %v4348_v26 = vadd.f32 %v4334_v40, %v4142_v19  ;;  %v4337_v20 = vadd.f32 %v4336_v21, %v4250_v12  ;;  %v4407_v12 = vrot.slane %v9537_v24, %v9153_v17  ;;  %v4415_v21 = vrot.slane %v9537_v24, %v9158_v53 }
0x1384   :  { %v4351_v54 = vadd.f32 %v4345_v51, %v4145_v14  ;;  %v4358_v56 = vsel %vm59_vm0, %v4350_v27, 0.0 }
0x1385   :  { %v4349_v36 = vadd.f32 %v4337_v20, %v4143_v11  ;;  %v4352_v50 = vsel %vm59_vm0, %v4348_v26, 0.0 }
0x1386   :  { %4353 = vadd.xlane.f32.xlu1 %v4352_v50  ;;  %v4361_v49 = vsel %vm59_vm0, %v4351_v54, 0.0 }
0x1387   :  { %v4355_v48 = vsel %vm59_vm0, %v4349_v36, 0.0 }
0x1388   :  { %4356 = vadd.xlane.f32.xlu0 %v4355_v48 }
0x138a   :  { %4359 = vadd.xlane.f32.xlu1 %v4358_v56 }
0x138c   :  { %4362 = vadd.xlane.f32.xlu0 %v4361_v49 }
0x1413   :  { %v4354_v61 = vpop.xlane.xlu1 %4353 }
0x1414   :  { %v4364_v13 = vmul.f32 0.03125, %v4354_v61 }
0x1415   :  { %v4357_v57 = vpop.xlane.xlu0 %4356 }
0x1416   :  { %v4368_v46 = vsub.f32 %v4348_v26, %v4364_v13  ;;  %v4365_v52 = vmul.f32 0.03125, %v4357_v57  ;;  %v6856_v57 = vld [vmem:[%s10109_s6 + $0x20] sm:$0xff] }
0x1417   :  { %v4360_v3 = vpop.xlane.xlu1 %4359 }
0x1418   :  { %v4369_v60 = vsub.f32 %v4349_v36, %v4365_v52  ;;  %v4366_v19 = vmul.f32 0.03125, %v4360_v3  ;;  %v4372_v11 = vmul.f32 %v4368_v46, %v4368_v46 }
0x1419   :  { %v4363_v0 = vpop.xlane.xlu0 %4362 }
0x141a   :  { %v4370_v45 = vsub.f32 %v4350_v27, %v4366_v19  ;;  %v4367_v37 = vmul.f32 0.03125, %v4363_v0  ;;  %v4376_v43 = vsel %vm59_vm0, %v4372_v11, 0.0  ;;  %v4373_v32 = vmul.f32 %v4369_v60, %v4369_v60 }
0x141b   :  { %4377 = vadd.xlane.f32.xlu1 %v4376_v43 }
0x141c   :  { %v4371_v4 = vsub.f32 %v4351_v54, %v4367_v37  ;;  %v4379_v14 = vsel %vm59_vm0, %v4373_v32, 0.0  ;;  %v4374_v55 = vmul.f32 %v4370_v45, %v4370_v45 }
0x141d   :  { %4380 = vadd.xlane.f32.xlu0 %v4379_v14 }
0x141e   :  { %v4382_v6 = vsel %vm59_vm0, %v4374_v55, 0.0  ;;  %v4375_v28 = vmul.f32 %v4371_v4, %v4371_v4 }
0x141f   :  { %4383 = vadd.xlane.f32.xlu1 %v4382_v6 }
0x1420   :  { %v4385_v25 = vsel %vm59_vm0, %v4375_v28, 0.0 }
0x1421   :  { %4386 = vadd.xlane.f32.xlu0 %v4385_v25 }
0x14a8   :  { %v4378_v42 = vpop.xlane.xlu1 %4377 }
0x14a9   :  { %v4388_v2 = vmul.f32 0.03125, %v4378_v42 }
0x14aa   :  { %v4381_v38 = vpop.xlane.xlu0 %4380 }
0x14ab   :  { %v4392_v31 = vadd.f32 1e-05, %v4388_v2  ;;  %v4389_v44 = vmul.f32 0.03125, %v4381_v38 }
0x14ac   :  { %v4384_v1 = vpop.xlane.xlu1 %4383 }
0x14ad   :  { %8475 = vrsqrt.f32 %v4392_v31  ;;  %v4393_v15 = vadd.f32 1e-05, %v4389_v44  ;;  %v4390_v41 = vmul.f32 0.03125, %v4384_v1 }
0x14ae   :  { %v4387_v58 = vpop.xlane.xlu0 %4386 }
0x14af   :  { %8477 = vrsqrt.f32 %v4393_v15  ;;  %v4394_v35 = vadd.f32 1e-05, %v4390_v41  ;;  %v4391_v63 = vmul.f32 0.03125, %v4387_v58 }
0x14b1   :  { %8479 = vrsqrt.f32 %v4394_v35  ;;  %v4395_v62 = vadd.f32 1e-05, %v4391_v63 }
0x14b3   :  { %8481 = vrsqrt.f32 %v4395_v62 }
0x14b7   :  { %v8476_v29 = vpop.eup %8475 }
0x14b8   :  { %v4400_v16 = vmul.f32 %v8476_v29, %v4368_v46  ;;  %v4432_v46 = vrot.slane %v6856_v57, %v8667_v10 }
0x14b9   :  { %v8478_v59 = vpop.eup %8477 }
0x14ba   :  { %v4401_v40 = vmul.f32 %v8478_v59, %v4369_v60  ;;  %v4408_v34 = vmul.f32 %v4407_v12, %v4400_v16 }
0x14bb   :  { %v8480_v26 = vpop.eup %8479 }
0x14bc   :  { %v4402_v51 = vmul.f32 %v8480_v26, %v4370_v45  ;;  %v4409_v20 = vmul.f32 %v4407_v12, %v4401_v40  ;;  %v9621_v54 = vadd.f32 %v4415_v21, %v4408_v34 }
0x14bd   :  { %v8482_v27 = vpop.eup %8481 }
0x14be   :  { %v4410_v36 = vmul.f32 %v4407_v12, %v4402_v51  ;;  %v4403_v50 = vmul.f32 %v8482_v27, %v4371_v4  ;;  %v9623_v48 = vadd.f32 %v4415_v21, %v4409_v20 }
0x14c0   :  { %v4411_v56 = vmul.f32 %v4407_v12, %v4403_v50  ;;  %v4427_v49 = vpack.c.bf16 %v9623_v48, %v9621_v54  ;;  %v9628_v61 = vadd.f32 %v4415_v21, %v4410_v36 }
0x14c2   :  { %7536 = vmatprep.mubr.msk.bf16.mxu1 %vm59_vm0, %v4427_v49  ;;  %v9630_v13 = vadd.f32 %v4415_v21, %v4411_v56 }
0x14c4   :  { %v4428_v24 = vpack.c.bf16 %v9630_v13, %v9628_v61 }
0x14c6   :  { %7537 = vmatmul.mubr.msk.bf16.vlgmr.msra.gmra.mrb[56].mxu1 %vm59_vm0, %v4428_v24 }
0x1599   :  { %v7538_v52 = vpop.f32.mrb[56].mxu1 }
0x159a   :  { %v4485_v3 = vpop.f32.mrb[57].mxu1  ;;  %v4494_v45 = vadd.f32 %v7538_v52, %v4432_v46 }
0x159b   :  { %v4486_v60 = vadd.f32 %v4485_v3, %v4432_v46  ;;  %v7539_v19 = vpop.f32.mrb[58].mxu1 }
0x159c   :  { %v4488_v11 = vpop.f32.mrb[59].mxu1  ;;  %v4497_v37 = vadd.f32 %v7539_v19, %v4432_v46 }
0x159d   :  { %v4489_v0 = vadd.f32 %v4488_v11, %v4432_v46  ;;  %4504 = vrot.lane.b32.xlu1 %v4486_v60, %s8590_s15  ;;  %7544 = vmatprep.mubr.msk.f32.mxu1 %vm147_vm1, %v4486_v60 }
0x159e   :  { %v8174_v43 = vpack.i.bf16 %v4497_v37, %v4494_v45 }
0x159f   :  { %4506 = vrot.lane.b32.xlu0 %v4489_v0, %s8590_s15  ;;  %v8169_v10 = vpack.i.bf16 %v4489_v0, %v4486_v60 }
0x15a1   :  { %4508 = vrot.lane.b32.xlu1 %v4494_v45, %s8590_s15 }
0x15a3   :  { %4512 = vrot.lane.b32.xlu0 %v4486_v60, %s8591_s16 }
0x15a5   :  { %4510 = vrot.lane.b32.xlu1 %v4497_v37, %s8590_s15 }
0x15a7   :  { %4516 = vrot.lane.b32.xlu0 %v4494_v45, %s8591_s16 }
0x15a9   :  { %4514 = vrot.lane.b32.xlu1 %v4489_v0, %s8591_s16 }
0x15ab   :  { %4520 = vrot.lane.b32.xlu0 %v4486_v60, %s8592_s17 }
0x15ad   :  { %4518 = vrot.lane.b32.xlu1 %v4497_v37, %s8591_s16 }
0x15af   :  { %4524 = vrot.lane.b32.xlu0 %v4494_v45, %s8592_s17 }
0x15b1   :  { %4522 = vrot.lane.b32.xlu1 %v4489_v0, %s8592_s17 }
0x15b3   :  { %8170 = vrot.lane.b32.xlu0 %v8169_v10, %s8593_s18 }
0x15b5   :  { %4526 = vrot.lane.b32.xlu1 %v4497_v37, %s8592_s17 }
0x15b9   :  { %8175 = vrot.lane.b32.xlu1 %v8174_v43, %s8593_s18 }
0x160f   :  { %v4505_v32 = vpop.permute.xlu1 %4504 }
0x1611   :  { %v4507_v4 = vpop.permute.xlu0 %4506 }
0x1612   :  { %v8179_v14 = vpack.i.bf16 %v4507_v4, %v4505_v32 }
0x1613   :  { %v4509_v55 = vpop.permute.xlu1 %4508 }
0x1614   :  { %8180 = vrot.lane.b32.xlu0 %v8179_v14, %s8593_s18  ;;  %7565 = vmatprep.mubr.msk.f32.mxu0 %vm147_vm1, %v4509_v55 }
0x1615   :  { %v4513_v6 = vpop.permute.xlu0 %4512 }
0x1617   :  { %v9656_v28 = vpop.permute.xlu1 %4510 }
0x1618   :  { %v8184_v25 = vpack.i.bf16 %v9656_v28, %v4509_v55 }
0x1619   :  { %v9659_v30 = vpop.permute.xlu0 %4516 }
0x161a   :  { %8185 = vrot.lane.b32.xlu1 %v8184_v25, %s8593_s18 }
0x161b   :  { %v9662_v39 = vpop.permute.xlu1 %4514 }
0x161c   :  { %v9665_v42 = vpack.i.bf16 %v9662_v39, %v4513_v6 }
0x161d   :  { %v9667_v2 = vpop.permute.xlu0 %4520 }
0x161e   :  { %8190 = vrot.lane.b32.xlu0 %v9665_v42, %s8593_s18 }
0x161f   :  { %v9671_v38 = vpop.permute.xlu1 %4518 }
0x1620   :  { %v9675_v31 = vpack.i.bf16 %v9671_v38, %v9659_v30 }
0x1621   :  { %v9677_v44 = vpop.permute.xlu0 %4524 }
0x1622   :  { %8195 = vrot.lane.b32.xlu1 %v9675_v31, %s8593_s18 }
0x1623   :  { %v9681_v1 = vpop.permute.xlu1 %4522 }
0x1624   :  { %v9685_v15 = vpack.i.bf16 %v9681_v1, %v9667_v2 }
0x1625   :  { %v8171_v41 = vpop.permute.xlu0 %8170 }
0x1626   :  { %v8173_v58 = vunpack.i.h.bf16 %v8171_v41  ;;  %v8172_v35 = vunpack.i.l.bf16 %v8171_v41  ;;  %8200 = vrot.lane.b32.xlu0 %v9685_v15, %s8593_s18 }
0x1627   :  { %v9689_v63 = vpop.permute.xlu1 %4526 }
0x1628   :  { %v7856_v62 = vpack.c.bf16 %v8173_v58, %v8172_v35  ;;  %v9693_v12 = vpack.i.bf16 %v9689_v63, %v9677_v44 }
0x162a   :  { %7858 = vmatprep.subr.msk.bf16.mxu1 %vm8737_vm2, %v7856_v62  ;;  %8215 = vrot.lane.b32.xlu0 %v8174_v43, %s8594_s19 }
0x162b   :  { %8205 = vrot.lane.b32.xlu1 %v9693_v12, %s8593_s18  ;;  %7861 = vmatpush3.bf16.xpose.msk.msra.mxu1 %vm8737_vm2, %v7856_v62  ;;  %v8176_v29 = vpop.permute.xlu1 %8175 }
0x162c   :  { %v8178_v16 = vunpack.i.h.bf16 %v8176_v29  ;;  %v8177_v59 = vunpack.i.l.bf16 %v8176_v29 }
0x162e   :  { %v7862_v40 = vpack.c.bf16 %v8178_v16, %v8177_v59 }
0x162f   :  { %8210 = vrot.lane.b32.xlu1 %v8169_v10, %s8594_s19 }
0x1630   :  { %7864 = vmatprep.subr.msk.bf16.mxu1 %vm8737_vm2, %v7862_v40 }
0x1632   :  { %7545 = vmatmul.mubr.msk.f32.vlgmr.msra.gmra.mrb[60].mxu1 %vm147_vm1, %v4489_v0 }
0x1633   :  { %8220 = vrot.lane.b32.xlu1 %v8184_v25, %s8594_s19  ;;  %7867 = vmatpush3.bf16.xpose.msk.msra.mxu1 %vm8737_vm2, %v7862_v40 }
0x1634   :  { %7551 = vmatprep.mubr.msk.f32.mxu1 %vm147_vm1, %v4494_v45 }
0x1637   :  { %8225 = vrot.lane.b32.xlu1 %v8179_v14, %s8594_s19 }
0x163a   :  { %7552 = vmatmul.mubr.msk.f32.vlgmr.msra.gmra.mrb[62].mxu1 %vm147_vm1, %v4497_v37 }
0x163b   :  { %7558 = vmatprep.mubr.msk.f32.mxu1 %vm147_vm1, %v4505_v32 }
0x1686   :  { %v8181_v34 = vpop.permute.xlu0 %8180 }
0x1687   :  { %v8183_v21 = vunpack.i.h.bf16 %v8181_v34  ;;  %v8182_v26 = vunpack.i.l.bf16 %v8181_v34 }
0x1689   :  { %v7868_v51 = vpack.c.bf16 %v8183_v21, %v8182_v26 }
0x168b   :  { %7870 = vmatprep.subr.msk.bf16.mxu1 %vm8737_vm2, %v7868_v51 }
0x168c   :  { %v8186_v20 = vpop.permute.xlu1 %8185  ;;  %7873 = vmatpush3.bf16.xpose.msk.msra.mxu1 %vm8737_vm2, %v7868_v51 }
0x168d   :  { %v8188_v27 = vunpack.i.h.bf16 %v8186_v20  ;;  %v8187_v36 = vunpack.i.l.bf16 %v8186_v20 }
0x168f   :  { %v7874_v50 = vpack.c.bf16 %v8188_v27, %v8187_v36 }
0x1690   :  { %v8191_v56 = vpop.permute.xlu0 %8190 }
0x1691   :  { %v8193_v49 = vunpack.i.h.bf16 %v8191_v56  ;;  %v8192_v24 = vunpack.i.l.bf16 %v8191_v56  ;;  %7876 = vmatprep.subr.msk.bf16.mxu0 %vm8737_vm2, %v7874_v50 }
0x1692   :  { %7879 = vmatpush3.bf16.xpose.msk.msra.mxu0 %vm8737_vm2, %v7874_v50 }
0x1693   :  { %v7880_v57 = vpack.c.bf16 %v8193_v49, %v8192_v24  ;;  %7559 = vmatmul.mubr.msk.f32.vlgmr.msra.gmra.mrb[64].mxu1 %vm147_vm1, %v4507_v4 }
0x1694   :  { %v8196_v46 = vpop.permute.xlu1 %8195  ;;  %7572 = vmatprep.mubr.msk.f32.mxu1 %vm147_vm1, %v4513_v6 }
0x1695   :  { %v8198_v52 = vunpack.i.h.bf16 %v8196_v46  ;;  %v8197_v3 = vunpack.i.l.bf16 %v8196_v46  ;;  %7882 = vmatprep.subr.msk.bf16.mxu1 %vm8737_vm2, %v7880_v57 }
0x1696   :  { %7885 = vmatpush3.bf16.xpose.msk.msra.mxu1 %vm8737_vm2, %v7880_v57 }
0x1697   :  { %v7886_v60 = vpack.c.bf16 %v8198_v52, %v8197_v3 }
0x1698   :  { %v8201_v19 = vpop.permute.xlu0 %8200 }
0x1699   :  { %v8203_v11 = vunpack.i.h.bf16 %v8201_v19  ;;  %v8202_v0 = vunpack.i.l.bf16 %v8201_v19  ;;  %7566 = vmatmul.mubr.msk.f32.vlgmr.msra.gmra.mrb[40].mxu0 %vm147_vm1, %v9656_v28  ;;  %7888 = vmatprep.subr.msk.bf16.mxu0 %vm8737_vm2, %v7886_v60 }
0x169a   :  { %7891 = vmatpush3.bf16.xpose.msk.msra.mxu0 %vm8737_vm2, %v7886_v60  ;;  %7579 = vmatprep.mubr.msk.f32.mxu0 %vm147_vm1, %v9659_v30 }
0x169b   :  { %v7892_v45 = vpack.c.bf16 %v8203_v11, %v8202_v0 }
0x169c   :  { %v8216_v32 = vpop.permute.xlu0 %8215 }
0x169d   :  { %v8206_v37 = vpop.permute.xlu1 %8205  ;;  %7573 = vmatmul.mubr.msk.f32.vlgmr.msra.gmra.mrb[66].mxu1 %vm147_vm1, %v9662_v39  ;;  %7894 = vmatprep.subr.msk.bf16.mxu1 %vm8737_vm2, %v7892_v45  ;;  %v8218_v55 = vunpack.i.h.bf16 %v8216_v32  ;;  %v8217_v6 = vunpack.i.l.bf16 %v8216_v32 }
0x169e   :  { %v8208_v10 = vunpack.i.h.bf16 %v8206_v37  ;;  %v8207_v43 = vunpack.i.l.bf16 %v8206_v37  ;;  %7897 = vmatpush3.bf16.xpose.msk.msra.mxu1 %vm8737_vm2, %v7892_v45  ;;  %7586 = vmatprep.mubr.msk.f32.mxu1 %vm147_vm1, %v9667_v2 }
0x169f   :  { %v9755_v2 = vpack.c.bf16 %v8218_v55, %v8217_v6 }
0x16a0   :  { %v7898_v4 = vpack.c.bf16 %v8208_v10, %v8207_v43 }
0x16a1   :  { %v8211_v14 = vpop.permute.xlu1 %8210  ;;  %7580 = vmatmul.mubr.msk.f32.vlgmr.msra.gmra.mrb[42].mxu0 %vm147_vm1, %v9671_v38 }
0x16a2   :  { %v8213_v28 = vunpack.i.h.bf16 %v8211_v14  ;;  %v8212_v25 = vunpack.i.l.bf16 %v8211_v14  ;;  %7900 = vmatprep.subr.msk.bf16.mxu0 %vm8737_vm2, %v7898_v4  ;;  %7593 = vmatprep.mubr.msk.f32.mxu0 %vm147_vm1, %v9677_v44 }
0x16a3   :  { %7903 = vmatpush3.bf16.xpose.msk.msra.mxu0 %vm8737_vm2, %v7898_v4 }
0x16a4   :  { %v7904_v30 = vpack.c.bf16 %v8213_v28, %v8212_v25 }
0x16a5   :  { %v9751_v39 = vpop.permute.xlu1 %8220  ;;  %7587 = vmatmul.mubr.msk.f32.vlgmr.msra.gmra.mrb[68].mxu1 %vm147_vm1, %v9681_v1 }
0x16a6   :  { %7905 = vmatprep.subr.bf16.mxu1 %v7904_v30 }
0x16a7   :  { %7907 = vmatpush3.bf16.msra.mxu1 %v7904_v30 }
0x16a8   :  { %7909 = vmatprep.subr.bf16.mxu1 %v9755_v2 }
0x16a9   :  { %v8226_v38 = vpop.permute.xlu1 %8225 }
0x16aa   :  { %v8228_v41 = vunpack.i.h.bf16 %v8226_v38  ;;  %v8227_v58 = vunpack.i.l.bf16 %v8226_v38  ;;  %7594 = vmatmul.mubr.msk.f32.vlgmr.msra.gmra.mrb[44].mxu0 %vm147_vm1, %v9689_v63 }
0x16ac   :  { %v7912_v47 = vpack.c.bf16 %v8228_v41, %v8227_v58 }
0x16ae   :  { %7913 = vmatprep.subr.bf16.mxu0 %v7912_v47 }
0x16af   :  { %7915 = vmatpush3.bf16.msra.mxu0 %v7912_v47 }
0x1705   :  { %v7546_v44 = vpop.f32.mrb[60].mxu1 }
0x1706   :  { %v5225_v35 = vmul.f32 0.35355338, %v7546_v44  ;;  %v4606_v62 = vpop.f32.mrb[61].mxu1 }
0x1707   :  { %v5224_v29 = vmul.f32 0.35355338, %v4606_v62 }
0x1708   :  { %v9761_v1 = vadd.f32 %v5225_v35, %v8804_v23 }
0x1709   :  { %v9764_v16 = vadd.f32 %v5224_v29, %v8804_v23 }
0x170a   :  { %v5259_v59 = vsel %vm872_vm4, %v9761_v1, -inf }
0x170b   :  { %5260 = vmax.xlane.f32.xlu1 %v5259_v59  ;;  %v5256_v63 = vsel %vm872_vm4, %v9764_v16, -inf }
0x170c   :  { %5257 = vmax.xlane.f32.xlu0 %v5256_v63 }
0x170d   :  { %v7553_v40 = vpop.f32.mrb[62].mxu1 }
0x170e   :  { %v5227_v34 = vmul.f32 0.35355338, %v7553_v40  ;;  %v4693_v21 = vpop.f32.mrb[63].mxu1 }
0x170f   :  { %v5226_v26 = vmul.f32 0.35355338, %v4693_v21 }
0x1710   :  { %v9771_v51 = vadd.f32 %v5227_v34, %v8804_v23 }
0x1711   :  { %v9774_v20 = vadd.f32 %v5226_v26, %v8804_v23 }
0x1712   :  { %v5265_v27 = vsel %vm872_vm4, %v9771_v51, -inf }
0x1713   :  { %5266 = vmax.xlane.f32.xlu0 %v5265_v27  ;;  %v5262_v36 = vsel %vm872_vm4, %v9774_v20, -inf }
0x1717   :  { %5263 = vmax.xlane.f32.xlu0 %v5262_v36 }
0x1766   :  { %v7560_v50 = vpop.f32.mrb[64].mxu1 }
0x1767   :  { %v4780_v56 = vpop.f32.mrb[65].mxu1  ;;  %v5229_v24 = vmul.f32 0.35355338, %v7560_v50 }
0x1768   :  { %v5228_v52 = vmul.f32 0.35355338, %v4780_v56 }
0x1769   :  { %v9787_v0 = vadd.f32 %v5229_v24, %v8804_v23 }
0x176a   :  { %v9792_v10 = vadd.f32 %v5228_v52, %v8804_v23 }
0x176b   :  { %v5271_v6 = vsel %vm872_vm4, %v9787_v0, -inf }
0x176c   :  { %v7567_v49 = vpop.f32.mrb[40].mxu0  ;;  %v5268_v30 = vsel %vm872_vm4, %v9792_v10, -inf }
0x176d   :  { %v5231_v57 = vmul.f32 0.35355338, %v7567_v49  ;;  %v4867_v46 = vpop.f32.mrb[41].mxu0 }
0x176e   :  { %v5230_v3 = vmul.f32 0.35355338, %v4867_v46 }
0x176f   :  { %v9781_v60 = vadd.f32 %v5231_v57, %v8804_v23 }
0x1770   :  { %v9784_v19 = vadd.f32 %v5230_v3, %v8804_v23  ;;  %v7574_v11 = vpop.f32.mrb[66].mxu1 }
0x1771   :  { %v4954_v45 = vpop.f32.mrb[67].mxu1  ;;  %v5277_v37 = vsel %vm872_vm4, %v9781_v60, -inf  ;;  %v5233_v4 = vmul.f32 0.35355338, %v7574_v11 }
0x1772   :  { %5278 = vmax.xlane.f32.xlu0 %v5277_v37  ;;  %v5274_v43 = vsel %vm872_vm4, %v9784_v19, -inf  ;;  %v5232_v28 = vmul.f32 0.35355338, %v4954_v45 }
0x1773   :  { %5275 = vmax.xlane.f32.xlu1 %v5274_v43  ;;  %v9807_v47 = vadd.f32 %v5233_v4, %v8804_v23 }
0x1774   :  { %v7581_v32 = vpop.f32.mrb[42].mxu0  ;;  %v9812_v62 = vadd.f32 %v5232_v28, %v8804_v23 }
0x1775   :  { %v5235_v14 = vmul.f32 0.35355338, %v7581_v32  ;;  %v5041_v55 = vpop.f32.mrb[43].mxu0  ;;  %v5283_v63 = vsel %vm872_vm4, %v9807_v47, -inf }
0x1776   :  { %v5234_v25 = vmul.f32 0.35355338, %v5041_v55  ;;  %5272 = vmax.xlane.f32.xlu0 %v5271_v6  ;;  %v5280_v26 = vsel %vm872_vm4, %v9812_v62, -inf }
0x1777   :  { %v9801_v38 = vadd.f32 %v5235_v14, %v8804_v23  ;;  %5269 = vmax.xlane.f32.xlu1 %v5268_v30 }
0x1778   :  { %v9804_v41 = vadd.f32 %v5234_v25, %v8804_v23  ;;  %v7588_v58 = vpop.f32.mrb[68].mxu1 }
0x1779   :  { %v5128_v44 = vpop.f32.mrb[69].mxu1  ;;  %v5289_v35 = vsel %vm872_vm4, %v9801_v38, -inf  ;;  %v5237_v40 = vmul.f32 0.35355338, %v7588_v58 }
0x177a   :  { %5290 = vmax.xlane.f32.xlu0 %v5289_v35  ;;  %v5286_v29 = vsel %vm872_vm4, %v9804_v41, -inf  ;;  %v5236_v27 = vmul.f32 0.35355338, %v5128_v44 }
0x177b   :  { %5287 = vmax.xlane.f32.xlu1 %v5286_v29  ;;  %v9827_v49 = vadd.f32 %v5237_v40, %v8804_v23 }
0x177c   :  { %v9832_v57 = vadd.f32 %v5236_v27, %v8804_v23 }
0x177d   :  { %v7595_v59 = vpop.f32.mrb[44].mxu0  ;;  %v5295_v52 = vsel %vm872_vm4, %v9827_v49, -inf }
0x177e   :  { %v5239_v34 = vmul.f32 0.35355338, %v7595_v59  ;;  %v5215_v21 = vpop.f32.mrb[45].mxu0  ;;  %5284 = vmax.xlane.f32.xlu0 %v5283_v63  ;;  %v5292_v3 = vsel %vm872_vm4, %v9832_v57, -inf }
0x177f   :  { %v5238_v36 = vmul.f32 0.35355338, %v5215_v21  ;;  %5281 = vmax.xlane.f32.xlu1 %v5280_v26 }
0x1780   :  { %v9821_v50 = vadd.f32 %v5239_v34, %v8804_v23 }
0x1781   :  { %v9824_v56 = vadd.f32 %v5238_v36, %v8804_v23 }
0x1782   :  { %v5301_v24 = vsel %vm872_vm4, %v9821_v50, -inf }
0x1783   :  { %5302 = vmax.xlane.f32.xlu0 %v5301_v24  ;;  %v5298_v46 = vsel %vm872_vm4, %v9824_v56, -inf }
0x1784   :  { %5299 = vmax.xlane.f32.xlu1 %v5298_v46 }
0x1787   :  { %5296 = vmax.xlane.f32.xlu0 %v5295_v52 }
0x1788   :  { %5293 = vmax.xlane.f32.xlu1 %v5292_v3 }
0x1798   :  { %v5261_v45 = vpop.xlane.xlu1 %5260 }
0x1799   :  { %8235 = vrot.lane.b32.xlu1 %v9675_v31, %s8594_s19  ;;  %v5258_v23 = vpop.xlane.xlu0 %5257  ;;  %v5305_v37 = vsub.f32 %v9761_v1, %v5261_v45 }
0x179a   :  { %v5304_v43 = vsub.f32 %v9764_v16, %v5258_v23 }
0x179b   :  { %v5322_v4 = vmul.f32 1.442695, %v5305_v37 }
0x179c   :  { %v5320_v55 = vmul.f32 1.442695, %v5304_v43 }
0x179d   :  { %8230 = vrot.lane.b32.xlu0 %v9665_v42, %s8594_s19  ;;  %8483 = vpow2.f32 %v5322_v4 }
0x179e   :  { %8485 = vpow2.f32 %v5320_v55 }
0x17a0   :  { %v5267_v11 = vpop.xlane.xlu0 %5266 }
0x17a1   :  { %v5307_v14 = vsub.f32 %v9771_v51, %v5267_v11 }
0x17a3   :  { %v5326_v28 = vmul.f32 1.442695, %v5307_v14 }
0x17a4   :  { %v5264_v32 = vpop.xlane.xlu0 %5263 }
0x17a5   :  { %v5306_v6 = vsub.f32 %v9774_v20, %v5264_v32  ;;  %8487 = vpow2.f32 %v5326_v28 }
0x17a7   :  { %v5324_v31 = vmul.f32 1.442695, %v5306_v6  ;;  %v9848_v42 = vpop.eup %8483 }
0x17a8   :  { %v9850_v25 = vpop.eup %8485  ;;  %v5355_v1 = vsel %vm872_vm4, %v9848_v42, 0.0 }
0x17a9   :  { %8489 = vpow2.f32 %v5324_v31  ;;  %v5352_v51 = vsel %vm872_vm4, %v9850_v25, 0.0 }
0x17af   :  { %v9854_v16 = vpop.eup %8487 }
0x17b0   :  { %v5361_v30 = vsel %vm872_vm4, %v9854_v16, 0.0 }
0x17b3   :  { %v9858_v20 = vpop.eup %8489 }
0x17b4   :  { %v5358_v58 = vsel %vm872_vm4, %v9858_v20, 0.0 }
0x17bc   :  { %5356 = vadd.xlane.f32.xlu0 %v5355_v1 }
0x17bd   :  { %5353 = vadd.xlane.f32.xlu1 %v5352_v51 }
0x17c0   :  { %5362 = vadd.xlane.f32.xlu0 %v5361_v30 }
0x17c1   :  { %5359 = vadd.xlane.f32.xlu1 %v5358_v58 }
0x17ff   :  { %v5279_v44 = vpop.xlane.xlu0 %5278 }
0x1800   :  { %v5311_v35 = vsub.f32 %v9781_v60, %v5279_v44  ;;  %v5276_v29 = vpop.xlane.xlu1 %5275 }
0x1801   :  { %v5310_v59 = vsub.f32 %v9784_v19, %v5276_v29 }
0x1802   :  { %v5334_v63 = vmul.f32 1.442695, %v5311_v35 }
0x1803   :  { %v5332_v40 = vmul.f32 1.442695, %v5310_v59  ;;  %v5273_v34 = vpop.xlane.xlu0 %5272 }
0x1804   :  { %8491 = vpow2.f32 %v5334_v63  ;;  %v5309_v21 = vsub.f32 %v9787_v0, %v5273_v34  ;;  %v5270_v26 = vpop.xlane.xlu1 %5269 }
0x1805   :  { %8493 = vpow2.f32 %v5332_v40  ;;  %v5308_v27 = vsub.f32 %v9792_v10, %v5270_v26 }
0x1806   :  { %v5330_v36 = vmul.f32 1.442695, %v5309_v21 }
0x1807   :  { %v5328_v24 = vmul.f32 1.442695, %v5308_v27  ;;  %v5291_v46 = vpop.xlane.xlu0 %5290 }
0x1808   :  { %8495 = vpow2.f32 %v5330_v36  ;;  %v5315_v52 = vsub.f32 %v9801_v38, %v5291_v46  ;;  %v5288_v60 = vpop.xlane.xlu1 %5287 }
0x1809   :  { %8497 = vpow2.f32 %v5328_v24  ;;  %v5314_v19 = vsub.f32 %v9804_v41, %v5288_v60 }
0x180a   :  { %v5342_v3 = vmul.f32 1.442695, %v5315_v52 }
0x180b   :  { %v5340_v23 = vmul.f32 1.442695, %v5314_v19  ;;  %v5285_v11 = vpop.xlane.xlu0 %5284 }
0x180c   :  { %8499 = vpow2.f32 %v5342_v3  ;;  %v5313_v0 = vsub.f32 %v9807_v47, %v5285_v11  ;;  %v5282_v45 = vpop.xlane.xlu1 %5281 }
0x180d   :  { %8501 = vpow2.f32 %v5340_v23  ;;  %v5312_v10 = vsub.f32 %v9812_v62, %v5282_v45 }
0x180e   :  { %v9872_v37 = vpop.eup %8491  ;;  %v5338_v43 = vmul.f32 1.442695, %v5313_v0 }
0x180f   :  { %v9874_v32 = vpop.eup %8493  ;;  %v5336_v38 = vmul.f32 1.442695, %v5312_v10  ;;  %v5373_v4 = vsel %vm872_vm4, %v9872_v37, 0.0 }
0x1810   :  { %8503 = vpow2.f32 %v5338_v43  ;;  %v5303_v41 = vpop.xlane.xlu0 %5302  ;;  %5374 = vadd.xlane.f32.xlu0 %v5373_v4  ;;  %v5370_v14 = vsel %vm872_vm4, %v9874_v32, 0.0 }
0x1811   :  { %8505 = vpow2.f32 %v5336_v38  ;;  %v5319_v47 = vsub.f32 %v9821_v50, %v5303_v41  ;;  %v5300_v55 = vpop.xlane.xlu1 %5299  ;;  %5371 = vadd.xlane.f32.xlu1 %v5370_v14 }
0x1812   :  { %v9881_v62 = vpop.eup %8495  ;;  %v5318_v6 = vsub.f32 %v9824_v56, %v5300_v55  ;;  %v8223_v55 = vunpack.i.h.bf16 %v9751_v39 }
0x1813   :  { %v9884_v28 = vpop.eup %8497  ;;  %v5350_v31 = vmul.f32 1.442695, %v5319_v47  ;;  %v5367_v1 = vsel %vm872_vm4, %v9881_v62, 0.0 }
0x1814   :  { %v5348_v51 = vmul.f32 1.442695, %v5318_v6  ;;  %v5297_v30 = vpop.xlane.xlu0 %5296  ;;  %5368 = vadd.xlane.f32.xlu0 %v5367_v1  ;;  %v5364_v58 = vsel %vm872_vm4, %v9884_v28, 0.0  ;;  %v8222_v6 = vunpack.i.l.bf16 %v9751_v39 }
0x1815   :  { %8507 = vpow2.f32 %v5350_v31  ;;  %v5317_v50 = vsub.f32 %v9827_v49, %v5297_v30  ;;  %v5294_v44 = vpop.xlane.xlu1 %5293  ;;  %5365 = vadd.xlane.f32.xlu1 %v5364_v58 }
0x1816   :  { %v9891_v35 = vpop.eup %8499  ;;  %8509 = vpow2.f32 %v5348_v51  ;;  %v5316_v56 = vsub.f32 %v9832_v57, %v5294_v44  ;;  %v7916_v51 = vpack.c.bf16 %v8223_v55, %v8222_v6 }
0x1817   :  { %v9894_v29 = vpop.eup %8501  ;;  %v5346_v59 = vmul.f32 1.442695, %v5317_v50  ;;  %v5385_v63 = vsel %vm872_vm4, %v9891_v35, 0.0 }
0x1818   :  { %v5344_v40 = vmul.f32 1.442695, %v5316_v56  ;;  %v8231_v34 = vpop.permute.xlu0 %8230  ;;  %5386 = vadd.xlane.f32.xlu0 %v5385_v63  ;;  %v5382_v21 = vsel %vm872_vm4, %v9894_v29, 0.0 }
0x1819   :  { %8511 = vpow2.f32 %v5346_v59  ;;  %v8233_v49 = vunpack.i.h.bf16 %v8231_v34  ;;  %v8232_v26 = vunpack.i.l.bf16 %v8231_v34  ;;  %5383 = vadd.xlane.f32.xlu1 %v5382_v21  ;;  %v8236_v10 = vpop.permute.xlu1 %8235 }
0x181a   :  { %v9900_v27 = vpop.eup %8503  ;;  %8513 = vpow2.f32 %v5344_v40  ;;  %v8238_v30 = vunpack.i.h.bf16 %v8236_v10  ;;  %v8237_v58 = vunpack.i.l.bf16 %v8236_v10 }
0x181b   :  { %v9902_v57 = vpop.eup %8505  ;;  %v9904_v36 = vpack.c.bf16 %v8233_v49, %v8232_v26  ;;  %v5379_v24 = vsel %vm872_vm4, %v9900_v27, 0.0 }
0x181c   :  { %5380 = vadd.xlane.f32.xlu0 %v5379_v24  ;;  %v5376_v46 = vsel %vm872_vm4, %v9902_v57, 0.0  ;;  %v7924_v39 = vpack.c.bf16 %v8238_v30, %v8237_v58 }
0x181d   :  { %7921 = vmatprep.subr.bf16.mxu0 %v9904_v36  ;;  %5377 = vadd.xlane.f32.xlu1 %v5376_v46 }
0x181f   :  { %v9911_v52 = vpop.eup %8507 }
0x1820   :  { %v9913_v60 = vpop.eup %8509  ;;  %v5397_v19 = vsel %vm872_vm4, %v9911_v52, 0.0 }
0x1821   :  { %5398 = vadd.xlane.f32.xlu0 %v5397_v19  ;;  %v5394_v3 = vsel %vm872_vm4, %v9913_v60, 0.0 }
0x1822   :  { %5395 = vadd.xlane.f32.xlu1 %v5394_v3 }
0x1823   :  { %v9919_v23 = vpop.eup %8511 }
0x1824   :  { %v9921_v11 = vpop.eup %8513  ;;  %v5391_v0 = vsel %vm872_vm4, %v9919_v23, 0.0 }
0x1825   :  { %5392 = vadd.xlane.f32.xlu0 %v5391_v0  ;;  %v5388_v45 = vsel %vm872_vm4, %v9921_v11, 0.0 }
0x1826   :  { %5389 = vadd.xlane.f32.xlu1 %v5388_v45 }
0x1837   :  { %8245 = vrot.lane.b32.xlu1 %v9693_v12, %s8594_s19 }
0x183b   :  { %8240 = vrot.lane.b32.xlu0 %v9685_v15, %s8594_s19 }
0x1849   :  { %v5357_v43 = vpop.xlane.xlu0 %5356 }
0x184a   :  { %8515 = vrcp.f32 %v5357_v43  ;;  %v5354_v38 = vpop.xlane.xlu1 %5353 }
0x184b   :  { %8517 = vrcp.f32 %v5354_v38 }
0x184d   :  { %v5363_v4 = vpop.xlane.xlu0 %5362 }
0x184e   :  { %8519 = vrcp.f32 %v5363_v4  ;;  %v5360_v41 = vpop.xlane.xlu1 %5359 }
0x184f   :  { %8521 = vrcp.f32 %v5360_v41 }
0x1854   :  { %v8516_v14 = vpop.eup %8515 }
0x1855   :  { %v8518_v47 = vpop.eup %8517  ;;  %v5417_v31 = vmul.f32 %v8516_v14, %v9848_v42 }
0x1856   :  { %v5416_v12 = vmul.f32 %v8518_v47, %v9850_v25 }
0x1858   :  { %v8520_v15 = vpop.eup %8519  ;;  %7600 = vmatprep.mubr.msk.f32.mxu1 %vm872_vm4, %v5416_v12 }
0x1859   :  { %v8522_v1 = vpop.eup %8521  ;;  %7601 = vmatmul.mubr.msk.f32.vlgmr.msra.gmra.mrb[70].mxu1 %vm872_vm4, %v5417_v31  ;;  %v5419_v44 = vmul.f32 %v8520_v15, %v9854_v16 }
0x185a   :  { %7911 = vmatpush3.bf16.msra.mxu1 %v9755_v2  ;;  %v5418_v50 = vmul.f32 %v8522_v1, %v9858_v20 }
0x185b   :  { %7917 = vmatprep.subr.bf16.mxu1 %v7916_v51 }
0x185c   :  { %7607 = vmatprep.mubr.msk.f32.mxu1 %vm872_vm4, %v5418_v50 }
0x185d   :  { %7608 = vmatmul.mubr.msk.f32.vlgmr.msra.gmra.mrb[72].mxu1 %vm872_vm4, %v5419_v44 }
0x185e   :  { %7919 = vmatpush3.bf16.msra.mxu1 %v7916_v51 }
0x185f   :  { %7925 = vmatprep.subr.bf16.mxu1 %v7924_v39 }
0x189d   :  { %v5375_v42 = vpop.xlane.xlu0 %5374 }
0x189e   :  { %8523 = vrcp.f32 %v5375_v42  ;;  %v5372_v25 = vpop.xlane.xlu1 %5371 }
0x189f   :  { %8525 = vrcp.f32 %v5372_v25 }
0x18a1   :  { %v5369_v56 = vpop.xlane.xlu0 %5368 }
0x18a2   :  { %8527 = vrcp.f32 %v5369_v56  ;;  %v5366_v59 = vpop.xlane.xlu1 %5365 }
0x18a3   :  { %8529 = vrcp.f32 %v5366_v59 }
0x18a5   :  { %v5387_v2 = vpop.xlane.xlu0 %5386 }
0x18a6   :  { %8531 = vrcp.f32 %v5387_v2  ;;  %v5384_v20 = vpop.xlane.xlu1 %5383 }
0x18a7   :  { %8533 = vrcp.f32 %v5384_v20  ;;  %v8309_v20 = vld [vmem:[%s10105_s2 + $0x20] sm:$0xff]  }
0x18a8   :  { %v8524_v16 = vpop.eup %8523 }
0x18a9   :  { %v8526_v63 = vpop.eup %8525  ;;  %v5381_v40 = vpop.xlane.xlu0 %5380  ;;  %v5423_v49 = vmul.f32 %v8524_v16, %v9872_v37 }
0x18aa   :  { %8535 = vrcp.f32 %v5381_v40  ;;  %v5378_v34 = vpop.xlane.xlu1 %5377  ;;  %v5422_v21 = vmul.f32 %v8526_v63, %v9874_v32 }
0x18ab   :  { %8537 = vrcp.f32 %v5378_v34  ;;  %v8310_v34 = vld [vmem:[%s10105_s2 + $0x28] sm:$0xff]   ;;  %s8601_s2 = smov [#allocation2]  }
0x18ac   :  { %v8528_v26 = vpop.eup %8527  ;;  %7621 = vmatprep.mubr.msk.f32.mxu1 %vm872_vm4, %v5422_v21  ;;  %s6680_s19 = sshll.u32 %s8601_s2, 4  ;;  %s6681_s19 = int_to_ptr.vmem [resolvable:$true] %s6680_s19 }
0x18ad   :  { %v8530_v24 = vpop.eup %8529  ;;  %7622 = vmatmul.mubr.msk.f32.vlgmr.msra.gmra.mrb[74].mxu1 %vm872_vm4, %v5423_v49  ;;  %v5421_v3 = vmul.f32 %v8528_v26, %v9881_v62  ;;  %p8571_p1 = scmp.lt.s32.totalorder %s6681_s19, %s6681_s19 }
0x18ae   :  { %v5399_v46 = vpop.xlane.xlu0 %5398  ;;  %7927 = vmatpush3.bf16.msra.mxu1 %v7924_v39  ;;  %v5420_v19 = vmul.f32 %v8530_v24, %v9884_v28 }
0x18af   :  { %v5396_v0 = vpop.xlane.xlu1 %5395 }
0x18b0   :  { %v8532_v45 = vpop.eup %8531  ;;  %8539 = vrcp.f32 %v5396_v0  ;;  %7614 = vmatprep.mubr.msk.f32.mxu0 %vm872_vm4, %v5420_v19 }
0x18b1   :  { %v8534_v32 = vpop.eup %8533  ;;  %8541 = vrcp.f32 %v5399_v46  ;;  %7615 = vmatmul.mubr.msk.f32.vlgmr.msra.gmra.mrb[46].mxu0 %vm872_vm4, %v5421_v3  ;;  %v5427_v43 = vmul.f32 %v8532_v45, %v9891_v35 }
0x18b2   :  { %v5393_v37 = vpop.xlane.xlu0 %5392  ;;  %7923 = vmatpush3.bf16.msra.mxu0 %v9904_v36  ;;  %v5426_v10 = vmul.f32 %v8534_v32, %v9894_v29 }
0x18b3   :  { %8543 = vrcp.f32 %v5393_v37  ;;  %v5390_v28 = vpop.xlane.xlu1 %5389 }
0x18b4   :  { %v8536_v38 = vpop.eup %8535  ;;  %8545 = vrcp.f32 %v5390_v28  ;;  %7635 = vmatprep.mubr.msk.f32.mxu1 %vm872_vm4, %v5426_v10 }
0x18b5   :  { %v8538_v62 = vpop.eup %8537  ;;  %7636 = vmatmul.mubr.msk.f32.vlgmr.msra.gmra.mrb[76].mxu1 %vm872_vm4, %v5427_v43  ;;  %v5425_v14 = vmul.f32 %v8536_v38, %v9900_v27 }
0x18b6   :  { %v8241_v4 = vpop.permute.xlu0 %8240  ;;  %v5424_v41 = vmul.f32 %v8538_v62, %v9902_v57 }
0x18b7   :  { %v8243_v47 = vunpack.i.h.bf16 %v8241_v4  ;;  %v8242_v36 = vunpack.i.l.bf16 %v8241_v4  ;;  %v8246_v55 = vpop.permute.xlu1 %8245 }
0x18b8   :  { %v8248_v29 = vunpack.i.h.bf16 %v8246_v55  ;;  %v8247_v6 = vunpack.i.l.bf16 %v8246_v55  ;;  %7628 = vmatprep.mubr.msk.f32.mxu0 %vm872_vm4, %v5424_v41 }
0x18b9   :  { %v7928_v35 = vpack.c.bf16 %v8243_v47, %v8242_v36  ;;  %7629 = vmatmul.mubr.msk.f32.vlgmr.msra.gmra.mrb[48].mxu0 %vm872_vm4, %v5425_v14 }
0x18ba   :  { %v8540_v12 = vpop.eup %8539  ;;  %v7932_v31 = vpack.c.bf16 %v8248_v29, %v8247_v6 }
0x18bb   :  { %v8542_v15 = vpop.eup %8541  ;;  %7929 = vmatprep.subr.bf16.mxu0 %v7928_v35  ;;  %v5430_v1 = vmul.f32 %v8540_v12, %v9913_v60 }
0x18bc   :  { %7931 = vmatpush3.bf16.msra.mxu0 %v7928_v35  ;;  %7933 = vmatprep.subr.bf16.mxu1 %v7932_v31  ;;  %v5431_v51 = vmul.f32 %v8542_v15, %v9911_v52 }
0x18bd   :  { %v8544_v57 = vpop.eup %8543  ;;  %7935 = vmatpush3.bf16.msra.mxu1 %v7932_v31  ;;  %7649 = vmatprep.mubr.msk.f32.mxu1 %vm872_vm4, %v5430_v1 }
0x18be   :  { %v8546_v27 = vpop.eup %8545  ;;  %v5429_v58 = vmul.f32 %v8544_v57, %v9919_v23  ;;  %7652 = vmatprep.subr.bf16.mxu0 %v8309_v20 }
0x18bf   :  { %v5428_v30 = vmul.f32 %v8546_v27, %v9921_v11 }
0x18c0   :  { %7650 = vmatmul.mubr.msk.f32.vlgmr.msra.gmra.mrb[78].mxu1 %vm872_vm4, %v5431_v51 }
0x18c1   :  { %7642 = vmatprep.mubr.msk.f32.mxu0 %vm872_vm4, %v5428_v30 }
0x18c2   :  { %7643 = vmatmul.mubr.msk.f32.vlgmr.msra.gmra.mrb[50].mxu0 %vm872_vm4, %v5429_v58 }
0x18c3   :  { %7653 = vmatpush3.bf16.msra.mxu0 %v8309_v20 }
0x18c4   :  { %7654 = vmatprep.subr.bf16.mxu0 %v8310_v34 }
0x18c7   :  { %7655 = vmatpush3.bf16.msra.mxu0 %v8310_v34 }
0x192c   :  { %v7602_v60 = vpop.f32.mrb[70].mxu1 }
0x192d   :  { %v5510_v50 = vpop.f32.mrb[71].mxu1 }
0x1930   :  { %v7609_v44 = vpop.f32.mrb[72].mxu1 }
0x1931   :  { %v5597_v39 = vpop.f32.mrb[73].mxu1 }
0x1980   :  { %v7623_v42 = vpop.f32.mrb[74].mxu1 }
0x1981   :  { %v5771_v25 = vpop.f32.mrb[75].mxu1 }
0x1982   :  { %v8249_v56 = vpack.i.bf16 %v7623_v42, %v5771_v25  ;;  %v9996_v25 = vld [vmem:[%s10109_s6 + $0x20] sm:$0xff] }
0x1984   :  { %8250 = vrot.lane.b32.xlu1 %v8249_v56, %s8596_s20  ;;  %v7616_v52 = vpop.f32.mrb[46].mxu0  ;;  %v6198_v56 = vrot.slane %v9996_v25, %v9042_v8 }
0x1985   :  { %v5684_v59 = vpop.f32.mrb[47].mxu0 }
0x1986   :  { %v8254_v11 = vpack.i.bf16 %v7616_v52, %v5684_v59 }
0x1988   :  { %8255 = vrot.lane.b32.xlu0 %v8254_v11, %s8596_s20  ;;  %v7637_v23 = vpop.f32.mrb[76].mxu1  ;;  %s8566_s20 = scalar_lea.vmem %s6681_s19, 32 }
0x1989   :  { %v5945_v2 = vpop.f32.mrb[77].mxu1  ;;  %p8567_p0 = scmp.ne.s32.totalorder %s6681_s19, %s8566_s20  ;;  %p8572_p2 = scmp.lt.s32.totalorder %s8566_s20, %s8566_s20 }
0x198a   :  { %v8259_v16 = vpack.i.bf16 %v7637_v23, %v5945_v2 }
0x198b   :  { %p8573_p3 = por %p8572_p2, %p8571_p1 }
0x198c   :  { %v7630_v63 = vpop.f32.mrb[48].mxu0  ;;  %8260 = vrot.lane.b32.xlu1 %v8259_v16, %s8597_s25 }
0x198d   :  { %v5858_v40 = vpop.f32.mrb[49].mxu0  ;;  %p8574_p4 = pnand %p8573_p3, %p8567_p0 }
0x198e   :  { %v8264_v21 = vpack.i.bf16 %v7630_v63, %v5858_v40 }
0x1990   :  { %8265 = vrot.lane.b32.xlu0 %v8264_v21, %s8597_s25 }
0x1993   :  { %v7651_v49 = vpop.f32.mrb[78].mxu1 }
0x1994   :  { %v6119_v26 = vpop.f32.mrb[79].mxu1 }
0x1995   :  { %v8274_v24 = vpack.i.bf16 %v7651_v49, %v6119_v26  ;;  %v7644_v46 = vpop.f32.mrb[50].mxu0 }
0x1996   :  { %v6032_v19 = vpop.f32.mrb[51].mxu0 }
0x1997   :  { %v8269_v3 = vpack.i.bf16 %v7644_v46, %v6032_v19  ;;  %8275 = vrot.lane.b32.xlu1 %v8274_v24, %s8598_s26 }
0x1999   :  { %8270 = vrot.lane.b32.xlu0 %v8269_v3, %s8598_s26 }
0x19f6   :  { %v8251_v0 = vpop.permute.xlu1 %8250 }
0x19f7   :  { %v8253_v37 = vunpack.i.h.bf16 %v8251_v0  ;;  %v8252_v10 = vunpack.i.l.bf16 %v8251_v0 }
0x19f9   :  { %v6179_v36 = vsel %vm147_vm1, %v7609_v44, %v8253_v37  ;;  %v6178_v55 = vsel %vm147_vm1, %v5597_v39, %v8252_v10 }
0x19fa   :  { %v8256_v45 = vpop.permute.xlu0 %8255 }
0x19fb   :  { %v8258_v28 = vunpack.i.h.bf16 %v8256_v45  ;;  %v8257_v38 = vunpack.i.l.bf16 %v8256_v45 }
0x19fd   :  { %v6177_v35 = vsel %vm147_vm1, %v7602_v60, %v8258_v28  ;;  %v6176_v12 = vsel %vm147_vm1, %v5510_v50, %v8257_v38 }
0x19fe   :  { %v8261_v32 = vpop.permute.xlu1 %8260 }
0x19ff   :  { %v8263_v62 = vunpack.i.h.bf16 %v8261_v32  ;;  %v8262_v4 = vunpack.i.l.bf16 %v8261_v32 }
0x1a01   :  { %v6183_v31 = vsel %vm872_vm4, %v6179_v36, %v8263_v62  ;;  %v6182_v15 = vsel %vm872_vm4, %v6178_v55, %v8262_v4  ;;  %v8311_v55 = vld [vmem:[%s10106_s3 + $0x20] sm:$0xff]  }
0x1a02   :  { %v8266_v43 = vpop.permute.xlu0 %8265  ;;  %7660 = vmatprep.subr.bf16.mxu1 %v8311_v55 }
0x1a03   :  { %v8268_v41 = vunpack.i.h.bf16 %v8266_v43  ;;  %v8267_v14 = vunpack.i.l.bf16 %v8266_v43  ;;  %7661 = vmatpush3.bf16.msra.mxu1 %v8311_v55  ;;  %v6442_v55 = vrot.slane %v9996_v25, %v9134_v18 }
0x1a05   :  { %v6181_v58 = vsel %vm872_vm4, %v6177_v35, %v8268_v41  ;;  %v6180_v44 = vsel %vm872_vm4, %v6176_v12, %v8267_v14  ;;  %v8314_v35 = vld [vmem:[%s10107_s4 + $0x88] sm:$0xff]   ;;  %v8315_v12 = vld [vmem:[%s10107_s4 + $0x90] sm:$0xff]  }
0x1a09   :  { %v8276_v47 = vpop.permute.xlu1 %8275 }
0x1a0a   :  { %v8278_v29 = vunpack.i.h.bf16 %v8276_v47  ;;  %v8277_v6 = vunpack.i.l.bf16 %v8276_v47 }
0x1a0b   :  { %v8271_v1 = vpop.permute.xlu0 %8270 }
0x1a0c   :  { %v6187_v57 = vsel %vm1801_vm5, %v6183_v31, %v8278_v29  ;;  %v6186_v27 = vsel %vm1801_vm5, %v6182_v15, %v8277_v6  ;;  %v8273_v51 = vunpack.i.h.bf16 %v8271_v1  ;;  %v8272_v30 = vunpack.i.l.bf16 %v8271_v1  ;;  %v8312_v29 = vld [vmem:[%s10106_s3 + $0x28] sm:$0xff]   ;;  %v8313_v6 = vld [vmem:[%s10107_s4 + $0x80] sm:$0xff]   ;;  %v8316_v31 = vld [vmem:[%s10107_s4 + $0x98] sm:$0xff]  }
0x1a0d   :  { %v6194_v39 = vpack.c.bf16 %v6187_v57, %v6186_v27  ;;  %7662 = vmatprep.subr.bf16.mxu1 %v8312_v29  ;;  %7668 = vmatprep.subr.bf16.mxu0 %v8313_v6  ;;  %v8317_v15 = vld [vmem:[%s10107_s4 + $0xa0] sm:$0xff]   ;;  %v8318_v1 = vld [vmem:[%s10107_s4 + $0xa8] sm:$0xff]  }
0x1a0e   :  { %v6185_v60 = vsel %vm1801_vm5, %v6181_v58, %v8273_v51  ;;  %v6184_v50 = vsel %vm1801_vm5, %v6180_v44, %v8272_v30  ;;  %7663 = vmatpush3.bf16.msra.mxu1 %v8312_v29 }
0x1a0f   :  { %v6193_v42 = vpack.c.bf16 %v6185_v60, %v6184_v50  ;;  %7688 = vmatprep.subr.bf16.mxu1 %v8595_v22 }
0x1a11   :  { %7656 = vmatprep.mubr.msk.bf16.mxu0 %vm59_vm0, %v6193_v42 }
0x1a12   :  { %7657 = vmatmul.mubr.msk.bf16.vlgmr.msra.gmra.mrb[52].mxu0 %vm59_vm0, %v6194_v39 }
0x1a13   :  { %7669 = vmatpush3.bf16.msra.mxu0 %v8313_v6 }
0x1a14   :  { %7670 = vmatprep.subr.bf16.mxu0 %v8314_v35 }
0x1a17   :  { %7671 = vmatpush3.bf16.msra.mxu0 %v8314_v35 }
0x1a18   :  { %7672 = vmatprep.subr.bf16.mxu0 %v8315_v12 }
0x1a1b   :  { %7673 = vmatpush3.bf16.msra.mxu0 %v8315_v12 }
0x1a1c   :  { %7674 = vmatprep.subr.bf16.mxu0 %v8316_v31 }
0x1a1f   :  { %7675 = vmatpush3.bf16.msra.mxu0 %v8316_v31 }
0x1a20   :  { %7676 = vmatprep.subr.bf16.mxu0 %v8317_v15 }
0x1a23   :  { %7677 = vmatpush3.bf16.msra.mxu0 %v8317_v15 }
0x1a24   :  { %7678 = vmatprep.subr.bf16.mxu0 %v8318_v1 }
0x1a27   :  { %7679 = vmatpush3.bf16.msra.mxu0 %v8318_v1 }
0x1ae5   :  { %v7658_v52 = vpop.f32.mrb[52].mxu0 }
0x1ae6   :  { %v6251_v59 = vpop.f32.mrb[53].mxu0  ;;  %v6260_v11 = vadd.f32 %v7658_v52, %v6198_v56 }
0x1ae7   :  { %v6252_v23 = vadd.f32 %v6251_v59, %v6198_v56  ;;  %v7659_v2 = vpop.f32.mrb[54].mxu0  ;;  %v6325_v59 = vrot.slane %v9996_v25, %v9108_v5 }
0x1ae8   :  { %v6254_v20 = vpop.f32.mrb[55].mxu0  ;;  %v6268_v40 = vadd.f32 %v6260_v11, %v9628_v61  ;;  %v6263_v34 = vadd.f32 %v7659_v2, %v6198_v56 }
0x1ae9   :  { %v6266_v16 = vadd.f32 %v6252_v23, %v9621_v54  ;;  %v6255_v63 = vadd.f32 %v6254_v20, %v6198_v56 }
0x1aea   :  { %v6269_v8 = vadd.f32 %v6263_v34, %v9630_v13  ;;  %v6276_v24 = vsel %vm59_vm0, %v6268_v40, 0.0 }
0x1aeb   :  { %v6267_v21 = vadd.f32 %v6255_v63, %v9623_v48  ;;  %v6270_v49 = vsel %vm59_vm0, %v6266_v16, 0.0  ;;  %v6333_v63 = vrot.slane %v9996_v25, %v9113_v7  ;;  %v8319_v7 = vld [vmem:[%s10107_s4 + $0xb0] sm:$0xff]  }
0x1aec   :  { %6271 = vadd.xlane.f32.xlu0 %v6270_v49  ;;  %v6279_v46 = vsel %vm59_vm0, %v6269_v8, 0.0  ;;  %7680 = vmatprep.subr.bf16.mxu0 %v8319_v7 }
0x1aed   :  { %v6273_v26 = vsel %vm59_vm0, %v6267_v21, 0.0  ;;  %7681 = vmatpush3.bf16.msra.mxu0 %v8319_v7 }
0x1aee   :  { %6274 = vadd.xlane.f32.xlu1 %v6273_v26 }
0x1af0   :  { %6277 = vadd.xlane.f32.xlu0 %v6276_v24 }
0x1af4   :  { %6280 = vadd.xlane.f32.xlu0 %v6279_v46 }
0x1b79   :  { %v6272_v54 = vpop.xlane.xlu0 %6271 }
0x1b7a   :  { %v6282_v19 = vmul.f32 0.03125, %v6272_v54 }
0x1b7b   :  { %v6275_v61 = vpop.xlane.xlu1 %6274 }
0x1b7c   :  { %v10008_v3 = vsub.f32 %v6266_v16, %v6282_v19  ;;  %v6283_v48 = vmul.f32 0.03125, %v6275_v61 }
0x1b7d   :  { %v6278_v0 = vpop.xlane.xlu0 %6277 }
0x1b7e   :  { %v10010_v45 = vsub.f32 %v6267_v21, %v6283_v48  ;;  %v6284_v32 = vmul.f32 0.03125, %v6278_v0  ;;  %v6290_v37 = vmul.f32 %v10008_v3, %v10008_v3  ;;  %v8320_v48 = vld [vmem:[%s10107_s4 + $0xb8] sm:$0xff]   ;;  %v6348_v0 = vrot.slane %v9996_v25, %v9129_v33 }
0x1b7f   :  { %7682 = vmatprep.subr.bf16.mxu0 %v8320_v48 }
0x1b80   :  { %v10014_v13 = vsub.f32 %v6268_v40, %v6284_v32  ;;  %v6294_v10 = vsel %vm59_vm0, %v6290_v37, 0.0  ;;  %v6291_v43 = vmul.f32 %v10010_v45, %v10010_v45  ;;  %7683 = vmatpush3.bf16.msra.mxu0 %v8320_v48  ;;  %v6953_v48 = vld [vmem:[%s10109_s6 + $0x8] ss:$0 sm:$0xff] }
0x1b81   :  { %6295 = vadd.xlane.f32.xlu1 %v6294_v10  ;;  %v6281_v28 = vpop.xlane.xlu0 %6280 }
0x1b82   :  { %v6285_v38 = vmul.f32 0.03125, %v6281_v28  ;;  %v6297_v62 = vsel %vm59_vm0, %v6291_v43, 0.0  ;;  %v6292_v4 = vmul.f32 %v10014_v13, %v10014_v13 }
0x1b83   :  { %6298 = vadd.xlane.f32.xlu0 %v6297_v62 }
0x1b84   :  { %v6289_v41 = vsub.f32 %v6269_v8, %v6285_v38  ;;  %v6300_v14 = vsel %vm59_vm0, %v6292_v4, 0.0 }
0x1b85   :  { %6301 = vadd.xlane.f32.xlu1 %v6300_v14 }
0x1b86   :  { %v6293_v47 = vmul.f32 %v6289_v41, %v6289_v41 }
0x1b88   :  { %v6303_v36 = vsel %vm59_vm0, %v6293_v47, 0.0 }
0x1b89   :  { %6304 = vadd.xlane.f32.xlu0 %v6303_v36 }
0x1c0e   :  { %v6296_v57 = vpop.xlane.xlu1 %6295 }
0x1c0f   :  { %v6306_v27 = vmul.f32 0.03125, %v6296_v57 }
0x1c10   :  { %v6299_v51 = vpop.xlane.xlu0 %6298 }
0x1c11   :  { %v6310_v30 = vadd.f32 1e-05, %v6306_v27  ;;  %v6307_v58 = vmul.f32 0.03125, %v6299_v51 }
0x1c12   :  { %v6302_v44 = vpop.xlane.xlu1 %6301 }
0x1c13   :  { %8547 = vrsqrt.f32 %v6310_v30  ;;  %v6311_v39 = vadd.f32 1e-05, %v6307_v58  ;;  %v6308_v60 = vmul.f32 0.03125, %v6302_v44 }
0x1c15   :  { %8549 = vrsqrt.f32 %v6311_v39  ;;  %v6312_v50 = vadd.f32 1e-05, %v6308_v60 }
0x1c16   :  { %v6305_v42 = vpop.xlane.xlu0 %6304 }
0x1c17   :  { %8551 = vrsqrt.f32 %v6312_v50  ;;  %v6309_v56 = vmul.f32 0.03125, %v6305_v42 }
0x1c19   :  { %v6313_v52 = vadd.f32 1e-05, %v6309_v56 }
0x1c1b   :  { %8553 = vrsqrt.f32 %v6313_v52  ;;  %v8321_v52 = vld [vmem:[%s10108_s5] sm:$0xff]  }
0x1c1d   :  { %v8548_v11 = vpop.eup %8547 }
0x1c1e   :  { %v6318_v23 = vmul.f32 %v8548_v11, %v10008_v3 }
0x1c1f   :  { %v8550_v2 = vpop.eup %8549 }
0x1c20   :  { %v6319_v20 = vmul.f32 %v8550_v2, %v10010_v45  ;;  %v6326_v16 = vmul.f32 %v6325_v59, %v6318_v23 }
0x1c21   :  { %v8552_v40 = vpop.eup %8551 }
0x1c22   :  { %v6320_v34 = vmul.f32 %v8552_v40, %v10014_v13  ;;  %v6327_v21 = vmul.f32 %v6325_v59, %v6319_v20  ;;  %v6334_v49 = vadd.f32 %v6333_v63, %v6326_v16  ;;  %v6569_v40 = vrot.slane %v9996_v25, %v9153_v17 }
0x1c24   :  { %v6335_v26 = vadd.f32 %v6333_v63, %v6327_v21  ;;  %v6328_v24 = vmul.f32 %v6325_v59, %v6320_v34 }
0x1c25   :  { %v8554_v8 = vpop.eup %8553 }
0x1c26   :  { %v6321_v46 = vmul.f32 %v8554_v8, %v6289_v41  ;;  %v6343_v5 = vpack.c.bf16 %v6335_v26, %v6334_v49  ;;  %v6336_v19 = vadd.f32 %v6333_v63, %v6328_v24 }
0x1c28   :  { %v6329_v54 = vmul.f32 %v6325_v59, %v6321_v46  ;;  %7664 = vmatprep.mubr.msk.bf16.mxu1 %vm59_vm0, %v6343_v5  ;;  %v8322_v59 = vld [vmem:[%s10108_s5 + $0x8] sm:$0xff]  }
0x1c2a   :  { %v6337_v61 = vadd.f32 %v6333_v63, %v6329_v54 }
0x1c2c   :  { %v6344_v3 = vpack.c.bf16 %v6337_v61, %v6336_v19 }
0x1c2e   :  { %7665 = vmatmul.mubr.msk.bf16.vlgmr.msra.gmra.mrb[80].mxu1 %vm59_vm0, %v6344_v3  ;;  %v8600_v3 = vmov 1966171168  }
0x1c2f   :  { %7689 = vmatpush3.bf16.msra.mxu1 %v8321_v52  ;;  %7692 = vmatprep.mubr.msk.bf16.mxu1 %vm8599_vm6, %v8595_v22  ;;  %v6650_v7 = vunpack.c.l.s4 %v8600_v3 }
0x1c30   :  { %7690 = vmatprep.subr.bf16.mxu1 %v8595_v22 }
0x1c31   :  { %v6651_v17 = vunpack.c.0.s8 %v6650_v7 }
0x1c33   :  { %7691 = vmatpush3.bf16.msra.mxu1 %v8322_v59 }
0x1d01   :  { %v7666_v45 = vpop.f32.mrb[80].mxu1 }
0x1d02   :  { %v6410_v32 = vadd.f32 %v7666_v45, %v6348_v0  ;;  %v6401_v37 = vpop.f32.mrb[81].mxu1 }
0x1d03   :  { %v6402_v13 = vadd.f32 %v6401_v37, %v6348_v0  ;;  %v7667_v10 = vpop.f32.mrb[82].mxu1 }
0x1d04   :  { %v6413_v43 = vadd.f32 %v7667_v10, %v6348_v0  ;;  %v6404_v28 = vpop.f32.mrb[83].mxu1  ;;  %v6418_v62 = vmax.f32 %v6410_v32, 0.0 }
0x1d05   :  { %v6405_v38 = vadd.f32 %v6404_v28, %v6348_v0  ;;  %v6416_v41 = vmax.f32 %v6402_v13, 0.0 }
0x1d06   :  { %v6419_v4 = vmax.f32 %v6413_v43, 0.0 }
0x1d07   :  { %v6417_v14 = vmax.f32 %v6405_v38, 0.0 }
0x1d08   :  { %v6438_v47 = vpack.c.bf16 %v6419_v4, %v6418_v62 }
0x1d09   :  { %v6437_v36 = vpack.c.bf16 %v6417_v14, %v6416_v41 }
0x1d0b   :  { %7684 = vmatprep.mubr.bf16.mxu0 %v6437_v36 }
0x1d0c   :  { %7685 = vmatmul.mubr.bf16.vlgmr.msra.gmra.mrb[56].mxu0 %v6438_v47 }
0x1ddf   :  { %v7686_v33 = vpop.f32.mrb[56].mxu0 }
0x1de0   :  { %v6533_v29 = vadd.f32 %v7686_v33, %v6442_v55  ;;  %v6525_v6 = vpop.f32.mrb[57].mxu0 }
0x1de1   :  { %v6526_v35 = vadd.f32 %v6525_v6, %v6442_v55  ;;  %v7687_v12 = vpop.f32.mrb[58].mxu0 }
0x1de2   :  { %v6539_v31 = vadd.f32 %v6533_v29, %v6336_v19  ;;  %v6528_v15 = vpop.f32.mrb[59].mxu0 }
0x1de3   :  { %v6538_v1 = vadd.f32 %v6526_v35, %v6334_v49  ;;  %v6575_v49 = vrot.slane %v9996_v25, %v9158_v53  ;;  %v6654_v53 = vsub.s32 %v6651_v17, %v8664_v9 }
0x1de4   :  { %v6543_v57 = vsel %vm59_vm0, %v6539_v31, 0.0 }
0x1de5   :  { %6544 = vadd.xlane.f32.xlu1 %v6543_v57  ;;  %v6540_v27 = vsel %vm59_vm0, %v6538_v1, 0.0 }
0x1de6   :  { %6541 = vadd.xlane.f32.xlu0 %v6540_v27 }
0x1e72   :  { %v6545_v51 = vpop.xlane.xlu1 %6544 }
0x1e73   :  { %v6547_v30 = vmul.f32 0.03125, %v6545_v51  ;;  %v6542_v58 = vpop.xlane.xlu0 %6541 }
0x1e74   :  { %v6546_v44 = vmul.f32 0.03125, %v6542_v58 }
0x1e75   :  { %v6549_v39 = vsub.f32 %v6539_v31, %v6547_v30 }
0x1e76   :  { %v6548_v18 = vsub.f32 %v6538_v1, %v6546_v44 }
0x1e77   :  { %v6551_v60 = vmul.f32 %v6549_v39, %v6549_v39 }
0x1e78   :  { %v6550_v50 = vmul.f32 %v6548_v18, %v6548_v18 }
0x1e79   :  { %v6555_v42 = vsel %vm59_vm0, %v6551_v60, 0.0 }
0x1e7a   :  { %6556 = vadd.xlane.f32.xlu1 %v6555_v42  ;;  %v6552_v56 = vsel %vm59_vm0, %v6550_v50, 0.0 }
0x1e7b   :  { %6553 = vadd.xlane.f32.xlu0 %v6552_v56 }
0x1f07   :  { %v6557_v11 = vpop.xlane.xlu1 %6556 }
0x1f08   :  { %v6559_v23 = vmul.f32 0.03125, %v6557_v11  ;;  %v6554_v2 = vpop.xlane.xlu0 %6553 }
0x1f09   :  { %v6558_v20 = vmul.f32 0.03125, %v6554_v2 }
0x1f0a   :  { %v6561_v16 = vadd.f32 1e-05, %v6559_v23 }
0x1f0b   :  { %v6560_v63 = vadd.f32 1e-05, %v6558_v20 }
0x1f0c   :  { %8555 = vrsqrt.f32 %v6561_v16 }
0x1f0d   :  { %8557 = vrsqrt.f32 %v6560_v63 }
0x1f16   :  { %v8556_v34 = vpop.eup %8555 }
0x1f17   :  { %v8558_v21 = vpop.eup %8557  ;;  %v6565_v26 = vmul.f32 %v8556_v34, %v6549_v39 }
0x1f18   :  { %v6564_v8 = vmul.f32 %v8558_v21, %v6548_v18 }
0x1f19   :  { %v6571_v22 = vmul.f32 %v6569_v40, %v6565_v26 }
0x1f1a   :  { %v6570_v24 = vmul.f32 %v6569_v40, %v6564_v8 }
0x1f1b   :  { %v6577_v46 = vadd.f32 %v6575_v49, %v6571_v22 }
0x1f1c   :  { %v6576_v5 = vadd.f32 %v6575_v49, %v6570_v24 }
0x1f1d   :  { %v6579_v54 = vrot.slane %v6577_v46, 7 }
0x1f1f   :  { %v6582_v19 = vsel %vm6581_vm7, %v6576_v5, %v6579_v54 }
0x1f20   :  { %v6588_v61 = vpack.c.bf16 %v6582_v19, %v6582_v19 }
0x1f22   :  { %7693 = vmatmul.mubr.msk.bf16.vlgmr.msra.gmra.mrb[84].mxu1 %vm59_vm0, %v6588_v61 }
0x1ff5   :  { %v6642_v25 = vpop.f32.mrb[84].mxu1 }
0x1ff6   :  { %v6643_v0 = vadd.f32 %v6953_v48, %v6642_v25  ;;  %v7694_v45 = vpop.f32.mrb[85].mxu1 }
0x1ff7   :  { %v6645_v32 = vpop.f32.mrb[86].mxu1 }
0x1ff8   :  { %v6655_v37 = vrot.slane %v6643_v0, %v6654_v53  ;;  %v7695_v13 = vpop.f32.mrb[87].mxu1 }
0x1ffa   :  { %v6656_v10 = vcombine.high %v6655_v37, %v6655_v37  ;;  %6957 = vst.sshfl [vmem:[#allocation2] sm:$0x1 pattern:$0x73625140] %v6655_v37 }
0x1ffc   :  { %6958 = vst.sshfl [vmem:[#allocation2 + $0x1] sm:$0x1 pattern:$0x73625140] %v6656_v10 }
0x1ffd   :  { %8577 = shalt.err (!%p8574_p4)
}
0x1ffe   :  { %s8578_s30 = scalar_lea.hbm %s10110_s7, 32 }
0x1fff   :  { %p8579_p5 = scmp.ne.s32.totalorder %s10110_s7, %s8578_s30  ;;  %p8582_p6 = scmp.lt.u32.totalorder %s8578_s30, %s10110_s7 }
0x2001   :  { %p8584_p7 = pnand %p8582_p6, %p8579_p5 }
0x2003   :  { %8587 = shalt.err (!%p8584_p7)
}
0x2004   :  { %s8602_s12 = smov 1  }
0x2005   :  { %6686 = dma.vmem_to_hbm [thread:$0]  %s6681_s19, 32, %s10110_s7, [#allocation3], %s8597_s25, %s8597_s25, %s8602_s12  }
0x2006   :  { %8588 = dma.done.wait [#allocation3], 32  }
0x2007   :  { %8589 = vsyncadd [#allocation3], 4294967264 }
0x2008   :  { %6690 = vsyncpa [#allocation3], 1 }

</bundles_post_ra>
